<compile_context>
chip_gen: v6e
topology: v6e:2x2x1
jax: 0.10.0
libtpu: 0.0.40
codegen_flags: <defaults>
</compile_context>

<pallas_src>
import functools
import math

import numpy as np
import jax
import jax.numpy as jnp
from jax.experimental import pallas as pl
from jax.experimental.pallas import tpu as pltpu

SELU_ALPHA = 1.6732632423543772
SELU_SCALE = 1.0507009873554805


def _selu(x):
    return SELU_SCALE * jnp.where(x > 0, x, SELU_ALPHA * (jnp.exp(x) - 1.0))


# -----------------------------------------------------------------------------
# Weight-slab layout: every weight/bias lives in ONE lane-dense [R,128] f32
# slab at an 8-aligned row offset.  Row counts equal the K the kernel matmul
# uses (rows beyond the real K are zero).  The 230-wide head fc1/fc2 are split
# into two 128-lane blocks (lo/hi).
# -----------------------------------------------------------------------------
_SLAB_LAYOUT = (
    ("w1m", 32, 32),        # conv1 im2col weights: [di*5+dj (25, padded), oc]
    ("b1", 1, 32),
    ("b2", 1, 64),
    ("ws1", 128, 120),      # MLP_share fc1 (rows 0..63 real)
    ("bs1", 1, 120),
    ("ws2", 128, 10),       # MLP_share fc2 (rows 0..119 real)
    ("bs2", 1, 10),
    ("wm1a_lo", 128, 128),  # head fc1, x1 half, output lanes 0..127
    ("wm1a_hi", 128, 102),  # head fc1, x1 half, output lanes 128..229
    ("wm1b_lo", 128, 128),  # head fc1, x2 half
    ("wm1b_hi", 128, 102),
    ("bm1_lo", 1, 128),
    ("bm1_hi", 1, 102),
    ("wm2_lo", 128, 100),   # head fc2, K rows 0..127
    ("wm2_hi", 128, 100),   # head fc2, K rows 128..229 (real rows 0..101)
    ("bm2", 1, 100),
    ("wm3", 128, 2),        # head fc3 (rows 0..99 real)
    ("bm3", 1, 2),
)


def _slab_offsets():
    offs, r = {}, 0
    for name, k, _ in _SLAB_LAYOUT:
        offs[name] = r
        r += ((k + 7) // 8) * 8
    return offs, r


_SLAB_OFFS, _SLAB_ROWS = _slab_offsets()


# ----------------------------- fused Pallas kernel ---------------------------

def _fused_net_kernel(patches_ref, wslab_ref, w2p_ref, out_ref, *, bpad):
    f32 = jnp.float32
    npad = 2 * bpad            # image-slot stride: ch-0 slots [0,bpad), ch-1 [bpad,2bpad)
    blk = 25 * npad            # rows per 2x2-pool-window offset block

    def W(name, k):
        o = _SLAB_OFFS[name]
        return wslab_ref[o:o + k, :]

    # ---- conv1 (1->32, k=5): one MXU matmul over pre-gathered patches -------
    y1 = jnp.dot(patches_ref[...], W("w1m", 32),
                 preferred_element_type=f32) + W("b1", 1)           # [4*blk, 128]

    # ---- max_pool2d(2,2) + SELU: max of the 4 aligned row blocks ------------
    a1 = _selu(jnp.maximum(jnp.maximum(y1[0:blk], y1[blk:2 * blk]),
                           jnp.maximum(y1[2 * blk:3 * blk],
                                       y1[3 * blk:4 * blk])))       # [blk, 128]
    # a1 row (ph*5+pw)*npad + n = pooled conv1 activation at (ph,pw), image n.

    # ---- conv2 (32->64, k=3) as ONE packed MXU matmul ------------------------
    # w2p: tap t = kh*3+kw occupies lanes [t*128, t*128+64).
    c = jnp.dot(a1, w2p_ref[...], preferred_element_type=f32)       # [blk, 1152]

    # ---- gather taps (aligned slices), 3x3 max-pool + SELU -------------------
    feats_m = None
    for oh in range(3):
        y2 = None                                                    # [3*npad, 128]
        for kh in range(3):
            for kw in range(3):
                t = kh * 3 + kw
                s = ((oh + kh) * 5 + kw) * npad
                part = c[s:s + 3 * npad, t * 128:(t + 1) * 128]
                y2 = part if y2 is None else y2 + part
        for ow in range(3):
            cand = y2[ow * npad:(ow + 1) * npad, :]
            feats_m = cand if feats_m is None else jnp.maximum(feats_m, cand)
    feats = _selu(feats_m + W("b2", 1))                              # [npad, 128], lanes 64+ = 0

    # ---- MLP_share (Dropout(0.15) = identity in eval) ------------------------
    h1 = _selu(jnp.dot(feats, W("ws1", 128), preferred_element_type=f32) + W("bs1", 1))
    h = _selu(jnp.dot(h1, W("ws2", 128), preferred_element_type=f32) + W("bs2", 1))
    # h: [npad, 128], lanes 10+ = 0

    # ---- MLP head: cat(x1,x2) folded into split-K matmuls; 230-wide layers
    #      split into two 128-lane blocks --------------------------------------
    x1g = h[0:bpad, :]
    x2g = h[bpad:2 * bpad, :]
    z1_lo = _selu(jnp.dot(x1g, W("wm1a_lo", 128), preferred_element_type=f32)
                  + jnp.dot(x2g, W("wm1b_lo", 128), preferred_element_type=f32)
                  + W("bm1_lo", 1))
    z1_hi = _selu(jnp.dot(x1g, W("wm1a_hi", 128), preferred_element_type=f32)
                  + jnp.dot(x2g, W("wm1b_hi", 128), preferred_element_type=f32)
                  + W("bm1_hi", 1))
    z2 = _selu(jnp.dot(z1_lo, W("wm2_lo", 128), preferred_element_type=f32)
               + jnp.dot(z1_hi, W("wm2_hi", 128), preferred_element_type=f32)
               + W("bm2", 1))
    z = jnp.dot(z2, W("wm3", 128), preferred_element_type=f32) + W("bm3", 1)
    # z: [bpad, 128], lanes 2+ = 0

    # ---- two aligned, unmasked full-lane stores -------------------------------
    out_ref[0:2 * bpad, :] = h
    out_ref[2 * bpad:3 * bpad, :] = z


# ----------------------------- wrapper (jitted glue + kernel) -----------------

def _conv1_patches(x, bpad):
    """im2col for conv1 in pool-friendly, 8-row-aligned order.

    Returns [4*25*npad, 32] with row = wi*25*npad + (ph*5+pw)*npad + n and
    col = di*5+dj (padded 25->32); value = img[n, 2*ph+wih+di, 2*pw+wiw+dj],
    wi = wih*2 + wiw.  Image slots: channel-0 sample b -> n=b, channel-1
    sample b -> n=bpad+b.
    """
    B = x.shape[0]
    npad = 2 * bpad
    pad = ((0, bpad - B), (0, 0), (0, 0))
    imgs = jnp.concatenate([jnp.pad(x[:, 0], pad), jnp.pad(x[:, 1], pad)], axis=0)
    imgs = imgs[:, None, :, :]                                        # [npad,1,14,14]
    p = jax.lax.conv_general_dilated_patches(
        imgs, filter_shape=(5, 5), window_strides=(1, 1), padding="VALID")
    # p: [npad, 25, 10, 10] with channel index = di*5+dj
    p = p.reshape(npad, 25, 5, 2, 5, 2)                               # n,c,ph,wih,pw,wiw
    p = jnp.transpose(p, (3, 5, 2, 4, 0, 1))                          # wih,wiw,ph,pw,n,c
    p = p.reshape(4 * 25 * npad, 25)
    return jnp.pad(p, ((0, 0), (0, 7)))                               # K: 25 -> 32


@jax.jit
def net_forward(x, params):
    """Net.forward.  x: [B, 2, 14, 14] (NCHW).  Returns (x1, x2, x_final)."""
    B = x.shape[0]
    bpad = ((B + 7) // 8) * 8
    patches = _conv1_patches(x, bpad)                                 # [4*25*2*bpad, 32]

    out = pl.pallas_call(
        functools.partial(_fused_net_kernel, bpad=bpad),
        out_shape=jax.ShapeDtypeStruct((3 * bpad, 128), jnp.float32),
        in_specs=[pl.BlockSpec(memory_space=pltpu.MemorySpace.VMEM)] * 3,
        out_specs=pl.BlockSpec(memory_space=pltpu.MemorySpace.VMEM),
    )(patches, params["wslab"], params["w2p"])
    # TODO(synk): for large batches, add a leading "parallel" grid axis over
    # bpad-sized sample blocks so v7x's two TensorCores can split the work.

    x1 = out[0:B, 0:10]
    x2 = out[bpad:bpad + B, 0:10]
    z = out[2 * bpad:2 * bpad + B, 0:2]
    return x1, x2, z


# ----------------------------- parameters -------------------------------------

def init_params(key):
    ks = jax.random.split(key, 14)

    def u(k, shape, fan_in):
        bound = 1.0 / math.sqrt(fan_in)
        return jax.random.uniform(k, shape, jnp.float32, -bound, bound)

    # PyTorch-layout weights (OIHW convs, [out,in] linears)
    w1 = u(ks[0], (32, 1, 5, 5), 25);        b1 = u(ks[1], (32,), 25)
    w2 = u(ks[2], (64, 32, 3, 3), 32 * 9);   b2 = u(ks[3], (64,), 32 * 9)
    ws1 = u(ks[4], (120, 64), 64);           bs1 = u(ks[5], (120,), 64)
    ws2 = u(ks[6], (10, 120), 120);          bs2 = u(ks[7], (10,), 120)
    wm1 = u(ks[8], (230, 20), 20);           bm1 = u(ks[9], (230,), 20)
    wm2 = u(ks[10], (100, 230), 230);        bm2 = u(ks[11], (100,), 230)
    wm3 = u(ks[12], (2, 100), 100);          bm3 = u(ks[13], (2,), 100)

    raw = dict(w1=w1, b1=b1, w2=w2, b2=b2, ws1=ws1, bs1=bs1, ws2=ws2, bs2=bs2,
               wm1=wm1, bm1=bm1, wm2=wm2, bm2=bm2, wm3=wm3, bm3=bm3)
    rn = {k: np.asarray(v) for k, v in raw.items()}

    def zmat(r, c):
        return np.zeros((r, c), np.float32)

    mats = {}
    m = zmat(32, 32); m[:25, :] = rn["w1"].reshape(32, 25).T; mats["w1m"] = m
    mats["b1"] = rn["b1"].reshape(1, 32)
    mats["b2"] = rn["b2"].reshape(1, 64)
    m = zmat(128, 120); m[:64] = rn["ws1"].T; mats["ws1"] = m
    mats["bs1"] = rn["bs1"].reshape(1, 120)
    m = zmat(128, 10); m[:120] = rn["ws2"].T; mats["ws2"] = m
    mats["bs2"] = rn["bs2"].reshape(1, 10)

    wm1t = rn["wm1"].T                                    # [20, 230]
    for half, rows in (("a", wm1t[0:10]), ("b", wm1t[10:20])):
        m = zmat(128, 128); m[:10] = rows[:, :128]; mats["wm1%s_lo" % half] = m
        m = zmat(128, 102); m[:10] = rows[:, 128:230]; mats["wm1%s_hi" % half] = m
    mats["bm1_lo"] = rn["bm1"][:128].reshape(1, 128)
    mats["bm1_hi"] = rn["bm1"][128:230].reshape(1, 102)

    wm2t = rn["wm2"].T                                    # [230, 100]
    m = zmat(128, 100); m[:, :] = wm2t[:128]; mats["wm2_lo"] = m
    m = zmat(128, 100); m[:102] = wm2t[128:230]; mats["wm2_hi"] = m
    mats["bm2"] = rn["bm2"].reshape(1, 100)
    m = zmat(128, 2); m[:100] = rn["wm3"].T; mats["wm3"] = m
    mats["bm3"] = rn["bm3"].reshape(1, 2)

    slab = np.zeros((_SLAB_ROWS, 128), np.float32)
    for name, k, c in _SLAB_LAYOUT:
        a = mats[name]
        assert a.shape == (k, c), (name, a.shape, (k, c))
        o = _SLAB_OFFS[name]
        slab[o:o + k, :c] = a

    # conv2 packed taps: [128, 9*128]; tap t=kh*3+kw uses lanes [t*128, t*128+64),
    # rows = input channel (0..31 real, rest zero).
    w2p = np.zeros((128, 9 * 128), np.float32)
    w2t = rn["w2"].transpose(1, 2, 3, 0)                  # [ic, kh, kw, oc]
    for t in range(9):
        kh, kw = divmod(t, 3)
        w2p[:32, t * 128:t * 128 + 64] = w2t[:, kh, kw, :]

    params = dict(wslab=jnp.asarray(slab), w2p=jnp.asarray(w2p))
    return params, raw


# ----------------------------- pure-JAX reference -----------------------------

def ref_forward(x, raw):
    def conv(xi, w, b):
        y = jax.lax.conv_general_dilated(
            xi, w, window_strides=(1, 1), padding="VALID",
            dimension_numbers=("NCHW", "OIHW", "NCHW"))
        return y + b[None, :, None, None]

    def pool(xi, k):
        return jax.lax.reduce_window(xi, -jnp.inf, jax.lax.max,
                                     (1, 1, k, k), (1, 1, k, k), "VALID")

    def conv_mod(xi):
        y = _selu(pool(conv(xi, raw["w1"], raw["b1"]), 2))
        y = _selu(pool(conv(y, raw["w2"], raw["b2"]), 3))
        return y.reshape(y.shape[0], -1)

    def mlp_share(v):
        v = _selu(v @ raw["ws1"].T + raw["bs1"])
        v = _selu(v @ raw["ws2"].T + raw["bs2"])
        return v

    x1 = mlp_share(conv_mod(x[:, 0:1]))
    x2 = mlp_share(conv_mod(x[:, 1:2]))
    xc = jnp.concatenate([x1, x2], axis=1)
    z = _selu(xc @ raw["wm1"].T + raw["bm1"])
    z = _selu(z @ raw["wm2"].T + raw["bm2"])
    z = z @ raw["wm3"].T + raw["bm3"]
    return x1, x2, z


# ----------------------------- main --------------------------------------------

if __name__ == "__main__":
    key = jax.random.PRNGKey(0)
    kp, kx = jax.random.split(key)
    params, raw = init_params(kp)

    B = 2
    x = jax.random.normal(kx, (B, 2, 14, 14), jnp.float32)

    x1, x2, x_final = jax.block_until_ready(net_forward(x, params))

    # sanity check against an independent pure-JAX reference
    r1, r2, rz = ref_forward(x, raw)
    np.testing.assert_allclose(np.asarray(x1), np.asarray(r1), rtol=1e-4, atol=1e-4)
    np.testing.assert_allclose(np.asarray(x2), np.asarray(r2), rtol=1e-4, atol=1e-4)
    np.testing.assert_allclose(np.asarray(x_final), np.asarray(rz), rtol=1e-4, atol=1e-4)

    assert x1.shape == (B, 10) and x2.shape == (B, 10) and x_final.shape == (B, 2)
    print("KERNEL_OK")
</pallas_src>

<mosaic_0001>
module attributes {stable_mosaic.version = 11 : i64} {
  func.func @_fused_net_kernel(%arg0: memref<1600x32xf32, #tpu.memory_space<vmem>>, %arg1: memref<1248x128xf32, #tpu.memory_space<vmem>>, %arg2: memref<128x1152xf32, #tpu.memory_space<vmem>>, %arg3: memref<24x128xf32, #tpu.memory_space<vmem>>) attributes {dimension_semantics = [], scalar_prefetch = 0 : i64, scratch_operands = 0 : i64, tpu.core_type = #tpu.core_type<tc>} {
    %c0 = arith.constant 0 : index
    %c0_0 = arith.constant 0 : index
    %0 = vector.load %arg0[%c0, %c0_0] : memref<1600x32xf32, #tpu.memory_space<vmem>>, vector<1600x32xf32>
    %c0_1 = arith.constant 0 : index
    %c0_2 = arith.constant 0 : index
    %1 = vector.load %arg1[%c0_1, %c0_2] : memref<1248x128xf32, #tpu.memory_space<vmem>>, vector<32x128xf32>
    %cst = arith.constant dense<0.000000e+00> : vector<1600x128xf32>
    %2 = tpu.matmul %0, %1, %cst {dimension_numbers = #tpu.dot_dimension_numbers<[1], [0], [0], [1], [0, 0, 1, 1], [], []>} : vector<1600x32xf32>, vector<32x128xf32>, vector<1600x128xf32> -> vector<1600x128xf32>
    %c32 = arith.constant 32 : index
    %c0_3 = arith.constant 0 : index
    %3 = vector.load %arg1[%c32, %c0_3] : memref<1248x128xf32, #tpu.memory_space<vmem>>, vector<1x128xf32>
    %4 = vector.broadcast %3 : vector<1x128xf32> to vector<1600x128xf32>
    %5 = arith.addf %2, %4 : vector<1600x128xf32>
    %6 = vector.extract_strided_slice %5 {offsets = [0, 0], sizes = [400, 128], strides = [1, 1]} : vector<1600x128xf32> to vector<400x128xf32>
    %7 = vector.extract_strided_slice %5 {offsets = [400, 0], sizes = [400, 128], strides = [1, 1]} : vector<1600x128xf32> to vector<400x128xf32>
    %8 = arith.maximumf %6, %7 : vector<400x128xf32>
    %9 = vector.extract_strided_slice %5 {offsets = [800, 0], sizes = [400, 128], strides = [1, 1]} : vector<1600x128xf32> to vector<400x128xf32>
    %10 = vector.extract_strided_slice %5 {offsets = [1200, 0], sizes = [400, 128], strides = [1, 1]} : vector<1600x128xf32> to vector<400x128xf32>
    %11 = arith.maximumf %9, %10 : vector<400x128xf32>
    %12 = arith.maximumf %8, %11 : vector<400x128xf32>
    %cst_4 = arith.constant 0.000000e+00 : f32
    %13 = vector.broadcast %cst_4 : f32 to vector<400x128xf32>
    %14 = arith.cmpf ogt, %12, %13 : vector<400x128xf32>
    %15 = math.exp %12 : vector<400x128xf32>
    %cst_5 = arith.constant 1.000000e+00 : f32
    %16 = vector.broadcast %cst_5 : f32 to vector<400x128xf32>
    %17 = arith.subf %15, %16 : vector<400x128xf32>
    %cst_6 = arith.constant 1.67326319 : f32
    %18 = vector.broadcast %cst_6 : f32 to vector<400x128xf32>
    %19 = arith.mulf %18, %17 : vector<400x128xf32>
    %20 = arith.select %14, %12, %19 : vector<400x128xi1>, vector<400x128xf32>
    %cst_7 = arith.constant 1.05070102 : f32
    %21 = vector.broadcast %cst_7 : f32 to vector<400x128xf32>
    %22 = arith.mulf %21, %20 : vector<400x128xf32>
    %c0_8 = arith.constant 0 : index
    %c0_9 = arith.constant 0 : index
    %23 = vector.load %arg2[%c0_8, %c0_9] : memref<128x1152xf32, #tpu.memory_space<vmem>>, vector<128x1152xf32>
    %cst_10 = arith.constant dense<0.000000e+00> : vector<400x1152xf32>
    %24 = tpu.matmul %22, %23, %cst_10 {dimension_numbers = #tpu.dot_dimension_numbers<[1], [0], [0], [1], [0, 0, 1, 1], [], []>} : vector<400x128xf32>, vector<128x1152xf32>, vector<400x1152xf32> -> vector<400x1152xf32>
    %25 = vector.extract_strided_slice %24 {offsets = [0, 0], sizes = [48, 128], strides = [1, 1]} : vector<400x1152xf32> to vector<48x128xf32>
    %26 = vector.extract_strided_slice %24 {offsets = [16, 128], sizes = [48, 128], strides = [1, 1]} : vector<400x1152xf32> to vector<48x128xf32>
    %27 = arith.addf %25, %26 : vector<48x128xf32>
    %28 = vector.extract_strided_slice %24 {offsets = [32, 256], sizes = [48, 128], strides = [1, 1]} : vector<400x1152xf32> to vector<48x128xf32>
    %29 = arith.addf %27, %28 : vector<48x128xf32>
    %30 = vector.extract_strided_slice %24 {offsets = [80, 384], sizes = [48, 128], strides = [1, 1]} : vector<400x1152xf32> to vector<48x128xf32>
    %31 = arith.addf %29, %30 : vector<48x128xf32>
    %32 = vector.extract_strided_slice %24 {offsets = [96, 512], sizes = [48, 128], strides = [1, 1]} : vector<400x1152xf32> to vector<48x128xf32>
    %33 = arith.addf %31, %32 : vector<48x128xf32>
    %34 = vector.extract_strided_slice %24 {offsets = [112, 640], sizes = [48, 128], strides = [1, 1]} : vector<400x1152xf32> to vector<48x128xf32>
    %35 = arith.addf %33, %34 : vector<48x128xf32>
    %36 = vector.extract_strided_slice %24 {offsets = [160, 768], sizes = [48, 128], strides = [1, 1]} : vector<400x1152xf32> to vector<48x128xf32>
    %37 = arith.addf %35, %36 : vector<48x128xf32>
    %38 = vector.extract_strided_slice %24 {offsets = [176, 896], sizes = [48, 128], strides = [1, 1]} : vector<400x1152xf32> to vector<48x128xf32>
    %39 = arith.addf %37, %38 : vector<48x128xf32>
    %40 = vector.extract_strided_slice %24 {offsets = [192, 1024], sizes = [48, 128], strides = [1, 1]} : vector<400x1152xf32> to vector<48x128xf32>
    %41 = arith.addf %39, %40 : vector<48x128xf32>
    %42 = vector.extract_strided_slice %41 {offsets = [0, 0], sizes = [16, 128], strides = [1, 1]} : vector<48x128xf32> to vector<16x128xf32>
    %43 = vector.extract_strided_slice %41 {offsets = [16, 0], sizes = [16, 128], strides = [1, 1]} : vector<48x128xf32> to vector<16x128xf32>
    %44 = arith.maximumf %42, %43 : vector<16x128xf32>
    %45 = vector.extract_strided_slice %41 {offsets = [32, 0], sizes = [16, 128], strides = [1, 1]} : vector<48x128xf32> to vector<16x128xf32>
    %46 = arith.maximumf %44, %45 : vector<16x128xf32>
    %47 = vector.extract_strided_slice %24 {offsets = [80, 0], sizes = [48, 128], strides = [1, 1]} : vector<400x1152xf32> to vector<48x128xf32>
    %48 = vector.extract_strided_slice %24 {offsets = [96, 128], sizes = [48, 128], strides = [1, 1]} : vector<400x1152xf32> to vector<48x128xf32>
    %49 = arith.addf %47, %48 : vector<48x128xf32>
    %50 = vector.extract_strided_slice %24 {offsets = [112, 256], sizes = [48, 128], strides = [1, 1]} : vector<400x1152xf32> to vector<48x128xf32>
    %51 = arith.addf %49, %50 : vector<48x128xf32>
    %52 = vector.extract_strided_slice %24 {offsets = [160, 384], sizes = [48, 128], strides = [1, 1]} : vector<400x1152xf32> to vector<48x128xf32>
    %53 = arith.addf %51, %52 : vector<48x128xf32>
    %54 = vector.extract_strided_slice %24 {offsets = [176, 512], sizes = [48, 128], strides = [1, 1]} : vector<400x1152xf32> to vector<48x128xf32>
    %55 = arith.addf %53, %54 : vector<48x128xf32>
    %56 = vector.extract_strided_slice %24 {offsets = [192, 640], sizes = [48, 128], strides = [1, 1]} : vector<400x1152xf32> to vector<48x128xf32>
    %57 = arith.addf %55, %56 : vector<48x128xf32>
    %58 = vector.extract_strided_slice %24 {offsets = [240, 768], sizes = [48, 128], strides = [1, 1]} : vector<400x1152xf32> to vector<48x128xf32>
    %59 = arith.addf %57, %58 : vector<48x128xf32>
    %60 = vector.extract_strided_slice %24 {offsets = [256, 896], sizes = [48, 128], strides = [1, 1]} : vector<400x1152xf32> to vector<48x128xf32>
    %61 = arith.addf %59, %60 : vector<48x128xf32>
    %62 = vector.extract_strided_slice %24 {offsets = [272, 1024], sizes = [48, 128], strides = [1, 1]} : vector<400x1152xf32> to vector<48x128xf32>
    %63 = arith.addf %61, %62 : vector<48x128xf32>
    %64 = vector.extract_strided_slice %63 {offsets = [0, 0], sizes = [16, 128], strides = [1, 1]} : vector<48x128xf32> to vector<16x128xf32>
    %65 = arith.maximumf %46, %64 : vector<16x128xf32>
    %66 = vector.extract_strided_slice %63 {offsets = [16, 0], sizes = [16, 128], strides = [1, 1]} : vector<48x128xf32> to vector<16x128xf32>
    %67 = arith.maximumf %65, %66 : vector<16x128xf32>
    %68 = vector.extract_strided_slice %63 {offsets = [32, 0], sizes = [16, 128], strides = [1, 1]} : vector<48x128xf32> to vector<16x128xf32>
    %69 = arith.maximumf %67, %68 : vector<16x128xf32>
    %70 = vector.extract_strided_slice %24 {offsets = [160, 0], sizes = [48, 128], strides = [1, 1]} : vector<400x1152xf32> to vector<48x128xf32>
    %71 = vector.extract_strided_slice %24 {offsets = [176, 128], sizes = [48, 128], strides = [1, 1]} : vector<400x1152xf32> to vector<48x128xf32>
    %72 = arith.addf %70, %71 : vector<48x128xf32>
    %73 = vector.extract_strided_slice %24 {offsets = [192, 256], sizes = [48, 128], strides = [1, 1]} : vector<400x1152xf32> to vector<48x128xf32>
    %74 = arith.addf %72, %73 : vector<48x128xf32>
    %75 = vector.extract_strided_slice %24 {offsets = [240, 384], sizes = [48, 128], strides = [1, 1]} : vector<400x1152xf32> to vector<48x128xf32>
    %76 = arith.addf %74, %75 : vector<48x128xf32>
    %77 = vector.extract_strided_slice %24 {offsets = [256, 512], sizes = [48, 128], strides = [1, 1]} : vector<400x1152xf32> to vector<48x128xf32>
    %78 = arith.addf %76, %77 : vector<48x128xf32>
    %79 = vector.extract_strided_slice %24 {offsets = [272, 640], sizes = [48, 128], strides = [1, 1]} : vector<400x1152xf32> to vector<48x128xf32>
    %80 = arith.addf %78, %79 : vector<48x128xf32>
    %81 = vector.extract_strided_slice %24 {offsets = [320, 768], sizes = [48, 128], strides = [1, 1]} : vector<400x1152xf32> to vector<48x128xf32>
    %82 = arith.addf %80, %81 : vector<48x128xf32>
    %83 = vector.extract_strided_slice %24 {offsets = [336, 896], sizes = [48, 128], strides = [1, 1]} : vector<400x1152xf32> to vector<48x128xf32>
    %84 = arith.addf %82, %83 : vector<48x128xf32>
    %85 = vector.extract_strided_slice %24 {offsets = [352, 1024], sizes = [48, 128], strides = [1, 1]} : vector<400x1152xf32> to vector<48x128xf32>
    %86 = arith.addf %84, %85 : vector<48x128xf32>
    %87 = vector.extract_strided_slice %86 {offsets = [0, 0], sizes = [16, 128], strides = [1, 1]} : vector<48x128xf32> to vector<16x128xf32>
    %88 = arith.maximumf %69, %87 : vector<16x128xf32>
    %89 = vector.extract_strided_slice %86 {offsets = [16, 0], sizes = [16, 128], strides = [1, 1]} : vector<48x128xf32> to vector<16x128xf32>
    %90 = arith.maximumf %88, %89 : vector<16x128xf32>
    %91 = vector.extract_strided_slice %86 {offsets = [32, 0], sizes = [16, 128], strides = [1, 1]} : vector<48x128xf32> to vector<16x128xf32>
    %92 = arith.maximumf %90, %91 : vector<16x128xf32>
    %c40 = arith.constant 40 : index
    %c0_11 = arith.constant 0 : index
    %93 = vector.load %arg1[%c40, %c0_11] : memref<1248x128xf32, #tpu.memory_space<vmem>>, vector<1x128xf32>
    %94 = vector.broadcast %93 : vector<1x128xf32> to vector<16x128xf32>
    %95 = arith.addf %92, %94 : vector<16x128xf32>
    %cst_12 = arith.constant 0.000000e+00 : f32
    %96 = vector.broadcast %cst_12 : f32 to vector<16x128xf32>
    %97 = arith.cmpf ogt, %95, %96 : vector<16x128xf32>
    %98 = math.exp %95 : vector<16x128xf32>
    %cst_13 = arith.constant 1.000000e+00 : f32
    %99 = vector.broadcast %cst_13 : f32 to vector<16x128xf32>
    %100 = arith.subf %98, %99 : vector<16x128xf32>
    %cst_14 = arith.constant 1.67326319 : f32
    %101 = vector.broadcast %cst_14 : f32 to vector<16x128xf32>
    %102 = arith.mulf %101, %100 : vector<16x128xf32>
    %103 = arith.select %97, %95, %102 : vector<16x128xi1>, vector<16x128xf32>
    %cst_15 = arith.constant 1.05070102 : f32
    %104 = vector.broadcast %cst_15 : f32 to vector<16x128xf32>
    %105 = arith.mulf %104, %103 : vector<16x128xf32>
    %c48 = arith.constant 48 : index
    %c0_16 = arith.constant 0 : index
    %106 = vector.load %arg1[%c48, %c0_16] : memref<1248x128xf32, #tpu.memory_space<vmem>>, vector<128x128xf32>
    %cst_17 = arith.constant dense<0.000000e+00> : vector<16x128xf32>
    %107 = tpu.matmul %105, %106, %cst_17 {dimension_numbers = #tpu.dot_dimension_numbers<[1], [0], [0], [1], [0, 0, 1, 1], [], []>} : vector<16x128xf32>, vector<128x128xf32>, vector<16x128xf32> -> vector<16x128xf32>
    %c176 = arith.constant 176 : index
    %c0_18 = arith.constant 0 : index
    %108 = vector.load %arg1[%c176, %c0_18] : memref<1248x128xf32, #tpu.memory_space<vmem>>, vector<1x128xf32>
    %109 = vector.broadcast %108 : vector<1x128xf32> to vector<16x128xf32>
    %110 = arith.addf %107, %109 : vector<16x128xf32>
    %cst_19 = arith.constant 0.000000e+00 : f32
    %111 = vector.broadcast %cst_19 : f32 to vector<16x128xf32>
    %112 = arith.cmpf ogt, %110, %111 : vector<16x128xf32>
    %113 = math.exp %110 : vector<16x128xf32>
    %cst_20 = arith.constant 1.000000e+00 : f32
    %114 = vector.broadcast %cst_20 : f32 to vector<16x128xf32>
    %115 = arith.subf %113, %114 : vector<16x128xf32>
    %cst_21 = arith.constant 1.67326319 : f32
    %116 = vector.broadcast %cst_21 : f32 to vector<16x128xf32>
    %117 = arith.mulf %116, %115 : vector<16x128xf32>
    %118 = arith.select %112, %110, %117 : vector<16x128xi1>, vector<16x128xf32>
    %cst_22 = arith.constant 1.05070102 : f32
    %119 = vector.broadcast %cst_22 : f32 to vector<16x128xf32>
    %120 = arith.mulf %119, %118 : vector<16x128xf32>
    %c184 = arith.constant 184 : index
    %c0_23 = arith.constant 0 : index
    %121 = vector.load %arg1[%c184, %c0_23] : memref<1248x128xf32, #tpu.memory_space<vmem>>, vector<128x128xf32>
    %cst_24 = arith.constant dense<0.000000e+00> : vector<16x128xf32>
    %122 = tpu.matmul %120, %121, %cst_24 {dimension_numbers = #tpu.dot_dimension_numbers<[1], [0], [0], [1], [0, 0, 1, 1], [], []>} : vector<16x128xf32>, vector<128x128xf32>, vector<16x128xf32> -> vector<16x128xf32>
    %c312 = arith.constant 312 : index
    %c0_25 = arith.constant 0 : index
    %123 = vector.load %arg1[%c312, %c0_25] : memref<1248x128xf32, #tpu.memory_space<vmem>>, vector<1x128xf32>
    %124 = vector.broadcast %123 : vector<1x128xf32> to vector<16x128xf32>
    %125 = arith.addf %122, %124 : vector<16x128xf32>
    %cst_26 = arith.constant 0.000000e+00 : f32
    %126 = vector.broadcast %cst_26 : f32 to vector<16x128xf32>
    %127 = arith.cmpf ogt, %125, %126 : vector<16x128xf32>
    %128 = math.exp %125 : vector<16x128xf32>
    %cst_27 = arith.constant 1.000000e+00 : f32
    %129 = vector.broadcast %cst_27 : f32 to vector<16x128xf32>
    %130 = arith.subf %128, %129 : vector<16x128xf32>
    %cst_28 = arith.constant 1.67326319 : f32
    %131 = vector.broadcast %cst_28 : f32 to vector<16x128xf32>
    %132 = arith.mulf %131, %130 : vector<16x128xf32>
    %133 = arith.select %127, %125, %132 : vector<16x128xi1>, vector<16x128xf32>
    %cst_29 = arith.constant 1.05070102 : f32
    %134 = vector.broadcast %cst_29 : f32 to vector<16x128xf32>
    %135 = arith.mulf %134, %133 : vector<16x128xf32>
    %136 = vector.extract_strided_slice %135 {offsets = [0, 0], sizes = [8, 128], strides = [1, 1]} : vector<16x128xf32> to vector<8x128xf32>
    %137 = vector.extract_strided_slice %135 {offsets = [8, 0], sizes = [8, 128], strides = [1, 1]} : vector<16x128xf32> to vector<8x128xf32>
    %c320 = arith.constant 320 : index
    %c0_30 = arith.constant 0 : index
    %138 = vector.load %arg1[%c320, %c0_30] : memref<1248x128xf32, #tpu.memory_space<vmem>>, vector<128x128xf32>
    %cst_31 = arith.constant dense<0.000000e+00> : vector<8x128xf32>
    %139 = tpu.matmul %136, %138, %cst_31 {dimension_numbers = #tpu.dot_dimension_numbers<[1], [0], [0], [1], [0, 0, 1, 1], [], []>} : vector<8x128xf32>, vector<128x128xf32>, vector<8x128xf32> -> vector<8x128xf32>
    %c576 = arith.constant 576 : index
    %c0_32 = arith.constant 0 : index
    %140 = vector.load %arg1[%c576, %c0_32] : memref<1248x128xf32, #tpu.memory_space<vmem>>, vector<128x128xf32>
    %cst_33 = arith.constant dense<0.000000e+00> : vector<8x128xf32>
    %141 = tpu.matmul %137, %140, %cst_33 {dimension_numbers = #tpu.dot_dimension_numbers<[1], [0], [0], [1], [0, 0, 1, 1], [], []>} : vector<8x128xf32>, vector<128x128xf32>, vector<8x128xf32> -> vector<8x128xf32>
    %142 = arith.addf %139, %141 : vector<8x128xf32>
    %c832 = arith.constant 832 : index
    %c0_34 = arith.constant 0 : index
    %143 = vector.load %arg1[%c832, %c0_34] : memref<1248x128xf32, #tpu.memory_space<vmem>>, vector<1x128xf32>
    %144 = vector.broadcast %143 : vector<1x128xf32> to vector<8x128xf32>
    %145 = arith.addf %142, %144 : vector<8x128xf32>
    %cst_35 = arith.constant 0.000000e+00 : f32
    %146 = vector.broadcast %cst_35 : f32 to vector<8x128xf32>
    %147 = arith.cmpf ogt, %145, %146 : vector<8x128xf32>
    %148 = math.exp %145 : vector<8x128xf32>
    %cst_36 = arith.constant 1.000000e+00 : f32
    %149 = vector.broadcast %cst_36 : f32 to vector<8x128xf32>
    %150 = arith.subf %148, %149 : vector<8x128xf32>
    %cst_37 = arith.constant 1.67326319 : f32
    %151 = vector.broadcast %cst_37 : f32 to vector<8x128xf32>
    %152 = arith.mulf %151, %150 : vector<8x128xf32>
    %153 = arith.select %147, %145, %152 : vector<8x128xi1>, vector<8x128xf32>
    %cst_38 = arith.constant 1.05070102 : f32
    %154 = vector.broadcast %cst_38 : f32 to vector<8x128xf32>
    %155 = arith.mulf %154, %153 : vector<8x128xf32>
    %c448 = arith.constant 448 : index
    %c0_39 = arith.constant 0 : index
    %156 = vector.load %arg1[%c448, %c0_39] : memref<1248x128xf32, #tpu.memory_space<vmem>>, vector<128x128xf32>
    %cst_40 = arith.constant dense<0.000000e+00> : vector<8x128xf32>
    %157 = tpu.matmul %136, %156, %cst_40 {dimension_numbers = #tpu.dot_dimension_numbers<[1], [0], [0], [1], [0, 0, 1, 1], [], []>} : vector<8x128xf32>, vector<128x128xf32>, vector<8x128xf32> -> vector<8x128xf32>
    %c704 = arith.constant 704 : index
    %c0_41 = arith.constant 0 : index
    %158 = vector.load %arg1[%c704, %c0_41] : memref<1248x128xf32, #tpu.memory_space<vmem>>, vector<128x128xf32>
    %cst_42 = arith.constant dense<0.000000e+00> : vector<8x128xf32>
    %159 = tpu.matmul %137, %158, %cst_42 {dimension_numbers = #tpu.dot_dimension_numbers<[1], [0], [0], [1], [0, 0, 1, 1], [], []>} : vector<8x128xf32>, vector<128x128xf32>, vector<8x128xf32> -> vector<8x128xf32>
    %160 = arith.addf %157, %159 : vector<8x128xf32>
    %c840 = arith.constant 840 : index
    %c0_43 = arith.constant 0 : index
    %161 = vector.load %arg1[%c840, %c0_43] : memref<1248x128xf32, #tpu.memory_space<vmem>>, vector<1x128xf32>
    %162 = vector.broadcast %161 : vector<1x128xf32> to vector<8x128xf32>
    %163 = arith.addf %160, %162 : vector<8x128xf32>
    %cst_44 = arith.constant 0.000000e+00 : f32
    %164 = vector.broadcast %cst_44 : f32 to vector<8x128xf32>
    %165 = arith.cmpf ogt, %163, %164 : vector<8x128xf32>
    %166 = math.exp %163 : vector<8x128xf32>
    %cst_45 = arith.constant 1.000000e+00 : f32
    %167 = vector.broadcast %cst_45 : f32 to vector<8x128xf32>
    %168 = arith.subf %166, %167 : vector<8x128xf32>
    %cst_46 = arith.constant 1.67326319 : f32
    %169 = vector.broadcast %cst_46 : f32 to vector<8x128xf32>
    %170 = arith.mulf %169, %168 : vector<8x128xf32>
    %171 = arith.select %165, %163, %170 : vector<8x128xi1>, vector<8x128xf32>
    %cst_47 = arith.constant 1.05070102 : f32
    %172 = vector.broadcast %cst_47 : f32 to vector<8x128xf32>
    %173 = arith.mulf %172, %171 : vector<8x128xf32>
    %c848 = arith.constant 848 : index
    %c0_48 = arith.constant 0 : index
    %174 = vector.load %arg1[%c848, %c0_48] : memref<1248x128xf32, #tpu.memory_space<vmem>>, vector<128x128xf32>
    %cst_49 = arith.constant dense<0.000000e+00> : vector<8x128xf32>
    %175 = tpu.matmul %155, %174, %cst_49 {dimension_numbers = #tpu.dot_dimension_numbers<[1], [0], [0], [1], [0, 0, 1, 1], [], []>} : vector<8x128xf32>, vector<128x128xf32>, vector<8x128xf32> -> vector<8x128xf32>
    %c976 = arith.constant 976 : index
    %c0_50 = arith.constant 0 : index
    %176 = vector.load %arg1[%c976, %c0_50] : memref<1248x128xf32, #tpu.memory_space<vmem>>, vector<128x128xf32>
    %cst_51 = arith.constant dense<0.000000e+00> : vector<8x128xf32>
    %177 = tpu.matmul %173, %176, %cst_51 {dimension_numbers = #tpu.dot_dimension_numbers<[1], [0], [0], [1], [0, 0, 1, 1], [], []>} : vector<8x128xf32>, vector<128x128xf32>, vector<8x128xf32> -> vector<8x128xf32>
    %178 = arith.addf %175, %177 : vector<8x128xf32>
    %c1104 = arith.constant 1104 : index
    %c0_52 = arith.constant 0 : index
    %179 = vector.load %arg1[%c1104, %c0_52] : memref<1248x128xf32, #tpu.memory_space<vmem>>, vector<1x128xf32>
    %180 = vector.broadcast %179 : vector<1x128xf32> to vector<8x128xf32>
    %181 = arith.addf %178, %180 : vector<8x128xf32>
    %cst_53 = arith.constant 0.000000e+00 : f32
    %182 = vector.broadcast %cst_53 : f32 to vector<8x128xf32>
    %183 = arith.cmpf ogt, %181, %182 : vector<8x128xf32>
    %184 = math.exp %181 : vector<8x128xf32>
    %cst_54 = arith.constant 1.000000e+00 : f32
    %185 = vector.broadcast %cst_54 : f32 to vector<8x128xf32>
    %186 = arith.subf %184, %185 : vector<8x128xf32>
    %cst_55 = arith.constant 1.67326319 : f32
    %187 = vector.broadcast %cst_55 : f32 to vector<8x128xf32>
    %188 = arith.mulf %187, %186 : vector<8x128xf32>
    %189 = arith.select %183, %181, %188 : vector<8x128xi1>, vector<8x128xf32>
    %cst_56 = arith.constant 1.05070102 : f32
    %190 = vector.broadcast %cst_56 : f32 to vector<8x128xf32>
    %191 = arith.mulf %190, %189 : vector<8x128xf32>
    %c1112 = arith.constant 1112 : index
    %c0_57 = arith.constant 0 : index
    %192 = vector.load %arg1[%c1112, %c0_57] : memref<1248x128xf32, #tpu.memory_space<vmem>>, vector<128x128xf32>
    %cst_58 = arith.constant dense<0.000000e+00> : vector<8x128xf32>
    %193 = tpu.matmul %191, %192, %cst_58 {dimension_numbers = #tpu.dot_dimension_numbers<[1], [0], [0], [1], [0, 0, 1, 1], [], []>} : vector<8x128xf32>, vector<128x128xf32>, vector<8x128xf32> -> vector<8x128xf32>
    %c1240 = arith.constant 1240 : index
    %c0_59 = arith.constant 0 : index
    %194 = vector.load %arg1[%c1240, %c0_59] : memref<1248x128xf32, #tpu.memory_space<vmem>>, vector<1x128xf32>
    %195 = vector.broadcast %194 : vector<1x128xf32> to vector<8x128xf32>
    %196 = arith.addf %193, %195 : vector<8x128xf32>
    %c0_60 = arith.constant 0 : index
    %c0_61 = arith.constant 0 : index
    %197 = vector.load %arg3[%c0_60, %c0_61] : memref<24x128xf32, #tpu.memory_space<vmem>>, vector<16x128xf32>
    tpu.vector_store %arg3[%c0_60, %c0_61], %135 {strides = array<i32>} : memref<24x128xf32, #tpu.memory_space<vmem>>, vector<16x128xf32>,
    %c16 = arith.constant 16 : index
    %c0_62 = arith.constant 0 : index
    %198 = vector.load %arg3[%c16, %c0_62] : memref<24x128xf32, #tpu.memory_space<vmem>>, vector<8x128xf32>
    tpu.vector_store %arg3[%c16, %c0_62], %196 {strides = array<i32>} : memref<24x128xf32, #tpu.memory_space<vmem>>, vector<8x128xf32>,
    return
  }
}

</mosaic_0001>

<bundles_post_ra>
// kernel: net_forward.1
= control target key start
LH: loop header
LB: loop body
LE: loop exit
PB: predicated region body
PF: predicated region fallthrough
CT: control target
= control target key end

     0   :  { %vm223_vm0 = vcmask 261120   ;;  %s10545_s1 = inlined_call_operand.vmem [shape: f32[1248,128], index: 1, kind: input, shape index: {}]   ;;  %s10546_s0 = inlined_call_operand.vmem [shape: f32[1600,32], index: 0, kind: input, shape index: {}]   ;;  %s10547_s2 = inlined_call_operand.vmem [shape: f32[128,1152], index: 2, kind: input, shape index: {}]   ;;  %s10548_s3 = inlined_call_operand.vmem [shape: f32[24,128], index: 3, kind: output, shape index: {}]  }
   0x1   :  { %v217_v0 = vld [vmem:[%s10545_s1 + $0x18] sm:$0xff]  ;;  %v216_v1 = vld [vmem:[%s10545_s1 + $0x10] sm:$0xff]  ;;  %v14_v2 = vld [vmem:[%s10546_s0] sm:$0xff] }
   0x2   :  { %5766 = vmatprep.subr.mxu0 %v217_v0  ;;  %v215_v3 = vld [vmem:[%s10545_s1 + $0x8] sm:$0xff]  ;;  %5774 = vmatprep.mubr.msk.f32.mxu0 %vm223_vm0, %v14_v2  ;;  %v214_v4 = vld [vmem:[%s10545_s1] sm:$0xff]  ;;  %v16_v6 = vld [vmem:[%s10546_s0 + $0x10] sm:$0xff] }
   0x3   :  { %5767 = vmatpush3.msra.mxu0 %v217_v0  ;;  %v15_v5 = vld [vmem:[%s10546_s0 + $0x8] sm:$0xff]  ;;  %v17_v7 = vld [vmem:[%s10546_s0 + $0x18] sm:$0xff]  ;;  %v18_v8 = vld [vmem:[%s10546_s0 + $0x20] sm:$0xff] }
   0x4   :  { %5768 = vmatprep.subr.mxu0 %v216_v1  ;;  %v19_v9 = vld [vmem:[%s10546_s0 + $0x28] sm:$0xff]  ;;  %v20_v10 = vld [vmem:[%s10546_s0 + $0x30] sm:$0xff]  ;;  %v21_v11 = vld [vmem:[%s10546_s0 + $0x38] sm:$0xff] }
   0x5   :  { %5769 = vmatpush3.msra.mxu0 %v216_v1  ;;  %v22_v12 = vld [vmem:[%s10546_s0 + $0x40] sm:$0xff]  ;;  %v23_v13 = vld [vmem:[%s10546_s0 + $0x48] sm:$0xff]  ;;  %v24_v14 = vld [vmem:[%s10546_s0 + $0x50] sm:$0xff] }
   0x6   :  { %5770 = vmatprep.subr.mxu0 %v215_v3  ;;  %v25_v15 = vld [vmem:[%s10546_s0 + $0x58] sm:$0xff]  ;;  %v26_v16 = vld [vmem:[%s10546_s0 + $0x60] sm:$0xff]  ;;  %v27_v17 = vld [vmem:[%s10546_s0 + $0x68] sm:$0xff] }
   0x7   :  { %5771 = vmatpush3.msra.mxu0 %v215_v3  ;;  %v28_v18 = vld [vmem:[%s10546_s0 + $0x70] sm:$0xff]  ;;  %v29_v19 = vld [vmem:[%s10546_s0 + $0x78] sm:$0xff]  ;;  %v30_v20 = vld [vmem:[%s10546_s0 + $0x80] sm:$0xff] }
   0x8   :  { %5772 = vmatprep.subr.mxu0 %v214_v4  ;;  %v31_v21 = vld [vmem:[%s10546_s0 + $0x88] sm:$0xff]  ;;  %v32_v22 = vld [vmem:[%s10546_s0 + $0x90] sm:$0xff]  ;;  %v33_v23 = vld [vmem:[%s10546_s0 + $0x98] sm:$0xff] }
   0x9   :  { %5773 = vmatpush3.msra.mxu0 %v214_v4  ;;  %v34_v24 = vld [vmem:[%s10546_s0 + $0xa0] sm:$0xff]  ;;  %v35_v25 = vld [vmem:[%s10546_s0 + $0xa8] sm:$0xff]  ;;  %v36_v26 = vld [vmem:[%s10546_s0 + $0xb0] sm:$0xff] }
   0xa   :  { %5775 = vmatmul.mubr.msk.f32.vlgmr.msra.gmra.mxu0 %vm223_vm0, %v15_v5  ;;  %v37_v27 = vld [vmem:[%s10546_s0 + $0xb8] sm:$0xff]  ;;  %v38_v28 = vld [vmem:[%s10546_s0 + $0xc0] sm:$0xff]  ;;  %v39_v29 = vld [vmem:[%s10546_s0 + $0xc8] sm:$0xff] }
   0xb   :  { %5777 = vmatprep.mubr.msk.f32.mxu0 %vm223_vm0, %v16_v6  ;;  %v40_v30 = vld [vmem:[%s10546_s0 + $0xd0] sm:$0xff]  ;;  %v41_v31 = vld [vmem:[%s10546_s0 + $0xd8] sm:$0xff]  ;;  %v42_v32 = vld [vmem:[%s10546_s0 + $0xe0] sm:$0xff] }
   0xc   :  { %v43_v33 = vld [vmem:[%s10546_s0 + $0xe8] sm:$0xff]  ;;  %v44_v34 = vld [vmem:[%s10546_s0 + $0xf0] sm:$0xff]  ;;  %v45_v35 = vld [vmem:[%s10546_s0 + $0xf8] sm:$0xff] }
   0xd   :  { %v46_v36 = vld [vmem:[%s10546_s0 + $0x100] sm:$0xff]  ;;  %v47_v37 = vld [vmem:[%s10546_s0 + $0x108] sm:$0xff]  ;;  %v48_v38 = vld [vmem:[%s10546_s0 + $0x110] sm:$0xff] }
   0xe   :  { %5778 = vmatmul.mubr.msk.f32.gmra.mxu0 %vm223_vm0, %v17_v7  ;;  %v49_v39 = vld [vmem:[%s10546_s0 + $0x118] sm:$0xff]  ;;  %v50_v40 = vld [vmem:[%s10546_s0 + $0x120] sm:$0xff]  ;;  %v51_v41 = vld [vmem:[%s10546_s0 + $0x128] sm:$0xff] }
   0xf   :  { %5780 = vmatprep.mubr.msk.f32.mxu0 %vm223_vm0, %v18_v8  ;;  %v52_v42 = vld [vmem:[%s10546_s0 + $0x130] sm:$0xff]  ;;  %v53_v43 = vld [vmem:[%s10546_s0 + $0x138] sm:$0xff]  ;;  %v54_v44 = vld [vmem:[%s10546_s0 + $0x140] sm:$0xff] }
  0x10   :  { %v55_v45 = vld [vmem:[%s10546_s0 + $0x148] sm:$0xff]  ;;  %v56_v46 = vld [vmem:[%s10546_s0 + $0x150] sm:$0xff]  ;;  %v57_v47 = vld [vmem:[%s10546_s0 + $0x158] sm:$0xff] }
  0x11   :  { %v58_v48 = vld [vmem:[%s10546_s0 + $0x160] sm:$0xff]  ;;  %v59_v49 = vld [vmem:[%s10546_s0 + $0x168] sm:$0xff]  ;;  %v60_v50 = vld [vmem:[%s10546_s0 + $0x170] sm:$0xff] }
  0x12   :  { %5781 = vmatmul.mubr.msk.f32.gmra.mxu0 %vm223_vm0, %v19_v9  ;;  %v61_v51 = vld [vmem:[%s10546_s0 + $0x178] sm:$0xff]  ;;  %v62_v52 = vld [vmem:[%s10546_s0 + $0x180] sm:$0xff]  ;;  %v63_v53 = vld [vmem:[%s10546_s0 + $0x188] sm:$0xff] }
  0x13   :  { %5783 = vmatprep.mubr.msk.f32.mxu0 %vm223_vm0, %v20_v10  ;;  %v64_v54 = vld [vmem:[%s10546_s0 + $0x190] sm:$0xff]  ;;  %v65_v55 = vld [vmem:[%s10546_s0 + $0x198] sm:$0xff]  ;;  %v66_v56 = vld [vmem:[%s10546_s0 + $0x1a0] sm:$0xff] }
  0x14   :  { %v67_v57 = vld [vmem:[%s10546_s0 + $0x1a8] sm:$0xff]  ;;  %v68_v58 = vld [vmem:[%s10546_s0 + $0x1b0] sm:$0xff]  ;;  %v69_v59 = vld [vmem:[%s10546_s0 + $0x1b8] sm:$0xff] }
  0x15   :  { %v70_v60 = vld [vmem:[%s10546_s0 + $0x1c0] sm:$0xff]  ;;  %v71_v61 = vld [vmem:[%s10546_s0 + $0x1c8] sm:$0xff]  ;;  %v72_v62 = vld [vmem:[%s10546_s0 + $0x1d0] sm:$0xff] }
  0x16   :  { %5784 = vmatmul.mubr.msk.f32.gmra.mxu0 %vm223_vm0, %v21_v11  ;;  %v73_v63 = vld [vmem:[%s10546_s0 + $0x1d8] sm:$0xff]  ;;  %v74_v0 = vld [vmem:[%s10546_s0 + $0x1e0] sm:$0xff]  ;;  %v75_v1 = vld [vmem:[%s10546_s0 + $0x1e8] sm:$0xff] }
  0x17   :  { %5786 = vmatprep.mubr.msk.f32.mxu0 %vm223_vm0, %v22_v12  ;;  %v76_v2 = vld [vmem:[%s10546_s0 + $0x1f0] sm:$0xff]  ;;  %v77_v3 = vld [vmem:[%s10546_s0 + $0x1f8] sm:$0xff]  ;;  %v78_v4 = vld [vmem:[%s10546_s0 + $0x200] sm:$0xff] }
  0x18   :  { %v79_v5 = vld [vmem:[%s10546_s0 + $0x208] sm:$0xff]  ;;  %v80_v6 = vld [vmem:[%s10546_s0 + $0x210] sm:$0xff]  ;;  %v81_v7 = vld [vmem:[%s10546_s0 + $0x218] sm:$0xff] }
  0x19   :  { %v82_v8 = vld [vmem:[%s10546_s0 + $0x220] sm:$0xff]  ;;  %v83_v9 = vld [vmem:[%s10546_s0 + $0x228] sm:$0xff]  ;;  %v84_v10 = vld [vmem:[%s10546_s0 + $0x230] sm:$0xff] }
  0x1a   :  { %5787 = vmatmul.mubr.msk.f32.gmra.mxu0 %vm223_vm0, %v23_v13  ;;  %v85_v11 = vld [vmem:[%s10546_s0 + $0x238] sm:$0xff]  ;;  %v86_v12 = vld [vmem:[%s10546_s0 + $0x240] sm:$0xff]  ;;  %v87_v13 = vld [vmem:[%s10546_s0 + $0x248] sm:$0xff] }
  0x1b   :  { %5789 = vmatprep.mubr.msk.f32.mxu0 %vm223_vm0, %v24_v14  ;;  %v88_v14 = vld [vmem:[%s10546_s0 + $0x250] sm:$0xff] }
  0x1e   :  { %5790 = vmatmul.mubr.msk.f32.gmra.mxu0 %vm223_vm0, %v25_v15  ;;  %v89_v15 = vld [vmem:[%s10546_s0 + $0x258] sm:$0xff] }
  0x1f   :  { %5792 = vmatprep.mubr.msk.f32.mxu0 %vm223_vm0, %v26_v16  ;;  %v90_v16 = vld [vmem:[%s10546_s0 + $0x260] sm:$0xff] }
  0x22   :  { %5793 = vmatmul.mubr.msk.f32.gmra.mxu0 %vm223_vm0, %v27_v17  ;;  %v91_v17 = vld [vmem:[%s10546_s0 + $0x268] sm:$0xff] }
  0x23   :  { %5795 = vmatprep.mubr.msk.f32.mxu0 %vm223_vm0, %v28_v18  ;;  %v92_v18 = vld [vmem:[%s10546_s0 + $0x270] sm:$0xff] }
  0x26   :  { %5796 = vmatmul.mubr.msk.f32.gmra.mxu0 %vm223_vm0, %v29_v19  ;;  %v93_v19 = vld [vmem:[%s10546_s0 + $0x278] sm:$0xff] }
  0x27   :  { %5798 = vmatprep.mubr.msk.f32.mxu0 %vm223_vm0, %v30_v20  ;;  %v94_v20 = vld [vmem:[%s10546_s0 + $0x280] sm:$0xff] }
  0x2a   :  { %5799 = vmatmul.mubr.msk.f32.gmra.mxu0 %vm223_vm0, %v31_v21  ;;  %v95_v21 = vld [vmem:[%s10546_s0 + $0x288] sm:$0xff] }
  0x2b   :  { %5801 = vmatprep.mubr.msk.f32.mxu0 %vm223_vm0, %v32_v22  ;;  %v96_v22 = vld [vmem:[%s10546_s0 + $0x290] sm:$0xff] }
  0x2e   :  { %5802 = vmatmul.mubr.msk.f32.gmra.mxu0 %vm223_vm0, %v33_v23  ;;  %v97_v23 = vld [vmem:[%s10546_s0 + $0x298] sm:$0xff] }
  0x2f   :  { %5804 = vmatprep.mubr.msk.f32.mxu0 %vm223_vm0, %v34_v24  ;;  %v98_v24 = vld [vmem:[%s10546_s0 + $0x2a0] sm:$0xff] }
  0x32   :  { %5805 = vmatmul.mubr.msk.f32.gmra.mxu0 %vm223_vm0, %v35_v25  ;;  %v99_v25 = vld [vmem:[%s10546_s0 + $0x2a8] sm:$0xff] }
  0x33   :  { %5807 = vmatprep.mubr.msk.f32.mxu0 %vm223_vm0, %v36_v26  ;;  %v100_v26 = vld [vmem:[%s10546_s0 + $0x2b0] sm:$0xff] }
  0x36   :  { %5808 = vmatmul.mubr.msk.f32.gmra.mxu0 %vm223_vm0, %v37_v27  ;;  %v101_v27 = vld [vmem:[%s10546_s0 + $0x2b8] sm:$0xff] }
  0x37   :  { %5810 = vmatprep.mubr.msk.f32.mxu0 %vm223_vm0, %v38_v28  ;;  %v102_v28 = vld [vmem:[%s10546_s0 + $0x2c0] sm:$0xff] }
  0x3a   :  { %5811 = vmatmul.mubr.msk.f32.gmra.mxu0 %vm223_vm0, %v39_v29  ;;  %v103_v29 = vld [vmem:[%s10546_s0 + $0x2c8] sm:$0xff] }
  0x3b   :  { %5813 = vmatprep.mubr.msk.f32.mxu0 %vm223_vm0, %v40_v30  ;;  %v104_v30 = vld [vmem:[%s10546_s0 + $0x2d0] sm:$0xff] }
  0x3e   :  { %5814 = vmatmul.mubr.msk.f32.gmra.mxu0 %vm223_vm0, %v41_v31  ;;  %v105_v31 = vld [vmem:[%s10546_s0 + $0x2d8] sm:$0xff] }
  0x3f   :  { %5816 = vmatprep.mubr.msk.f32.mxu0 %vm223_vm0, %v42_v32  ;;  %v106_v32 = vld [vmem:[%s10546_s0 + $0x2e0] sm:$0xff] }
  0x42   :  { %5817 = vmatmul.mubr.msk.f32.gmra.mxu0 %vm223_vm0, %v43_v33  ;;  %v107_v33 = vld [vmem:[%s10546_s0 + $0x2e8] sm:$0xff] }
  0x43   :  { %5819 = vmatprep.mubr.msk.f32.mxu0 %vm223_vm0, %v44_v34  ;;  %v108_v34 = vld [vmem:[%s10546_s0 + $0x2f0] sm:$0xff] }
  0x46   :  { %5820 = vmatmul.mubr.msk.f32.gmra.mxu0 %vm223_vm0, %v45_v35  ;;  %v109_v35 = vld [vmem:[%s10546_s0 + $0x2f8] sm:$0xff] }
  0x47   :  { %5822 = vmatprep.mubr.msk.f32.mxu0 %vm223_vm0, %v46_v36  ;;  %v110_v36 = vld [vmem:[%s10546_s0 + $0x300] sm:$0xff] }
  0x4a   :  { %5823 = vmatmul.mubr.msk.f32.gmra.mxu0 %vm223_vm0, %v47_v37  ;;  %v111_v37 = vld [vmem:[%s10546_s0 + $0x308] sm:$0xff] }
  0x4b   :  { %5825 = vmatprep.mubr.msk.f32.mxu0 %vm223_vm0, %v48_v38  ;;  %v112_v38 = vld [vmem:[%s10546_s0 + $0x310] sm:$0xff] }
  0x4e   :  { %5826 = vmatmul.mubr.msk.f32.gmra.mxu0 %vm223_vm0, %v49_v39 }
  0x4f   :  { %5828 = vmatprep.mubr.msk.f32.mxu0 %vm223_vm0, %v50_v40  ;;  %v113_v40 = vld [vmem:[%s10546_s0 + $0x318] sm:$0xff] }
  0x52   :  { %5829 = vmatmul.mubr.msk.f32.gmra.mxu0 %vm223_vm0, %v51_v41 }
  0x53   :  { %5831 = vmatprep.mubr.msk.f32.mxu0 %vm223_vm0, %v52_v42  ;;  %v114_v42 = vld [vmem:[%s10546_s0 + $0x320] sm:$0xff] }
  0x56   :  { %5832 = vmatmul.mubr.msk.f32.gmra.mxu0 %vm223_vm0, %v53_v43 }
  0x57   :  { %5834 = vmatprep.mubr.msk.f32.mxu0 %vm223_vm0, %v54_v44  ;;  %v115_v44 = vld [vmem:[%s10546_s0 + $0x328] sm:$0xff] }
  0x5a   :  { %5835 = vmatmul.mubr.msk.f32.gmra.mxu0 %vm223_vm0, %v55_v45 }
  0x5b   :  { %5837 = vmatprep.mubr.msk.f32.mxu0 %vm223_vm0, %v56_v46  ;;  %v116_v46 = vld [vmem:[%s10546_s0 + $0x330] sm:$0xff] }
  0x5e   :  { %5838 = vmatmul.mubr.msk.f32.gmra.mxu0 %vm223_vm0, %v57_v47 }
  0x5f   :  { %5840 = vmatprep.mubr.msk.f32.mxu0 %vm223_vm0, %v58_v48  ;;  %v117_v48 = vld [vmem:[%s10546_s0 + $0x338] sm:$0xff] }
  0x62   :  { %5841 = vmatmul.mubr.msk.f32.gmra.mxu0 %vm223_vm0, %v59_v49 }
  0x63   :  { %5843 = vmatprep.mubr.msk.f32.mxu0 %vm223_vm0, %v60_v50  ;;  %v118_v50 = vld [vmem:[%s10546_s0 + $0x340] sm:$0xff] }
  0x66   :  { %5844 = vmatmul.mubr.msk.f32.gmra.mxu0 %vm223_vm0, %v61_v51 }
  0x67   :  { %5846 = vmatprep.mubr.msk.f32.mxu0 %vm223_vm0, %v62_v52  ;;  %v119_v52 = vld [vmem:[%s10546_s0 + $0x348] sm:$0xff] }
  0x6a   :  { %5847 = vmatmul.mubr.msk.f32.gmra.mxu0 %vm223_vm0, %v63_v53 }
  0x6b   :  { %5849 = vmatprep.mubr.msk.f32.mxu0 %vm223_vm0, %v64_v54  ;;  %v120_v54 = vld [vmem:[%s10546_s0 + $0x350] sm:$0xff] }
  0x6e   :  { %5850 = vmatmul.mubr.msk.f32.gmra.mxu0 %vm223_vm0, %v65_v55 }
  0x6f   :  { %5852 = vmatprep.mubr.msk.f32.mxu0 %vm223_vm0, %v66_v56  ;;  %v121_v56 = vld [vmem:[%s10546_s0 + $0x358] sm:$0xff] }
  0x72   :  { %5853 = vmatmul.mubr.msk.f32.gmra.mxu0 %vm223_vm0, %v67_v57 }
  0x73   :  { %5855 = vmatprep.mubr.msk.f32.mxu0 %vm223_vm0, %v68_v58  ;;  %v122_v58 = vld [vmem:[%s10546_s0 + $0x360] sm:$0xff] }
  0x76   :  { %5856 = vmatmul.mubr.msk.f32.gmra.mxu0 %vm223_vm0, %v69_v59 }
  0x77   :  { %5858 = vmatprep.mubr.msk.f32.mxu0 %vm223_vm0, %v70_v60  ;;  %v123_v60 = vld [vmem:[%s10546_s0 + $0x368] sm:$0xff] }
  0x7a   :  { %5859 = vmatmul.mubr.msk.f32.gmra.mxu0 %vm223_vm0, %v71_v61 }
  0x7b   :  { %5861 = vmatprep.mubr.msk.f32.mxu0 %vm223_vm0, %v72_v62  ;;  %v124_v62 = vld [vmem:[%s10546_s0 + $0x370] sm:$0xff] }
  0x7e   :  { %5862 = vmatmul.mubr.msk.f32.gmra.mxu0 %vm223_vm0, %v73_v63 }
  0x7f   :  { %5864 = vmatprep.mubr.msk.f32.mxu0 %vm223_vm0, %v74_v0  ;;  %v125_v0 = vld [vmem:[%s10546_s0 + $0x378] sm:$0xff] }
  0x82   :  { %5865 = vmatmul.mubr.msk.f32.gmra.mxu0 %vm223_vm0, %v75_v1 }
  0x83   :  { %5867 = vmatprep.mubr.msk.f32.mxu0 %vm223_vm0, %v76_v2  ;;  %v126_v2 = vld [vmem:[%s10546_s0 + $0x380] sm:$0xff] }
  0x86   :  { %5868 = vmatmul.mubr.msk.f32.gmra.mxu0 %vm223_vm0, %v77_v3 }
  0x87   :  { %5870 = vmatprep.mubr.msk.f32.mxu0 %vm223_vm0, %v78_v4  ;;  %v127_v4 = vld [vmem:[%s10546_s0 + $0x388] sm:$0xff] }
  0x8a   :  { %5871 = vmatmul.mubr.msk.f32.gmra.mxu0 %vm223_vm0, %v79_v5 }
  0x8b   :  { %5873 = vmatprep.mubr.msk.f32.mxu0 %vm223_vm0, %v80_v6  ;;  %v128_v6 = vld [vmem:[%s10546_s0 + $0x390] sm:$0xff] }
  0x8e   :  { %5874 = vmatmul.mubr.msk.f32.gmra.mxu0 %vm223_vm0, %v81_v7 }
  0x8f   :  { %5876 = vmatprep.mubr.msk.f32.mxu0 %vm223_vm0, %v82_v8  ;;  %v129_v8 = vld [vmem:[%s10546_s0 + $0x398] sm:$0xff] }
  0x92   :  { %5877 = vmatmul.mubr.msk.f32.gmra.mxu0 %vm223_vm0, %v83_v9 }
  0x93   :  { %5879 = vmatprep.mubr.msk.f32.mxu0 %vm223_vm0, %v84_v10  ;;  %v130_v10 = vld [vmem:[%s10546_s0 + $0x3a0] sm:$0xff] }
  0x96   :  { %5880 = vmatmul.mubr.msk.f32.gmra.mxu0 %vm223_vm0, %v85_v11 }
  0x97   :  { %5882 = vmatprep.mubr.msk.f32.mxu0 %vm223_vm0, %v86_v12  ;;  %v131_v12 = vld [vmem:[%s10546_s0 + $0x3a8] sm:$0xff] }
  0x9a   :  { %5883 = vmatmul.mubr.msk.f32.gmra.mxu0 %vm223_vm0, %v87_v13 }
  0x9b   :  { %5885 = vmatprep.mubr.msk.f32.mxu0 %vm223_vm0, %v88_v14  ;;  %v132_v14 = vld [vmem:[%s10546_s0 + $0x3b0] sm:$0xff] }
  0x9e   :  { %5886 = vmatmul.mubr.msk.f32.gmra.mxu0 %vm223_vm0, %v89_v15 }
  0x9f   :  { %5888 = vmatprep.mubr.msk.f32.mxu0 %vm223_vm0, %v90_v16  ;;  %v133_v16 = vld [vmem:[%s10546_s0 + $0x3b8] sm:$0xff] }
  0xa2   :  { %5889 = vmatmul.mubr.msk.f32.gmra.mxu0 %vm223_vm0, %v91_v17 }
  0xa3   :  { %5891 = vmatprep.mubr.msk.f32.mxu0 %vm223_vm0, %v92_v18  ;;  %v134_v18 = vld [vmem:[%s10546_s0 + $0x3c0] sm:$0xff] }
  0xa6   :  { %5892 = vmatmul.mubr.msk.f32.gmra.mxu0 %vm223_vm0, %v93_v19 }
  0xa7   :  { %5894 = vmatprep.mubr.msk.f32.mxu0 %vm223_vm0, %v94_v20  ;;  %v135_v20 = vld [vmem:[%s10546_s0 + $0x3c8] sm:$0xff] }
  0xaa   :  { %5895 = vmatmul.mubr.msk.f32.gmra.mxu0 %vm223_vm0, %v95_v21 }
  0xab   :  { %5897 = vmatprep.mubr.msk.f32.mxu0 %vm223_vm0, %v96_v22  ;;  %v136_v22 = vld [vmem:[%s10546_s0 + $0x3d0] sm:$0xff] }
  0xae   :  { %5898 = vmatmul.mubr.msk.f32.gmra.mxu0 %vm223_vm0, %v97_v23 }
  0xaf   :  { %5900 = vmatprep.mubr.msk.f32.mxu0 %vm223_vm0, %v98_v24  ;;  %v137_v24 = vld [vmem:[%s10546_s0 + $0x3d8] sm:$0xff] }
  0xb2   :  { %5901 = vmatmul.mubr.msk.f32.gmra.mxu0 %vm223_vm0, %v99_v25 }
  0xb3   :  { %5903 = vmatprep.mubr.msk.f32.mxu0 %vm223_vm0, %v100_v26  ;;  %v138_v26 = vld [vmem:[%s10546_s0 + $0x3e0] sm:$0xff] }
  0xb6   :  { %5904 = vmatmul.mubr.msk.f32.gmra.mxu0 %vm223_vm0, %v101_v27 }
  0xb7   :  { %5906 = vmatprep.mubr.msk.f32.mxu0 %vm223_vm0, %v102_v28  ;;  %v139_v28 = vld [vmem:[%s10546_s0 + $0x3e8] sm:$0xff] }
  0xba   :  { %5907 = vmatmul.mubr.msk.f32.gmra.mxu0 %vm223_vm0, %v103_v29 }
  0xbb   :  { %5909 = vmatprep.mubr.msk.f32.mxu0 %vm223_vm0, %v104_v30  ;;  %v140_v30 = vld [vmem:[%s10546_s0 + $0x3f0] sm:$0xff] }
  0xbe   :  { %5910 = vmatmul.mubr.msk.f32.gmra.mxu0 %vm223_vm0, %v105_v31 }
  0xbf   :  { %5912 = vmatprep.mubr.msk.f32.mxu0 %vm223_vm0, %v106_v32  ;;  %v141_v32 = vld [vmem:[%s10546_s0 + $0x3f8] sm:$0xff] }
  0xc2   :  { %5913 = vmatmul.mubr.msk.f32.gmra.mxu0 %vm223_vm0, %v107_v33 }
  0xc3   :  { %5915 = vmatprep.mubr.msk.f32.mxu0 %vm223_vm0, %v108_v34  ;;  %v142_v34 = vld [vmem:[%s10546_s0 + $0x400] sm:$0xff] }
  0xc6   :  { %5916 = vmatmul.mubr.msk.f32.gmra.mxu0 %vm223_vm0, %v109_v35 }
  0xc7   :  { %5918 = vmatprep.mubr.msk.f32.mxu0 %vm223_vm0, %v110_v36  ;;  %v143_v36 = vld [vmem:[%s10546_s0 + $0x408] sm:$0xff] }
  0xca   :  { %v7046_v39 = vpop.f32.mrf.mxu0  ;;  %5919 = vmatmul.mubr.msk.f32.gmra.mxu0 %vm223_vm0, %v111_v37 }
  0xcb   :  { %5921 = vmatprep.mubr.msk.f32.mxu0 %vm223_vm0, %v112_v38  ;;  %v144_v38 = vld [vmem:[%s10546_s0 + $0x410] sm:$0xff] }
  0xcc   :  { %v7053_v41 = vpop.f32.mrf.mxu0 }
  0xce   :  { %v7058_v43 = vpop.f32.mrf.mxu0  ;;  %5922 = vmatmul.mubr.msk.f32.gmra.mxu0 %vm223_vm0, %v113_v40 }
  0xcf   :  { %5924 = vmatprep.mubr.msk.f32.mxu0 %vm223_vm0, %v114_v42  ;;  %v145_v42 = vld [vmem:[%s10546_s0 + $0x418] sm:$0xff] }
  0xd0   :  { %v7065_v45 = vpop.f32.mrf.mxu0 }
  0xd2   :  { %v7070_v47 = vpop.f32.mrf.mxu0  ;;  %5925 = vmatmul.mubr.msk.f32.gmra.mxu0 %vm223_vm0, %v115_v44 }
  0xd3   :  { %5927 = vmatprep.mubr.msk.f32.mxu0 %vm223_vm0, %v116_v46  ;;  %v146_v46 = vld [vmem:[%s10546_s0 + $0x420] sm:$0xff] }
  0xd4   :  { %v7077_v49 = vpop.f32.mrf.mxu0 }
  0xd6   :  { %v7082_v51 = vpop.f32.mrf.mxu0  ;;  %5928 = vmatmul.mubr.msk.f32.gmra.mxu0 %vm223_vm0, %v117_v48 }
  0xd7   :  { %5930 = vmatprep.mubr.msk.f32.mxu0 %vm223_vm0, %v118_v50  ;;  %v147_v50 = vld [vmem:[%s10546_s0 + $0x428] sm:$0xff] }
  0xd8   :  { %v7089_v53 = vpop.f32.mrf.mxu0 }
  0xda   :  { %v7094_v55 = vpop.f32.mrf.mxu0  ;;  %5931 = vmatmul.mubr.msk.f32.gmra.mxu0 %vm223_vm0, %v119_v52 }
  0xdb   :  { %5933 = vmatprep.mubr.msk.f32.mxu0 %vm223_vm0, %v120_v54  ;;  %v148_v54 = vld [vmem:[%s10546_s0 + $0x430] sm:$0xff] }
  0xdc   :  { %v7101_v57 = vpop.f32.mrf.mxu0 }
  0xde   :  { %v7106_v59 = vpop.f32.mrf.mxu0  ;;  %5934 = vmatmul.mubr.msk.f32.gmra.mxu0 %vm223_vm0, %v121_v56 }
  0xdf   :  { %5936 = vmatprep.mubr.msk.f32.mxu0 %vm223_vm0, %v122_v58  ;;  %v149_v58 = vld [vmem:[%s10546_s0 + $0x438] sm:$0xff] }
  0xe0   :  { %v7113_v61 = vpop.f32.mrf.mxu0 }
  0xe2   :  { %v7118_v63 = vpop.f32.mrf.mxu0  ;;  %5937 = vmatmul.mubr.msk.f32.gmra.mxu0 %vm223_vm0, %v123_v60 }
  0xe3   :  { %5939 = vmatprep.mubr.msk.f32.mxu0 %vm223_vm0, %v124_v62  ;;  %v150_v62 = vld [vmem:[%s10546_s0 + $0x440] sm:$0xff] }
  0xe4   :  { %v7125_v1 = vpop.f32.mrf.mxu0 }
  0xe6   :  { %v7130_v3 = vpop.f32.mrf.mxu0  ;;  %5940 = vmatmul.mubr.msk.f32.gmra.mxu0 %vm223_vm0, %v125_v0 }
  0xe7   :  { %5942 = vmatprep.mubr.msk.f32.mxu0 %vm223_vm0, %v126_v2  ;;  %v151_v2 = vld [vmem:[%s10546_s0 + $0x448] sm:$0xff] }
  0xe8   :  { %v7137_v5 = vpop.f32.mrf.mxu0 }
  0xea   :  { %v7142_v7 = vpop.f32.mrf.mxu0  ;;  %5943 = vmatmul.mubr.msk.f32.gmra.mxu0 %vm223_vm0, %v127_v4 }
  0xeb   :  { %5945 = vmatprep.mubr.msk.f32.mxu0 %vm223_vm0, %v128_v6  ;;  %v152_v6 = vld [vmem:[%s10546_s0 + $0x450] sm:$0xff] }
  0xec   :  { %v7149_v9 = vpop.f32.mrf.mxu0 }
  0xee   :  { %v7154_v11 = vpop.f32.mrf.mxu0  ;;  %5946 = vmatmul.mubr.msk.f32.gmra.mxu0 %vm223_vm0, %v129_v8 }
  0xef   :  { %5948 = vmatprep.mubr.msk.f32.mxu0 %vm223_vm0, %v130_v10  ;;  %v153_v10 = vld [vmem:[%s10546_s0 + $0x458] sm:$0xff] }
  0xf0   :  { %v7161_v13 = vpop.f32.mrf.mxu0 }
  0xf2   :  { %v7166_v15 = vpop.f32.mrf.mxu0  ;;  %5949 = vmatmul.mubr.msk.f32.gmra.mxu0 %vm223_vm0, %v131_v12 }
  0xf3   :  { %5951 = vmatprep.mubr.msk.f32.mxu0 %vm223_vm0, %v132_v14  ;;  %v154_v14 = vld [vmem:[%s10546_s0 + $0x460] sm:$0xff] }
  0xf4   :  { %v7173_v17 = vpop.f32.mrf.mxu0 }
  0xf6   :  { %v7178_v19 = vpop.f32.mrf.mxu0  ;;  %5952 = vmatmul.mubr.msk.f32.gmra.mxu0 %vm223_vm0, %v133_v16 }
  0xf7   :  { %5954 = vmatprep.mubr.msk.f32.mxu0 %vm223_vm0, %v134_v18  ;;  %v155_v18 = vld [vmem:[%s10546_s0 + $0x468] sm:$0xff] }
  0xf8   :  { %v7185_v21 = vpop.f32.mrf.mxu0 }
  0xfa   :  { %v7190_v23 = vpop.f32.mrf.mxu0  ;;  %5955 = vmatmul.mubr.msk.f32.gmra.mxu0 %vm223_vm0, %v135_v20 }
  0xfb   :  { %5957 = vmatprep.mubr.msk.f32.mxu0 %vm223_vm0, %v136_v22  ;;  %v156_v22 = vld [vmem:[%s10546_s0 + $0x470] sm:$0xff] }
  0xfc   :  { %v7197_v25 = vpop.f32.mrf.mxu0 }
  0xfe   :  { %v7202_v27 = vpop.f32.mrf.mxu0  ;;  %5958 = vmatmul.mubr.msk.f32.gmra.mxu0 %vm223_vm0, %v137_v24 }
  0xff   :  { %5960 = vmatprep.mubr.msk.f32.mxu0 %vm223_vm0, %v138_v26  ;;  %v157_v26 = vld [vmem:[%s10546_s0 + $0x478] sm:$0xff] }
 0x100   :  { %v7209_v29 = vpop.f32.mrf.mxu0 }
 0x102   :  { %v7214_v31 = vpop.f32.mrf.mxu0  ;;  %5961 = vmatmul.mubr.msk.f32.gmra.mxu0 %vm223_vm0, %v139_v28 }
 0x103   :  { %5963 = vmatprep.mubr.msk.f32.mxu0 %vm223_vm0, %v140_v30  ;;  %v158_v30 = vld [vmem:[%s10546_s0 + $0x480] sm:$0xff] }
 0x104   :  { %v7221_v33 = vpop.f32.mrf.mxu0 }
 0x106   :  { %v7226_v35 = vpop.f32.mrf.mxu0  ;;  %5964 = vmatmul.mubr.msk.f32.gmra.mxu0 %vm223_vm0, %v141_v32 }
 0x107   :  { %5966 = vmatprep.mubr.msk.f32.mxu0 %vm223_vm0, %v142_v34  ;;  %v159_v34 = vld [vmem:[%s10546_s0 + $0x488] sm:$0xff] }
 0x108   :  { %v7233_v37 = vpop.f32.mrf.mxu0 }
 0x10a   :  { %v7238_v40 = vpop.f32.mrf.mxu0  ;;  %5967 = vmatmul.mubr.msk.f32.gmra.mxu0 %vm223_vm0, %v143_v36 }
 0x10b   :  { %5969 = vmatprep.mubr.msk.f32.mxu0 %vm223_vm0, %v144_v38  ;;  %v160_v38 = vld [vmem:[%s10546_s0 + $0x490] sm:$0xff] }
 0x10c   :  { %v7245_v44 = vpop.f32.mrf.mxu0 }
 0x10e   :  { %v7250_v48 = vpop.f32.mrf.mxu0  ;;  %5970 = vmatmul.mubr.msk.f32.gmra.mxu0 %vm223_vm0, %v145_v42 }
 0x10f   :  { %5972 = vmatprep.mubr.msk.f32.mxu0 %vm223_vm0, %v146_v46  ;;  %v7340_v46 = vld [vmem:[%s10545_s1 + $0x20] ss:$0 sm:$0xff] }
 0x110   :  { %v7257_v52 = vpop.f32.mrf.mxu0 }
 0x112   :  { %v7262_v56 = vpop.f32.mrf.mxu0  ;;  %5973 = vmatmul.mubr.msk.f32.gmra.mxu0 %vm223_vm0, %v147_v50  ;;  %v161_v50 = vld [vmem:[%s10546_s0 + $0x498] sm:$0xff] }
 0x113   :  { %5975 = vmatprep.mubr.msk.f32.mxu0 %vm223_vm0, %v148_v54 }
 0x114   :  { %v7269_v60 = vpop.f32.mrf.mxu0 }
 0x116   :  { %v7274_v0 = vpop.f32.mrf.mxu0  ;;  %5976 = vmatmul.mubr.msk.f32.gmra.mxu0 %vm223_vm0, %v149_v58  ;;  %v162_v58 = vld [vmem:[%s10546_s0 + $0x4a0] sm:$0xff] }
 0x117   :  { %5978 = vmatprep.mubr.msk.f32.mxu0 %vm223_vm0, %v150_v62  ;;  %v2529_v62 = vld [vmem:[%s10547_s2 + $0x460] sm:$0xff] }
 0x118   :  { %v7281_v4 = vpop.f32.mrf.mxu0  ;;  %3135 = vmatprep.subr.mxu0 %v2529_v62 }
 0x119   :  { %10631 = vst [vmem:[#allocation2_spill] sm:$0xff] %v7281_v4 }
 0x11a   :  { %v7286_v8 = vpop.f32.mrf.mxu0  ;;  %5979 = vmatmul.mubr.msk.f32.gmra.mxu0 %vm223_vm0, %v151_v2  ;;  %v2528_v2 = vld [vmem:[%s10547_s2 + $0x458] sm:$0xff] }
 0x11b   :  { %5981 = vmatprep.mubr.msk.f32.mxu0 %vm223_vm0, %v152_v6  ;;  %3136 = vmatpush1.msra.mxu0 %v2528_v2 }
 0x11c   :  { %v7293_v12 = vpop.f32.mrf.mxu0 }
 0x11d   :  { %10632 = vst [vmem:[#allocation3_spill] sm:$0xff] %v7293_v12 }
 0x11e   :  { %v7298_v16 = vpop.f32.mrf.mxu0  ;;  %5982 = vmatmul.mubr.msk.f32.gmra.mxu0 %vm223_vm0, %v153_v10  ;;  %v7360_v10 = vadd.f32 %v7046_v39, %v7340_v46 }
 0x11f   :  { %5984 = vmatprep.mubr.msk.f32.mxu0 %vm223_vm0, %v154_v14 }
 0x120   :  { %v7305_v20 = vpop.f32.mrf.mxu0 }
 0x121   :  { %10633 = vst [vmem:[#allocation4_spill] sm:$0xff] %v7305_v20 }
 0x122   :  { %v7310_v24 = vpop.f32.mrf.mxu0  ;;  %5985 = vmatmul.mubr.msk.f32.gmra.mxu0 %vm223_vm0, %v155_v18  ;;  %v163_v18 = vld [vmem:[%s10546_s0 + $0x4a8] sm:$0xff] }
 0x123   :  { %5987 = vmatprep.mubr.msk.f32.mxu0 %vm223_vm0, %v156_v22 }
 0x124   :  { %v7317_v28 = vpop.f32.mrf.mxu0 }
 0x125   :  { %10634 = vst [vmem:[#allocation5_spill] sm:$0xff] %v7317_v28  ;;  %v2519_v28 = vld [vmem:[%s10547_s2 + $0x410] sm:$0xff] }
 0x126   :  { %v7322_v32 = vpop.f32.mrf.mxu0  ;;  %5988 = vmatmul.mubr.msk.f32.gmra.mxu0 %vm223_vm0, %v157_v26  ;;  %v164_v26 = vld [vmem:[%s10546_s0 + $0x4b0] sm:$0xff] }
 0x127   :  { %5990 = vmatprep.mubr.msk.f32.mxu0 %vm223_vm0, %v158_v30  ;;  %v7374_v30 = vadd.f32 %v7340_v46, %v7053_v41  ;;  %v165_v41 = vld [vmem:[%s10546_s0 + $0x4b8] sm:$0xff] }
 0x128   :  { %v7329_v36 = vpop.f32.mrf.mxu0 }
 0x129   :  { %10635 = vst [vmem:[#allocation6_spill] sm:$0xff] %v7329_v36 }
 0x12a   :  { %v7334_v42 = vpop.f32.mrf.mxu0  ;;  %5991 = vmatmul.mubr.msk.f32.gmra.mxu0 %vm223_vm0, %v159_v34 }
 0x12b   :  { %5993 = vmatprep.mubr.msk.f32.mxu0 %vm223_vm0, %v160_v38 }
 0x12c   :  { %v7346_v54 = vpop.f32.mrf.mxu0 }
 0x12d   :  { %10636 = vst [vmem:[#allocation7_spill] sm:$0xff] %v7346_v54  ;;  %v7488_v54 = vadd.f32 %v7106_v59, %v7340_v46  ;;  %v174_v59 = vld [vmem:[%s10546_s0 + $0x500] sm:$0xff] }
 0x12e   :  { %v5851_v6 = vpop.f32.mrf.mxu0  ;;  %5994 = vmatmul.mubr.msk.f32.gmra.mxu0 %vm223_vm0, %v161_v50  ;;  %v7384_v50 = vadd.f32 %v7058_v43, %v7340_v46  ;;  %v7400_v43 = vadd.f32 %v7340_v46, %v7065_v45  ;;  %v167_v45 = vld [vmem:[%s10546_s0 + $0x4c8] sm:$0xff] }
 0x12f   :  { %v7363_v14 = vadd.f32 %v5851_v6, %v7340_v46  ;;  %5996 = vmatprep.mubr.msk.f32.mxu0 %vm223_vm0, %v162_v58  ;;  %v166_v6 = vld [vmem:[%s10546_s0 + $0x4c0] sm:$0xff]  ;;  %v7462_v58 = vadd.f32 %v7094_v55, %v7340_v46  ;;  %v7478_v55 = vadd.f32 %v7340_v46, %v7101_v57  ;;  %v173_v57 = vld [vmem:[%s10546_s0 + $0x4f8] sm:$0xff] }
 0x130   :  { %v1140_v22 = vpop.f32.mrf.mxu0 }
 0x131   :  { %v7379_v34 = vadd.f32 %v7340_v46, %v1140_v22  ;;  %10637 = vst [vmem:[#allocation8_spill] sm:$0xff] %v7478_v55 }
 0x132   :  { %v5854_v38 = vpop.f32.mrf.mxu0  ;;  %5997 = vmatmul.mubr.msk.f32.gmra.mxu0 %vm223_vm0, %v163_v18  ;;  %v7436_v18 = vadd.f32 %v7082_v51, %v7340_v46  ;;  %v7452_v51 = vadd.f32 %v7340_v46, %v7089_v53  ;;  %v171_v53 = vld [vmem:[%s10546_s0 + $0x4e8] sm:$0xff] }
 0x133   :  { %v7389_v62 = vadd.f32 %v5854_v38, %v7340_v46  ;;  %5999 = vmatprep.mubr.msk.f32.mxu0 %vm223_vm0, %v164_v26  ;;  %v7410_v38 = vadd.f32 %v7070_v47, %v7340_v46  ;;  %v7426_v47 = vadd.f32 %v7340_v46, %v7077_v49  ;;  %v169_v49 = vld [vmem:[%s10546_s0 + $0x4d8] sm:$0xff] }
 0x134   :  { %v1150_v2 = vpop.f32.mrf.mxu0 }
 0x135   :  { %v7405_v22 = vadd.f32 %v7340_v46, %v1150_v2 }
 0x136   :  { %v5857_v26 = vpop.f32.mrf.mxu0  ;;  %6000 = vmatmul.mubr.msk.f32.gmra.mxu0 %vm223_vm0, %v165_v41  ;;  %v168_v41 = vld [vmem:[%s10546_s0 + $0x4d0] sm:$0xff] }
 0x137   :  { %v7415_v39 = vadd.f32 %v5857_v26, %v7340_v46  ;;  %6002 = vmatprep.mubr.msk.f32.mxu0 %vm223_vm0, %v166_v6 }
 0x138   :  { %v1160_v2 = vpop.f32.mrf.mxu0 }
 0x139   :  { %v7431_v26 = vadd.f32 %v7340_v46, %v1160_v2 }
 0x13a   :  { %v5860_v6 = vpop.f32.mrf.mxu0  ;;  %6003 = vmatmul.mubr.msk.f32.gmra.mxu0 %vm223_vm0, %v167_v45  ;;  %v170_v45 = vld [vmem:[%s10546_s0 + $0x4e0] sm:$0xff] }
 0x13b   :  { %v7441_v36 = vadd.f32 %v5860_v6, %v7340_v46  ;;  %6005 = vmatprep.mubr.msk.f32.mxu0 %vm223_vm0, %v168_v41 }
 0x13c   :  { %v1170_v2 = vpop.f32.mrf.mxu0 }
 0x13d   :  { %v7457_v6 = vadd.f32 %v7340_v46, %v1170_v2 }
 0x13e   :  { %v5863_v41 = vpop.f32.mrf.mxu0  ;;  %6006 = vmatmul.mubr.msk.f32.gmra.mxu0 %vm223_vm0, %v169_v49  ;;  %v172_v49 = vld [vmem:[%s10546_s0 + $0x4f0] sm:$0xff] }
 0x13f   :  { %v7467_v20 = vadd.f32 %v5863_v41, %v7340_v46  ;;  %6008 = vmatprep.mubr.msk.f32.mxu0 %vm223_vm0, %v170_v45 }
 0x140   :  { %v1180_v2 = vpop.f32.mrf.mxu0 }
 0x141   :  { %v7483_v41 = vadd.f32 %v7340_v46, %v1180_v2 }
 0x142   :  { %v5866_v45 = vpop.f32.mrf.mxu0  ;;  %6009 = vmatmul.mubr.msk.f32.gmra.mxu0 %vm223_vm0, %v171_v53  ;;  %v2520_v53 = vld [vmem:[%s10547_s2 + $0x418] sm:$0xff] }
 0x143   :  { %10638 = vst [vmem:[#allocation9_spill] sm:$0xff] %v7483_v41  ;;  %v7493_v4 = vadd.f32 %v5866_v45, %v7340_v46  ;;  %6011 = vmatprep.mubr.msk.f32.mxu0 %vm223_vm0, %v172_v49  ;;  %3137 = vmatprep.subr.mxu0 %v2520_v53  ;;  %v7507_v45 = vadd.f32 %v7340_v46, %v7113_v61 }
 0x144   :  { %v1190_v2 = vpop.f32.mrf.mxu0  ;;  %v7520_v53 = vadd.f32 %v7118_v63, %v7340_v46  ;;  %3138 = vmatpush1.msra.mxu0 %v2519_v28  ;;  %v7536_v63 = vadd.f32 %v7340_v46, %v7125_v1  ;;  %v7546_v28 = vadd.f32 %v7130_v3, %v7340_v46  ;;  %v177_v1 = vld [vmem:[%s10546_s0 + $0x518] sm:$0xff]  ;;  %v7562_v3 = vadd.f32 %v7340_v46, %v7137_v5  ;;  %v179_v5 = vld [vmem:[%s10546_s0 + $0x528] sm:$0xff] }
 0x145   :  { %10639 = vst [vmem:[#allocation10_spill] sm:$0xff] %v7507_v45  ;;  %v7512_v12 = vadd.f32 %v7340_v46, %v1190_v2  ;;  %v175_v2 = vld [vmem:[%s10546_s0 + $0x508] sm:$0xff] }
 0x146   :  { %v5869_v41 = vpop.f32.mrf.mxu0  ;;  %6012 = vmatmul.mubr.msk.f32.gmra.mxu0 %vm223_vm0, %v173_v57  ;;  %v176_v57 = vld [vmem:[%s10546_s0 + $0x510] sm:$0xff]  ;;  %10641 = vst [vmem:[#allocation12_spill] sm:$0xff] %v7536_v63  ;;  %10643 = vst [vmem:[#allocation14_spill] sm:$0xff] %v7562_v3 }
 0x147   :  { %10640 = vst [vmem:[#allocation11_spill] sm:$0xff] %v7512_v12  ;;  %v7525_v55 = vadd.f32 %v5869_v41, %v7340_v46  ;;  %6014 = vmatprep.mubr.msk.f32.mxu0 %vm223_vm0, %v174_v59  ;;  %v7572_v41 = vadd.f32 %v7142_v7, %v7340_v46  ;;  %v7588_v7 = vadd.f32 %v7340_v46, %v7149_v9  ;;  %v181_v9 = vld [vmem:[%s10546_s0 + $0x538] sm:$0xff] }
 0x148   :  { %v1200_v49 = vpop.f32.mrf.mxu0  ;;  %v7598_v12 = vadd.f32 %v7154_v11, %v7340_v46  ;;  %v7614_v11 = vadd.f32 %v7340_v46, %v7161_v13  ;;  %v183_v13 = vld [vmem:[%s10546_s0 + $0x548] sm:$0xff] }
 0x149   :  { %v7541_v61 = vadd.f32 %v7340_v46, %v1200_v49  ;;  %10645 = vst [vmem:[#allocation16_spill] sm:$0xff] %v7588_v7 }
 0x14a   :  { %v5872_v59 = vpop.f32.mrf.mxu0  ;;  %6015 = vmatmul.mubr.msk.f32.gmra.mxu0 %vm223_vm0, %v175_v2  ;;  %v178_v2 = vld [vmem:[%s10546_s0 + $0x520] sm:$0xff]  ;;  %10647 = vst [vmem:[#allocation18_spill] sm:$0xff] %v7614_v11 }
 0x14b   :  { %10642 = vst [vmem:[#allocation13_spill] sm:$0xff] %v7541_v61  ;;  %v7551_v45 = vadd.f32 %v5872_v59, %v7340_v46  ;;  %6017 = vmatprep.mubr.msk.f32.mxu0 %vm223_vm0, %v176_v57  ;;  %v7624_v61 = vadd.f32 %v7166_v15, %v7340_v46  ;;  %v7640_v15 = vadd.f32 %v7340_v46, %v7173_v17  ;;  %v185_v17 = vld [vmem:[%s10546_s0 + $0x558] sm:$0xff] }
 0x14c   :  { %v1210_v49 = vpop.f32.mrf.mxu0 }
 0x14d   :  { %v7567_v59 = vadd.f32 %v7340_v46, %v1210_v49  ;;  %10650 = vst [vmem:[#allocation21_spill] sm:$0xff] %v7640_v15  ;;  %v187_v15 = vld [vmem:[%s10546_s0 + $0x568] sm:$0xff] }
 0x14e   :  { %v5875_v57 = vpop.f32.mrf.mxu0  ;;  %6018 = vmatmul.mubr.msk.f32.gmra.mxu0 %vm223_vm0, %v177_v1  ;;  %v180_v1 = vld [vmem:[%s10546_s0 + $0x530] sm:$0xff] }
 0x14f   :  { %10644 = vst [vmem:[#allocation15_spill] sm:$0xff] %v7567_v59  ;;  %v7577_v63 = vadd.f32 %v5875_v57, %v7340_v46  ;;  %6020 = vmatprep.mubr.msk.f32.mxu0 %vm223_vm0, %v178_v2  ;;  %v7650_v59 = vadd.f32 %v7178_v19, %v7340_v46  ;;  %v7666_v19 = vadd.f32 %v7340_v46, %v7185_v21 }
 0x150   :  { %v1220_v49 = vpop.f32.mrf.mxu0  ;;  %v7682_v21 = vadd.f32 %v7190_v23, %v7340_v46  ;;  %v7698_v23 = vadd.f32 %v7340_v46, %v7197_v25  ;;  %v189_v25 = vld [vmem:[%s10546_s0 + $0x578] sm:$0xff] }
 0x151   :  { %v7593_v57 = vadd.f32 %v7340_v46, %v1220_v49  ;;  %10652 = vst [vmem:[#allocation23_spill] sm:$0xff] %v7650_v59  ;;  %10654 = vst [vmem:[#allocation25_spill] sm:$0xff] %v7666_v19 }
 0x152   :  { %v5878_v2 = vpop.f32.mrf.mxu0  ;;  %6021 = vmatmul.mubr.msk.f32.gmra.mxu0 %vm223_vm0, %v179_v5  ;;  %v182_v5 = vld [vmem:[%s10546_s0 + $0x540] sm:$0xff]  ;;  %10656 = vst [vmem:[#allocation27_spill] sm:$0xff] %v7682_v21  ;;  %10658 = vst [vmem:[#allocation29_spill] sm:$0xff] %v7698_v23 }
 0x153   :  { %10646 = vst [vmem:[#allocation17_spill] sm:$0xff] %v7593_v57  ;;  %v7603_v3 = vadd.f32 %v5878_v2, %v7340_v46  ;;  %6023 = vmatprep.mubr.msk.f32.mxu0 %vm223_vm0, %v180_v1  ;;  %v2510_v57 = vld [vmem:[%s10547_s2 + $0x3c8] sm:$0xff] }
 0x154   :  { %v1230_v49 = vpop.f32.mrf.mxu0 }
 0x155   :  { %v7619_v2 = vadd.f32 %v7340_v46, %v1230_v49 }
 0x156   :  { %v5881_v1 = vpop.f32.mrf.mxu0  ;;  %6024 = vmatmul.mubr.msk.f32.gmra.mxu0 %vm223_vm0, %v181_v9  ;;  %v184_v9 = vld [vmem:[%s10546_s0 + $0x550] sm:$0xff] }
 0x157   :  { %10648 = vst [vmem:[#allocation19_spill] sm:$0xff] %v7619_v2  ;;  %v7629_v7 = vadd.f32 %v5881_v1, %v7340_v46  ;;  %6026 = vmatprep.mubr.msk.f32.mxu0 %vm223_vm0, %v182_v5 }
 0x158   :  { %v1240_v49 = vpop.f32.mrf.mxu0 }
 0x159   :  { %10649 = vst [vmem:[#allocation20_spill] sm:$0xff] %v7629_v7  ;;  %v7645_v1 = vadd.f32 %v7340_v46, %v1240_v49 }
 0x15a   :  { %v5884_v5 = vpop.f32.mrf.mxu0  ;;  %6027 = vmatmul.mubr.msk.f32.gmra.mxu0 %vm223_vm0, %v183_v13  ;;  %v186_v13 = vld [vmem:[%s10546_s0 + $0x560] sm:$0xff] }
 0x15b   :  { %10651 = vst [vmem:[#allocation22_spill] sm:$0xff] %v7645_v1  ;;  %v7655_v11 = vadd.f32 %v5884_v5, %v7340_v46  ;;  %6029 = vmatprep.mubr.msk.f32.mxu0 %vm223_vm0, %v184_v9  ;;  %v2511_v9 = vld [vmem:[%s10547_s2 + $0x3d0] sm:$0xff] }
 0x15c   :  { %v1250_v49 = vpop.f32.mrf.mxu0  ;;  %3139 = vmatprep.subr.mxu0 %v2511_v9 }
 0x15d   :  { %10653 = vst [vmem:[#allocation24_spill] sm:$0xff] %v7655_v11  ;;  %v7671_v5 = vadd.f32 %v7340_v46, %v1250_v49  ;;  %3140 = vmatpush1.msra.mxu0 %v2510_v57  ;;  %v7708_v57 = vadd.f32 %v7202_v27, %v7340_v46  ;;  %v7724_v27 = vadd.f32 %v7340_v46, %v7209_v29  ;;  %v191_v29 = vld [vmem:[%s10546_s0 + $0x588] sm:$0xff] }
 0x15e   :  { %v5887_v1 = vpop.f32.mrf.mxu0  ;;  %6030 = vmatmul.mubr.msk.f32.gmra.mxu0 %vm223_vm0, %v185_v17  ;;  %v188_v17 = vld [vmem:[%s10546_s0 + $0x570] sm:$0xff]  ;;  %v7760_v49 = vadd.f32 %v7226_v35, %v7340_v46  ;;  %v7776_v35 = vadd.f32 %v7340_v46, %v7233_v37  ;;  %v195_v37 = vld [vmem:[%s10546_s0 + $0x5a8] sm:$0xff] }
 0x15f   :  { %10655 = vst [vmem:[#allocation26_spill] sm:$0xff] %v7671_v5  ;;  %v7687_v2 = vadd.f32 %v5887_v1, %v7340_v46  ;;  %6032 = vmatprep.mubr.msk.f32.mxu0 %vm223_vm0, %v186_v13  ;;  %10660 = vst [vmem:[#allocation31_spill] sm:$0xff] %v7708_v57  ;;  %v7734_v1 = vadd.f32 %v7214_v31, %v7340_v46  ;;  %v7750_v31 = vadd.f32 %v7340_v46, %v7221_v33  ;;  %v193_v33 = vld [vmem:[%s10546_s0 + $0x598] sm:$0xff] }
 0x160   :  { %v1260_v11 = vpop.f32.mrf.mxu0  ;;  %10662 = vst [vmem:[#allocation33_spill] sm:$0xff] %v7724_v27  ;;  %10668 = vst [vmem:[#allocation39_spill] sm:$0xff] %v7760_v49 }
 0x161   :  { %10657 = vst [vmem:[#allocation28_spill] sm:$0xff] %v7687_v2  ;;  %v7703_v9 = vadd.f32 %v7340_v46, %v1260_v11  ;;  %10664 = vst [vmem:[#allocation35_spill] sm:$0xff] %v7734_v1 }
 0x162   :  { %v5890_v13 = vpop.f32.mrf.mxu0  ;;  %6033 = vmatmul.mubr.msk.f32.gmra.mxu0 %vm223_vm0, %v187_v15  ;;  %v190_v15 = vld [vmem:[%s10546_s0 + $0x580] sm:$0xff]  ;;  %10666 = vst [vmem:[#allocation37_spill] sm:$0xff] %v7750_v31  ;;  %10670 = vst [vmem:[#allocation41_spill] sm:$0xff] %v7776_v35 }
 0x163   :  { %10659 = vst [vmem:[#allocation30_spill] sm:$0xff] %v7703_v9  ;;  %v7713_v5 = vadd.f32 %v5890_v13, %v7340_v46  ;;  %6035 = vmatprep.mubr.msk.f32.mxu0 %vm223_vm0, %v188_v17  ;;  %v7786_v9 = vadd.f32 %v7238_v40, %v7340_v46  ;;  %v7802_v40 = vadd.f32 %v7340_v46, %v7245_v44  ;;  %v197_v44 = vld [vmem:[%s10546_s0 + $0x5b8] sm:$0xff] }
 0x164   :  { %v1270_v11 = vpop.f32.mrf.mxu0 }
 0x165   :  { %10661 = vst [vmem:[#allocation32_spill] sm:$0xff] %v7713_v5  ;;  %v7729_v13 = vadd.f32 %v7340_v46, %v1270_v11  ;;  %10672 = vst [vmem:[#allocation43_spill] sm:$0xff] %v7786_v9 }
 0x166   :  { %v5893_v17 = vpop.f32.mrf.mxu0  ;;  %6036 = vmatmul.mubr.msk.f32.gmra.mxu0 %vm223_vm0, %v189_v25  ;;  %v192_v25 = vld [vmem:[%s10546_s0 + $0x590] sm:$0xff]  ;;  %10674 = vst [vmem:[#allocation45_spill] sm:$0xff] %v7802_v40 }
 0x167   :  { %10663 = vst [vmem:[#allocation34_spill] sm:$0xff] %v7729_v13  ;;  %v7739_v23 = vadd.f32 %v5893_v17, %v7340_v46  ;;  %6038 = vmatprep.mubr.msk.f32.mxu0 %vm223_vm0, %v190_v15  ;;  %v7812_v13 = vadd.f32 %v7250_v48, %v7340_v46  ;;  %v7828_v48 = vadd.f32 %v7340_v46, %v7257_v52  ;;  %v2524_v52 = vld [vmem:[%s10547_s2 + $0x438] sm:$0xff] }
 0x168   :  { %v1280_v11 = vpop.f32.mrf.mxu0 }
 0x169   :  { %10665 = vst [vmem:[#allocation36_spill] sm:$0xff] %v7739_v23  ;;  %v7755_v17 = vadd.f32 %v7340_v46, %v1280_v11  ;;  %10676 = vst [vmem:[#allocation47_spill] sm:$0xff] %v7812_v13  ;;  %v2527_v13 = vld [vmem:[%s10547_s2 + $0x450] sm:$0xff] }
 0x16a   :  { %v5896_v15 = vpop.f32.mrf.mxu0  ;;  %6039 = vmatmul.mubr.msk.f32.gmra.mxu0 %vm223_vm0, %v191_v29  ;;  %v194_v29 = vld [vmem:[%s10546_s0 + $0x5a0] sm:$0xff]  ;;  %10678 = vst [vmem:[#allocation49_spill] sm:$0xff] %v7828_v48  ;;  %v7885_v48 = vadd.f32 %v7274_v0, %v7340_v46 }
 0x16b   :  { %10667 = vst [vmem:[#allocation38_spill] sm:$0xff] %v7755_v17  ;;  %v7765_v27 = vadd.f32 %v5896_v15, %v7340_v46  ;;  %6041 = vmatprep.mubr.msk.f32.mxu0 %vm223_vm0, %v192_v25  ;;  %v2502_v17 = vld [vmem:[%s10547_s2 + $0x388] sm:$0xff]  ;;  %v202_v0 = vld [vmem:[%s10546_s0 + $0x5e0] sm:$0xff] }
 0x16c   :  { %v1290_v11 = vpop.f32.mrf.mxu0  ;;  %3141 = vmatprep.subr.mxu0 %v2502_v17  ;;  %10684 = vst [vmem:[#allocation55_spill] sm:$0xff] %v7885_v48 }
 0x16d   :  { %10669 = vst [vmem:[#allocation40_spill] sm:$0xff] %v7765_v27  ;;  %v7781_v15 = vadd.f32 %v7340_v46, %v1290_v11 }
 0x16e   :  { %v5899_v25 = vpop.f32.mrf.mxu0  ;;  %6042 = vmatmul.mubr.msk.f32.gmra.mxu0 %vm223_vm0, %v193_v33  ;;  %v196_v33 = vld [vmem:[%s10546_s0 + $0x5b0] sm:$0xff] }
 0x16f   :  { %10671 = vst [vmem:[#allocation42_spill] sm:$0xff] %v7781_v15  ;;  %v7791_v31 = vadd.f32 %v5899_v25, %v7340_v46  ;;  %6044 = vmatprep.mubr.msk.f32.mxu0 %vm223_vm0, %v194_v29 }
 0x170   :  { %v1300_v11 = vpop.f32.mrf.mxu0 }
 0x171   :  { %10673 = vst [vmem:[#allocation44_spill] sm:$0xff] %v7791_v31  ;;  %v7807_v25 = vadd.f32 %v7340_v46, %v1300_v11 }
 0x172   :  { %v5902_v29 = vpop.f32.mrf.mxu0  ;;  %6045 = vmatmul.mubr.msk.f32.gmra.mxu0 %vm223_vm0, %v195_v37  ;;  %v198_v37 = vld [vmem:[%s10546_s0 + $0x5c0] sm:$0xff] }
 0x173   :  { %10675 = vst [vmem:[#allocation46_spill] sm:$0xff] %v7807_v25  ;;  %v7817_v35 = vadd.f32 %v5902_v29, %v7340_v46  ;;  %6047 = vmatprep.mubr.msk.f32.mxu0 %vm223_vm0, %v196_v33  ;;  %v2525_v33 = vld [vmem:[%s10547_s2 + $0x440] sm:$0xff] }
 0x174   :  { %v1310_v11 = vpop.f32.mrf.mxu0  ;;  %2533 = vmatprep.subr.mxu1 %v2525_v33  ;;  %v2516_v33 = vld [vmem:[%s10547_s2 + $0x3f8] sm:$0xff] }
 0x175   :  { %10677 = vst [vmem:[#allocation48_spill] sm:$0xff] %v7817_v35  ;;  %v7833_v29 = vadd.f32 %v7340_v46, %v1310_v11  ;;  %v7847_v11 = vadd.f32 %v7262_v56, %v7340_v46  ;;  %v200_v56 = vld [vmem:[%s10546_s0 + $0x5d0] sm:$0xff]  ;;  %2534 = vmatpush1.msra.mxu1 %v2524_v52 }
 0x176   :  { %v5905_v25 = vpop.f32.mrf.mxu0  ;;  %6048 = vmatmul.mubr.msk.f32.gmra.mxu0 %vm223_vm0, %v197_v44  ;;  %v199_v44 = vld [vmem:[%s10546_s0 + $0x5c8] sm:$0xff]  ;;  %2535 = vmatprep.subr.mxu1 %v2516_v33 }
 0x177   :  { %10679 = vst [vmem:[#allocation50_spill] sm:$0xff] %v7833_v29  ;;  %10680 = vst [vmem:[#allocation51_spill] sm:$0xff] %v7847_v11  ;;  %v7852_v40 = vadd.f32 %v5905_v25, %v7340_v46  ;;  %6050 = vmatprep.mubr.msk.f32.mxu0 %vm223_vm0, %v198_v37  ;;  %v2515_v25 = vld [vmem:[%s10547_s2 + $0x3f0] sm:$0xff]  ;;  %v7869_v37 = vadd.f32 %v7340_v46, %v7269_v60  ;;  %v2506_v60 = vld [vmem:[%s10547_s2 + $0x3a8] sm:$0xff] }
 0x178   :  { %v1320_v35 = vpop.f32.mrf.mxu0  ;;  %v2507_v29 = vld [vmem:[%s10547_s2 + $0x3b0] sm:$0xff]  ;;  %2536 = vmatpush1.msra.mxu1 %v2515_v25  ;;  %v2498_v25 = vld [vmem:[%s10547_s2 + $0x368] sm:$0xff] }
 0x179   :  { %10681 = vst [vmem:[#allocation52_spill] sm:$0xff] %v7852_v40  ;;  %10682 = vst [vmem:[#allocation53_spill] sm:$0xff] %v7869_v37  ;;  %v7874_v15 = vadd.f32 %v7340_v46, %v1320_v35  ;;  %2537 = vmatprep.subr.mxu1 %v2507_v29  ;;  %v2497_v29 = vld [vmem:[%s10547_s2 + $0x360] sm:$0xff]  ;;  %v2471_v37 = vld [vmem:[%s10547_s2 + $0x290] sm:$0xff] }
 0x17a   :  { %v5908_v52 = vpop.f32.mrf.mxu0  ;;  %6051 = vmatmul.mubr.msk.f32.gmra.mxu0 %vm223_vm0, %v199_v44  ;;  %v201_v44 = vld [vmem:[%s10546_s0 + $0x5d8] sm:$0xff]  ;;  %2538 = vmatpush1.msra.mxu1 %v2506_v60  ;;  %v2493_v60 = vld [vmem:[%s10547_s2 + $0x340] sm:$0xff] }
 0x17b   :  { %10683 = vst [vmem:[#allocation54_spill] sm:$0xff] %v7874_v15  ;;  %v7890_v33 = vadd.f32 %v5908_v52, %v7340_v46  ;;  %6053 = vmatprep.mubr.msk.f32.mxu0 %vm223_vm0, %v200_v56  ;;  %v2501_v52 = vld [vmem:[%s10547_s2 + $0x380] sm:$0xff]  ;;  %2539 = vmatprep.subr.mxu1 %v2498_v25  ;;  %v2492_v56 = vld [vmem:[%s10547_s2 + $0x338] sm:$0xff] }
 0x17c   :  { %v7899_v17 = vpop.f32.mrf.mxu0  ;;  %3142 = vmatpush1.msra.mxu0 %v2501_v52  ;;  %2540 = vmatpush1.msra.mxu1 %v2497_v29  ;;  %v7921_v52 = vadd.f32 %v7286_v8, %v7340_v46  ;;  %v2488_v29 = vld [vmem:[%s10547_s2 + $0x318] sm:$0xff] }
 0x17d   :  { %10685 = vst [vmem:[#allocation56_spill] sm:$0xff] %v7890_v33  ;;  %10686 = vst [vmem:[#allocation57_spill] sm:$0xff] %v7899_v17  ;;  %v2489_v17 = vld [vmem:[%s10547_s2 + $0x320] sm:$0xff]  ;;  %3143 = vmatprep.subr.mxu0 %v2493_v60  ;;  %v2483_v60 = vld [vmem:[%s10547_s2 + $0x2f0] sm:$0xff] }
 0x17e   :  { %v5911_v35 = vpop.f32.mrf.mxu0  ;;  %6054 = vmatmul.mubr.msk.f32.gmra.mxu0 %vm223_vm0, %v201_v44  ;;  %10687 = vst [vmem:[#allocation58_spill] sm:$0xff] %v7921_v52  ;;  %v203_v44 = vld [vmem:[%s10546_s0 + $0x5e8] sm:$0xff]  ;;  %2541 = vmatprep.subr.mxu1 %v2489_v17  ;;  %v2480_v17 = vld [vmem:[%s10547_s2 + $0x2d8] sm:$0xff]  ;;  %v2453_v52 = vld [vmem:[%s10547_s2 + $0x200] sm:$0xff] }
 0x17f   :  { %v7924_v25 = vadd.f32 %v5911_v35, %v7340_v46  ;;  %6056 = vmatprep.mubr.msk.f32.mxu0 %vm223_vm0, %v202_v0  ;;  %v204_v35 = vld [vmem:[%s10546_s0 + $0x5f0] sm:$0xff]  ;;  %2542 = vmatpush1.msra.mxu1 %v2488_v29  ;;  %v2484_v0 = vld [vmem:[%s10547_s2 + $0x2f8] sm:$0xff] }
 0x180   :  { %v7936_v8 = vpop.f32.mrf.mxu0  ;;  %2543 = vmatprep.subr.mxu1 %v2480_v17  ;;  %3144 = vmatpush1.msra.mxu0 %v2492_v56  ;;  %v2475_v56 = vld [vmem:[%s10547_s2 + $0x2b0] sm:$0xff]  ;;  %v7964_v17 = vadd.f32 %v7298_v16, %v7340_v46  ;;  %v206_v16 = vld [vmem:[%s10546_s0 + $0x600] sm:$0xff] }
 0x181   :  { %10688 = vst [vmem:[#allocation59_spill] sm:$0xff] %v7924_v25  ;;  %10689 = vst [vmem:[#allocation60_spill] sm:$0xff] %v7936_v8  ;;  %v2479_v8 = vld [vmem:[%s10547_s2 + $0x2d0] sm:$0xff]  ;;  %3145 = vmatprep.subr.mxu0 %v2484_v0  ;;  %v2474_v0 = vld [vmem:[%s10547_s2 + $0x2a8] sm:$0xff] }
 0x182   :  { %v5914_v29 = vpop.f32.mrf.mxu0  ;;  %6057 = vmatmul.mubr.msk.f32.gmra.mxu0 %vm223_vm0, %v203_v44  ;;  %2544 = vmatpush1.msra.mxu1 %v2479_v8  ;;  %10690 = vst [vmem:[#allocation61_spill] sm:$0xff] %v7964_v17  ;;  %v205_v44 = vld [vmem:[%s10546_s0 + $0x5f8] sm:$0xff]  ;;  %v2470_v8 = vld [vmem:[%s10547_s2 + $0x288] sm:$0xff] }
 0x183   :  { %v7967_v15 = vadd.f32 %v5914_v29, %v7340_v46  ;;  %6059 = vmatprep.mubr.msk.f32.mxu0 %vm223_vm0, %v204_v35  ;;  %2545 = vmatprep.subr.mxu1 %v2471_v37  ;;  %v2462_v35 = vld [vmem:[%s10547_s2 + $0x248] sm:$0xff] }
 0x184   :  { %v7976_v25 = vpop.f32.mrf.mxu0  ;;  %3146 = vmatpush1.msra.mxu0 %v2483_v60  ;;  %2546 = vmatpush1.msra.mxu1 %v2470_v8  ;;  %v2466_v37 = vld [vmem:[%s10547_s2 + $0x268] sm:$0xff]  ;;  %v8004_v8 = vadd.f32 %v7310_v24, %v7340_v46  ;;  %v208_v24 = vld [vmem:[%s10546_s0 + $0x610] sm:$0xff] }
 0x185   :  { %10691 = vst [vmem:[#allocation62_spill] sm:$0xff] %v7967_v15  ;;  %10692 = vst [vmem:[#allocation63_spill] sm:$0xff] %v7976_v25  ;;  %3147 = vmatprep.subr.mxu0 %v2475_v56  ;;  %v2461_v25 = vld [vmem:[%s10547_s2 + $0x240] sm:$0xff]  ;;  %2547 = vmatprep.subr.mxu1 %v2462_v35  ;;  %v2452_v35 = vld [vmem:[%s10547_s2 + $0x1f8] sm:$0xff] }
 0x186   :  { %v5917_v60 = vpop.f32.mrf.mxu0  ;;  %6060 = vmatmul.mubr.msk.f32.gmra.mxu0 %vm223_vm0, %v205_v44  ;;  %v2465_v56 = vld [vmem:[%s10547_s2 + $0x260] sm:$0xff]  ;;  %10693 = vst [vmem:[#allocation64_spill] sm:$0xff] %v8004_v8  ;;  %v207_v44 = vld [vmem:[%s10546_s0 + $0x608] sm:$0xff]  ;;  %2548 = vmatpush1.msra.mxu1 %v2461_v25  ;;  %v2443_v25 = vld [vmem:[%s10547_s2 + $0x1b0] sm:$0xff] }
 0x187   :  { %v8007_v29 = vadd.f32 %v5917_v60, %v7340_v46  ;;  %6062 = vmatprep.mubr.msk.f32.mxu0 %vm223_vm0, %v206_v16  ;;  %3148 = vmatpush1.msra.mxu0 %v2474_v0  ;;  %v2457_v16 = vld [vmem:[%s10547_s2 + $0x220] sm:$0xff]  ;;  %v2444_v0 = vld [vmem:[%s10547_s2 + $0x1b8] sm:$0xff] }
 0x188   :  { %v8016_v15 = vpop.f32.mrf.mxu0  ;;  %3149 = vmatprep.subr.mxu0 %v2466_v37  ;;  %2549 = vmatprep.subr.mxu1 %v2453_v52  ;;  %v2448_v52 = vld [vmem:[%s10547_s2 + $0x1d8] sm:$0xff]  ;;  %v8041_v37 = vadd.f32 %v7322_v32, %v7340_v46  ;;  %v210_v32 = vld [vmem:[%s10546_s0 + $0x620] sm:$0xff] }
 0x189   :  { %10694 = vst [vmem:[#allocation65_spill] sm:$0xff] %v8007_v29  ;;  %10695 = vst [vmem:[#allocation66_spill] sm:$0xff] %v8016_v15  ;;  %3150 = vmatpush1.msra.mxu0 %v2465_v56  ;;  %v2456_v15 = vld [vmem:[%s10547_s2 + $0x218] sm:$0xff]  ;;  %2550 = vmatpush1.msra.mxu1 %v2452_v35  ;;  %v2435_v35 = vld [vmem:[%s10547_s2 + $0x170] sm:$0xff] }
 0x18a   :  { %v5920_v17 = vpop.f32.mrf.mxu0  ;;  %6063 = vmatmul.mubr.msk.f32.gmra.mxu0 %vm223_vm0, %v207_v44  ;;  %10696 = vst [vmem:[#allocation67_spill] sm:$0xff] %v8041_v37  ;;  %v209_v44 = vld [vmem:[%s10546_s0 + $0x618] sm:$0xff]  ;;  %3151 = vmatprep.subr.mxu0 %v2457_v16  ;;  %v2434_v16 = vld [vmem:[%s10547_s2 + $0x168] sm:$0xff] }
 0x18b   :  { %v8044_v56 = vadd.f32 %v5920_v17, %v7340_v46  ;;  %6065 = vmatprep.mubr.msk.f32.mxu0 %vm223_vm0, %v208_v24  ;;  %2551 = vmatprep.subr.mxu1 %v2444_v0  ;;  %v2447_v17 = vld [vmem:[%s10547_s2 + $0x1d0] sm:$0xff]  ;;  %v2438_v0 = vld [vmem:[%s10547_s2 + $0x188] sm:$0xff] }
 0x18c   :  { %v8053_v60 = vpop.f32.mrf.mxu0  ;;  %3152 = vmatpush1.msra.mxu0 %v2456_v15  ;;  %2552 = vmatpush1.msra.mxu1 %v2443_v25  ;;  %v2426_v15 = vld [vmem:[%s10547_s2 + $0x128] sm:$0xff]  ;;  %v8078_v25 = vadd.f32 %v7334_v42, %v7340_v46  ;;  %v212_v42 = vld [vmem:[%s10546_s0 + $0x630] sm:$0xff] }
 0x18d   :  { %10697 = vst [vmem:[#allocation68_spill] sm:$0xff] %v8044_v56  ;;  %10698 = vst [vmem:[#allocation69_spill] sm:$0xff] %v8053_v60  ;;  %3153 = vmatprep.subr.mxu0 %v2448_v52  ;;  %v2439_v60 = vld [vmem:[%s10547_s2 + $0x190] sm:$0xff]  ;;  %2553 = vmatprep.subr.mxu1 %v2435_v35  ;;  %v2425_v35 = vld [vmem:[%s10547_s2 + $0x120] sm:$0xff] }
 0x18e   :  { %v5923_v29 = vpop.f32.mrf.mxu0  ;;  %6066 = vmatmul.mubr.msk.f32.gmra.mxu0 %vm223_vm0, %v209_v44  ;;  %10699 = vst [vmem:[#allocation70_spill] sm:$0xff] %v8078_v25  ;;  %v211_v44 = vld [vmem:[%s10546_s0 + $0x628] sm:$0xff]  ;;  %2554 = vmatpush1.msra.mxu1 %v2434_v16  ;;  %v2421_v16 = vld [vmem:[%s10547_s2 + $0x100] sm:$0xff] }
 0x18f   :  { %v8081_v52 = vadd.f32 %v5923_v29, %v7340_v46  ;;  %6068 = vmatprep.mubr.msk.f32.mxu0 %vm223_vm0, %v210_v32  ;;  %3154 = vmatpush1.msra.mxu0 %v2447_v17  ;;  %v2430_v29 = vld [vmem:[%s10547_s2 + $0x148] sm:$0xff]  ;;  %v2417_v17 = vld [vmem:[%s10547_s2 + $0xe0] sm:$0xff]  ;;  %v2399_v32 = vld [vmem:[%s10547_s2 + $0x50] sm:$0xff] }
 0x190   :  { %v8090_v24 = vpop.f32.mrf.mxu0  ;;  %3155 = vmatprep.subr.mxu0 %v2439_v60  ;;  %2555 = vmatprep.subr.mxu1 %v2426_v15  ;;  %v2416_v60 = vld [vmem:[%s10547_s2 + $0xd8] sm:$0xff] }
 0x191   :  { %10700 = vst [vmem:[#allocation71_spill] sm:$0xff] %v8081_v52  ;;  %10701 = vst [vmem:[#allocation72_spill] sm:$0xff] %v8090_v24  ;;  %3156 = vmatpush1.msra.mxu0 %v2438_v0  ;;  %v2429_v24 = vld [vmem:[%s10547_s2 + $0x140] sm:$0xff]  ;;  %2556 = vmatpush1.msra.mxu1 %v2425_v35  ;;  %v213_v15 = vld [vmem:[%s10546_s0 + $0x638] sm:$0xff] }
 0x192   :  { %v8106_v56 = vpop.f32.mrf.mxu0  ;;  %6069 = vmatmul.mubr.msk.f32.gmra.mxu0 %vm223_vm0, %v211_v44  ;;  %3157 = vmatprep.subr.mxu0 %v2430_v29  ;;  %v2408_v0 = vld [vmem:[%s10547_s2 + $0x98] sm:$0xff]  ;;  %v2390_v52 = vld [vmem:[%s10547_s2 + $0x8] sm:$0xff] }
 0x193   :  { %6071 = vmatprep.mubr.msk.f32.mxu0 %vm223_vm0, %v212_v42  ;;  %2557 = vmatprep.subr.mxu1 %v2417_v17  ;;  %v2420_v35 = vld [vmem:[%s10547_s2 + $0xf8] sm:$0xff]  ;;  %v2407_v42 = vld [vmem:[%s10547_s2 + $0x90] sm:$0xff] }
 0x194   :  { %v8122_v44 = vpop.f32.mrf.mxu0  ;;  %3158 = vmatpush1.msra.mxu0 %v2429_v24  ;;  %2558 = vmatpush1.msra.mxu1 %v2416_v60  ;;  %v2412_v29 = vld [vmem:[%s10547_s2 + $0xb8] sm:$0xff]  ;;  %v2411_v24 = vld [vmem:[%s10547_s2 + $0xb0] sm:$0xff]  ;;  %v2398_v60 = vld [vmem:[%s10547_s2 + $0x48] sm:$0xff] }
 0x195   :  { %3159 = vmatprep.subr.mxu0 %v2421_v16  ;;  %2559 = vmatprep.subr.mxu1 %v2408_v0  ;;  %v2403_v16 = vld [vmem:[%s10547_s2 + $0x70] sm:$0xff]  ;;  %v2402_v0 = vld [vmem:[%s10547_s2 + $0x68] sm:$0xff] }
 0x196   :  { %v8136_v17 = vpop.f32.mrf.mxu0  ;;  %6072 = vmatmul.mubr.msk.f32.gmra.mxu0 %vm223_vm0, %v213_v15  ;;  %2560 = vmatpush1.msra.mxu1 %v2407_v42  ;;  %v2394_v42 = vld [vmem:[%s10547_s2 + $0x28] sm:$0xff] }
 0x197   :  { %3160 = vmatpush1.msra.mxu0 %v2420_v35  ;;  %2561 = vmatprep.subr.mxu1 %v2399_v32  ;;  %v2389_v32 = vld [vmem:[%s10547_s2] sm:$0xff] }
 0x198   :  { %v8151_v15 = vpop.f32.mrf.mxu0  ;;  %3161 = vmatprep.subr.mxu0 %v2412_v29  ;;  %2562 = vmatpush1.msra.mxu1 %v2398_v60  ;;  %v2393_v29 = vld [vmem:[%s10547_s2 + $0x20] sm:$0xff] }
 0x199   :  { %3162 = vmatpush1.msra.mxu0 %v2411_v24  ;;  %2563 = vmatprep.subr.mxu1 %v2390_v52  ;;  %v10592_v24 = vmov 0.0  }
 0x19a   :  { %v8156_v35 = vpop.f32.mrf.mxu0  ;;  %3163 = vmatprep.subr.mxu0 %v2403_v16  ;;  %2564 = vmatpush1.msra.mxu1 %v2389_v32 }
 0x19b   :  { %3164 = vmatpush1.msra.mxu0 %v2402_v0  ;;  %2597 = vmatprep.mubr.f32.mxu1 %v10592_v24 }
 0x19c   :  { %v8161_v25 = vpop.f32.mrf.mxu0  ;;  %3165 = vmatprep.subr.mxu0 %v2394_v42  ;;  %3199 = vmatprep.mubr.f32.mxu0 %v10592_v24 }
 0x19d   :  { %3166 = vmatpush1.msra.mxu0 %v2393_v29  ;;  %2834 = vmatprep.subr.mxu1 %v2527_v13 }
 0x19e   :  { %v8170_v52 = vpop.f32.mrf.mxu0 }
 0x1a0   :  { %v8173_v60 = vpop.f32.mrf.mxu0 }
 0x1a2   :  { %v8175_v16 = vpop.f32.mrf.mxu0 }
 0x1a4   :  { %v8177_v0 = vpop.f32.mrf.mxu0 }
 0x1a6   :  { %v8179_v42 = vpop.f32.mrf.mxu0 }
 0x1a8   :  { %v8181_v37 = vpop.f32.mrf.mxu0 }
 0x1aa   :  { %v8183_v8 = vpop.f32.mrf.mxu0 }
 0x1ac   :  { %v8185_v32 = vpop.f32.mrf.mxu0 }
 0x1ae   :  { %v8187_v33 = vpop.f32.mrf.mxu0 }
 0x1b0   :  { %v8189_v48 = vpop.f32.mrf.mxu0 }
 0x1b2   :  { %v8191_v29 = vpop.f32.mrf.mxu0 }
 0x1b4   :  { %v8193_v24 = vpop.f32.mrf.mxu0 }
 0x1b6   :  { %v8195_v40 = vpop.f32.mrf.mxu0 }
 0x1b8   :  { %v8197_v11 = vpop.f32.mrf.mxu0 }
 0x1b9   :  { %10702 = vst [vmem:[#allocation73_spill] sm:$0xff] %v8197_v11 }
 0x1ba   :  { %v8202_v19 = vpop.f32.mrf.mxu0 }
 0x1bc   :  { %v8204_v31 = vpop.f32.mrf.mxu0 }
 0x1bd   :  { %10703 = vst [vmem:[#allocation74_spill] sm:$0xff] %v8204_v31 }
 0x1be   :  { %v8206_v9 = vpop.f32.mrf.mxu0 }
 0x1c0   :  { %v8208_v27 = vpop.f32.mrf.mxu0 }
 0x1c1   :  { %10704 = vst [vmem:[#allocation75_spill] sm:$0xff] %v8208_v27 }
 0x1c2   :  { %v8210_v49 = vpop.f32.mrf.mxu0 }
 0x1c3   :  { %10705 = vst [vmem:[#allocation76_spill] sm:$0xff] %v8210_v49 }
 0x1c4   :  { %v8212_v23 = vpop.f32.mrf.mxu0 }
 0x1c5   :  { %10706 = vst [vmem:[#allocation77_spill] sm:$0xff] %v8212_v23 }
 0x1c6   :  { %v8214_v1 = vpop.f32.mrf.mxu0 }
 0x1c7   :  { %10707 = vst [vmem:[#allocation78_spill] sm:$0xff] %v8214_v1 }
 0x1c8   :  { %v8216_v5 = vpop.f32.mrf.mxu0 }
 0x1c9   :  { %10708 = vst [vmem:[#allocation79_spill] sm:$0xff] %v8216_v5 }
 0x1ca   :  { %v8218_v57 = vpop.f32.mrf.mxu0 }
 0x1cb   :  { %10709 = vst [vmem:[#allocation80_spill] sm:$0xff] %v8218_v57 }
 0x1cc   :  { %v8220_v2 = vpop.f32.mrf.mxu0 }
 0x1cd   :  { %10710 = vst [vmem:[#allocation81_spill] sm:$0xff] %v8220_v2 }
 0x1ce   :  { %v8222_v13 = vpop.f32.mrf.mxu0 }
 0x1cf   :  { %10711 = vst [vmem:[#allocation82_spill] sm:$0xff] %v8222_v13 }
 0x1d0   :  { %v8224_v21 = vpop.f32.mrf.mxu0 }
 0x1d1   :  { %10712 = vst [vmem:[#allocation83_spill] sm:$0xff] %v8224_v21 }
 0x1d2   :  { %v8226_v31 = vpop.f32.mrf.mxu0 }
 0x1d3   :  { %10713 = vst [vmem:[#allocation84_spill] sm:$0xff] %v8226_v31 }
 0x1d4   :  { %v8228_v11 = vpop.f32.mrf.mxu0 }
 0x1d5   :  { %10714 = vst [vmem:[#allocation85_spill] sm:$0xff] %v8228_v11 }
 0x1d6   :  { %v8230_v27 = vpop.f32.mrf.mxu0 }
 0x1d7   :  { %10715 = vst [vmem:[#allocation86_spill] sm:$0xff] %v8230_v27 }
 0x1d8   :  { %v8232_v49 = vpop.f32.mrf.mxu0 }
 0x1d9   :  { %10716 = vst [vmem:[#allocation87_spill] sm:$0xff] %v8232_v49 }
 0x1da   :  { %v8234_v23 = vpop.f32.mrf.mxu0 }
 0x1db   :  { %10717 = vst [vmem:[#allocation88_spill] sm:$0xff] %v8234_v23 }
 0x1dc   :  { %v8236_v1 = vpop.f32.mrf.mxu0 }
 0x1dd   :  { %10718 = vst [vmem:[#allocation89_spill] sm:$0xff] %v8236_v1 }
 0x1de   :  { %v8238_v5 = vpop.f32.mrf.mxu0 }
 0x1df   :  { %10719 = vst [vmem:[#allocation90_spill] sm:$0xff] %v8238_v5 }
 0x1e0   :  { %v8240_v57 = vpop.f32.mrf.mxu0 }
 0x1e1   :  { %10720 = vst [vmem:[#allocation91_spill] sm:$0xff] %v8240_v57 }
 0x1e2   :  { %v8242_v2 = vpop.f32.mrf.mxu0 }
 0x1e3   :  { %10721 = vst [vmem:[#allocation92_spill] sm:$0xff] %v8242_v2 }
 0x1e4   :  { %v8244_v13 = vpop.f32.mrf.mxu0 }
 0x1e5   :  { %10722 = vst [vmem:[#allocation93_spill] sm:$0xff] %v8244_v13  ;;  %v1396_v13 = vadd.f32 %v8106_v56, %v7340_v46 }
 0x1e6   :  { %v8246_v21 = vpop.f32.mrf.mxu0 }
 0x1e7   :  { %10723 = vst [vmem:[#allocation94_spill] sm:$0xff] %v8246_v21 }
 0x1e8   :  { %v8248_v31 = vpop.f32.mrf.mxu0 }
 0x1e9   :  { %10724 = vst [vmem:[#allocation95_spill] sm:$0xff] %v8248_v31  ;;  %v1391_v31 = vadd.f32 %v7340_v46, %v8122_v44 }
 0x1ea   :  { %v8250_v11 = vpop.f32.mrf.mxu0 }
 0x1eb   :  { %10725 = vst [vmem:[#allocation96_spill] sm:$0xff] %v8250_v11 }
 0x1ec   :  { %v8252_v27 = vpop.f32.mrf.mxu0 }
 0x1ed   :  { %10726 = vst [vmem:[#allocation97_spill] sm:$0xff] %v8252_v27 }
 0x1ee   :  { %v8254_v49 = vpop.f32.mrf.mxu0 }
 0x1ef   :  { %10727 = vst [vmem:[#allocation98_spill] sm:$0xff] %v8254_v49 }
 0x1f0   :  { %v8256_v23 = vpop.f32.mrf.mxu0 }
 0x1f1   :  { %10728 = vst [vmem:[#allocation99_spill] sm:$0xff] %v8256_v23  ;;  %v1406_v23 = vadd.f32 %v8136_v17, %v7340_v46  ;;  %v1401_v17 = vadd.f32 %v7340_v46, %v8151_v15 }
 0x1f2   :  { %v8258_v1 = vpop.f32.mrf.mxu0 }
 0x1f3   :  { %10729 = vst [vmem:[#allocation100_spill] sm:$0xff] %v8258_v1 }
 0x1f4   :  { %v8260_v5 = vpop.f32.mrf.mxu0 }
 0x1f5   :  { %10730 = vst [vmem:[#allocation101_spill] sm:$0xff] %v8260_v5  ;;  %v10731_v5 = vmax.f32 %v7360_v10, %v7363_v14 }
 0x1f6   :  { %v6001_v57 = vpop.f32.mrf.mxu0 }
 0x1f7   :  { %v1646_v21 = vadd.f32 %v6001_v57, %v7340_v46 }
 0x1f8   :  { %v1640_v2 = vpop.f32.mrf.mxu0 }
 0x1f9   :  { %v1940_v11 = vmax.f32 %v1396_v13, %v1646_v21  ;;  %v1641_v27 = vadd.f32 %v7340_v46, %v1640_v2  ;;  %v10732_v21 = vmax.f32 %v7374_v30, %v7379_v34  ;;  %v1416_v30 = vadd.f32 %v8156_v35, %v7340_v46 }
 0x1fa   :  { %v6004_v49 = vpop.f32.mrf.mxu0  ;;  %v1426_v35 = vadd.f32 %v8170_v52, %v7340_v46 }
 0x1fb   :  { %v8273_v1 = vmax.f32 %v10731_v5, %v1940_v11  ;;  %v1939_v59 = vmax.f32 %v1391_v31, %v1641_v27  ;;  %v1656_v56 = vadd.f32 %v6004_v49, %v7340_v46  ;;  %v10733_v5 = vmax.f32 %v7384_v50, %v7389_v62 }
 0x1fc   :  { %v1650_v57 = vpop.f32.mrf.mxu0  ;;  %v1411_v27 = vadd.f32 %v7340_v46, %v8161_v25  ;;  %v10734_v50 = vmax.f32 %v7400_v43, %v7405_v22  ;;  %v1421_v25 = vadd.f32 %v7340_v46, %v8173_v60  ;;  %v10736_v22 = vmax.f32 %v7426_v47, %v7431_v26 }
 0x1fd   :  { %v2091_v7 = vmul.f32 1.442695, %v8273_v1  ;;  %v8280_v44 = vmax.f32 %v10732_v21, %v1939_v59  ;;  %v1942_v2 = vmax.f32 %v1406_v23, %v1656_v56  ;;  %v1651_v13 = vadd.f32 %v7340_v46, %v1650_v57 }
 0x1fe   :  { %v6007_v10 = vpop.f32.mrf.mxu0  ;;  %vm2040_vm2 = vcmp.gt.f32.partialorder %v8273_v1, 0.0 }
 0x1ff   :  { %6498 = vpow2.f32 %v2091_v7  ;;  %v2089_v14 = vmul.f32 1.442695, %v8280_v44  ;;  %v8289_v49 = vmax.f32 %v10733_v5, %v1942_v2  ;;  %v1941_v34 = vmax.f32 %v1401_v17, %v1651_v13 }
 0x200   :  { %v1666_v59 = vadd.f32 %v6007_v10, %v7340_v46  ;;  %v1660_v23 = vpop.f32.mrf.mxu0  ;;  %v10735_v2 = vmax.f32 %v7410_v38, %v7415_v39  ;;  %v8322_v10 = vld [vmem:[%s10545_s1 + $0x20] ss:$0 sm:$0xff]  ;;  %v10737_v38 = vmax.f32 %v7436_v18, %v7441_v36  ;;  %vm2039_vm1 = vcmp.gt.f32.partialorder %v8280_v44, 0.0 }
 0x201   :  { %6500 = vpow2.f32 %v2089_v14  ;;  %v2095_v7 = vmul.f32 1.442695, %v8289_v49  ;;  %v1661_v31 = vadd.f32 %v7340_v46, %v1660_v23  ;;  %v8301_v62 = vmax.f32 %v10734_v50, %v1941_v34 }
 0x202   :  { %v1944_v11 = vmax.f32 %v1416_v30, %v1666_v59  ;;  %v6010_v15 = vpop.f32.mrf.mxu0  ;;  %v1436_v26 = vadd.f32 %v8322_v10, %v8175_v16  ;;  %v10738_v59 = vmax.f32 %v7452_v51, %v7457_v6  ;;  %v1446_v16 = vadd.f32 %v8322_v10, %v8179_v42 }
 0x203   :  { %v1943_v56 = vmax.f32 %v1411_v27, %v1661_v31  ;;  %v1676_v57 = vadd.f32 %v6010_v15, %v7340_v46  ;;  %v2093_v21 = vmul.f32 1.442695, %v8301_v62  ;;  %6502 = vpow2.f32 %v2095_v7 }
 0x204   :  { %v8312_v17 = vmax.f32 %v10735_v2, %v1944_v11  ;;  %v1670_v43 = vpop.f32.mrf.mxu0  ;;  %v1431_v7 = vadd.f32 %v8322_v10, %v8177_v0  ;;  %v10739_v11 = vmax.f32 %v7462_v58, %v7467_v20  ;;  %v10740_v42 = vmax.f32 %v7488_v54, %v7493_v4 }
 0x205   :  { %v8317_v13 = vmax.f32 %v10736_v22, %v1943_v56  ;;  %v1946_v52 = vmax.f32 %v1426_v35, %v1676_v57  ;;  %v1671_v46 = vadd.f32 %v8322_v10, %v1670_v43  ;;  %6504 = vpow2.f32 %v2093_v21 }
 0x206   :  { %v6013_v60 = vpop.f32.mrf.mxu0  ;;  %v2099_v5 = vmul.f32 1.442695, %v8312_v17  ;;  %v1456_v43 = vadd.f32 %v8322_v10, %v8183_v8  ;;  %v1441_v54 = vadd.f32 %v8322_v10, %v8181_v37  ;;  %v2526_v37 = vld [vmem:[%s10547_s2 + $0x448] sm:$0xff]  ;;  %vm2041_vm3 = vcmp.gt.f32.partialorder %v8301_v62, 0.0 }
 0x207   :  { %v2097_v39 = vmul.f32 1.442695, %v8317_v13  ;;  %v8329_v14 = vmax.f32 %v10737_v38, %v1946_v52  ;;  %v1945_v47 = vmax.f32 %v1421_v25, %v1671_v46  ;;  %v1686_v30 = vadd.f32 %v8322_v10, %v6013_v60  ;;  %v10742_v38 = vld [vmem:[#allocation9_spill] sm:$0xff] }
 0x208   :  { %v1680_v34 = vpop.f32.mrf.mxu0  ;;  %vm2042_vm4 = vcmp.gt.f32.partialorder %v8289_v49, 0.0  ;;  %vm2043_vm5 = vcmp.gt.f32.partialorder %v8317_v13, 0.0  ;;  %vm2044_vm6 = vcmp.gt.f32.partialorder %v8312_v17, 0.0 }
 0x209   :  { %6506 = vpow2.f32 %v2097_v39  ;;  %v8338_v23 = vmax.f32 %v10738_v59, %v1945_v47  ;;  %v1948_v27 = vmax.f32 %v1436_v26, %v1686_v30  ;;  %v1681_v36 = vadd.f32 %v8322_v10, %v1680_v34  ;;  %v10741_v39 = vld [vmem:[#allocation8_spill] sm:$0xff] }
 0x20a   :  { %v6016_v18 = vpop.f32.mrf.mxu0  ;;  %6508 = vpow2.f32 %v2099_v5  ;;  %v2103_v20 = vmul.f32 1.442695, %v8329_v14  ;;  %v10743_v47 = vmax.f32 %v10741_v39, %v10742_v38  ;;  %v2509_v38 = vld [vmem:[%s10547_s2 + $0x3c0] sm:$0xff]  ;;  %vm2046_vm8 = vcmp.gt.f32.partialorder %v8329_v14, 0.0 }
 0x20b   :  { %v1696_v31 = vadd.f32 %v8322_v10, %v6016_v18  ;;  %v8349_v51 = vmax.f32 %v10739_v11, %v1948_v27  ;;  %v2101_v35 = vmul.f32 1.442695, %v8338_v23  ;;  %v1947_v56 = vmax.f32 %v1431_v7, %v1681_v36  ;;  %v2518_v11 = vld [vmem:[%s10547_s2 + $0x408] sm:$0xff] }
 0x20c   :  { %v6499_v50 = vpop.eup %6498  ;;  %v1690_v6 = vpop.f32.mrf.mxu0  ;;  %vm2045_vm7 = vcmp.gt.f32.partialorder %v8338_v23, 0.0 }
 0x20d   :  { %v5276_v15 = vadd.f32 -1.0, %v6499_v50  ;;  %v1950_v57 = vmax.f32 %v1446_v16, %v1696_v31  ;;  %v1691_v58 = vadd.f32 %v8322_v10, %v1690_v6  ;;  %6510 = vpow2.f32 %v2101_v35 }
 0x20e   :  { %v6501_v25 = vpop.eup %6500  ;;  %v6019_v0 = vpop.f32.mrf.mxu0  ;;  %v8365_v26 = vmax.f32 %v10743_v47, %v1947_v56  ;;  %6512 = vpow2.f32 %v2103_v20  ;;  %v10749_v47 = vmax.f32 %v7546_v28, %v7551_v45  ;;  %vm2048_vm10 = vcmp.gt.f32.partialorder %v8349_v51, 0.0 }
 0x20f   :  { %v5275_v21 = vadd.f32 -1.0, %v6501_v25  ;;  %v8355_v2 = vmax.f32 %v10740_v42, %v1950_v57  ;;  %v1706_v22 = vadd.f32 %v8322_v10, %v6019_v0  ;;  %v2240_v46 = vmul.f32 1.6732632, %v5276_v15  ;;  %v10746_v25 = vld [vmem:[#allocation10_spill] sm:$0xff]  ;;  %v10747_v0 = vld [vmem:[#allocation11_spill] sm:$0xff] }
 0x210   :  { %v1700_v52 = vpop.f32.mrf.mxu0  ;;  %v6503_v4 = vpop.eup %6502  ;;  %v1949_v36 = vmax.f32 %v1441_v54, %v1691_v58  ;;  %v2105_v31 = vmul.f32 1.442695, %v8365_v26  ;;  %v1466_v15 = vadd.f32 %v8322_v10, %v8187_v33  ;;  %v10745_v57 = vmov 0.0  }
 0x211   :  { %v2239_v60 = vmul.f32 1.6732632, %v5275_v21  ;;  %v1952_v34 = vmax.f32 %v1456_v43, %v1706_v22  ;;  %v2290_v7 = vsel %vm2040_vm2, %v8273_v1, %v2240_v46  ;;  %v5278_v16 = vadd.f32 -1.0, %v6503_v4 }
 0x212   :  { %v6022_v8 = vpop.f32.mrf.mxu0  ;;  %v6505_v5 = vpop.eup %6504  ;;  %v8400_v33 = vmul.f32 1.050701, %v2290_v7  ;;  %v10748_v21 = vmax.f32 %v10746_v25, %v10747_v0  ;;  %v1701_v43 = vadd.f32 %v8322_v10, %v1700_v52  ;;  %6514 = vpow2.f32 %v2105_v31 }
 0x213   :  { %v2289_v30 = vsel %vm2039_vm1, %v8280_v44, %v2239_v60  ;;  %v5277_v27 = vadd.f32 -1.0, %v6505_v5  ;;  %v10744_v44 = vmax.f32 %v7520_v53, %v7525_v55  ;;  %v1716_v56 = vadd.f32 %v8322_v10, %v6022_v8  ;;  %v2517_v55 = vld [vmem:[%s10547_s2 + $0x400] sm:$0xff] }
 0x214   :  { %v8372_v59 = vmul.f32 1.050701, %v2289_v30  ;;  %v8374_v18 = vpop.f32.mrf.mxu0  ;;  %v2107_v53 = vmul.f32 1.442695, %v8349_v51  ;;  %v8405_v42 = vmax.f32 %v10748_v21, %v1949_v36  ;;  %v2242_v46 = vmul.f32 1.6732632, %v5278_v16 }
 0x215   :  { %v8384_v50 = vmax.f32 %v10744_v44, %v1952_v34  ;;  %v2241_v35 = vmul.f32 1.6732632, %v5277_v27  ;;  %v1954_v20 = vmax.f32 %v1466_v15, %v1716_v56  ;;  %v1451_v52 = vadd.f32 %v8322_v10, %v8185_v32  ;;  %v10750_v15 = vld [vmem:[#allocation12_spill] sm:$0xff] }
 0x216   :  { %v6507_v6 = vpop.eup %6506  ;;  %v6025_v1 = vpop.f32.mrf.mxu0  ;;  %2598 = vmatmul.mubr.f32.vlgmr.msra.gmra.mxu1 %v8372_v59  ;;  %3200 = vmatmul.mubr.f32.vlgmr.msra.gmra.mxu0 %v8372_v59  ;;  %6516 = vpow2.f32 %v2107_v53  ;;  %v2109_v28 = vmul.f32 1.442695, %v8405_v42  ;;  %v1476_v30 = vadd.f32 %v8322_v10, %v8191_v29  ;;  %v2292_v34 = vsel %vm2042_vm4, %v8289_v49, %v2242_v46  ;;  %v2499_v29 = vld [vmem:[%s10547_s2 + $0x370] sm:$0xff] }
 0x217   :  { %2835 = vmatpush1.msra.mxu1 %v2526_v37  ;;  %2602 = vmatprep.mubr.f32.mxu1 %v10745_v57  ;;  %v6509_v22 = vpop.eup %6508  ;;  %v2291_v60 = vsel %vm2041_vm3, %v8301_v62, %v2241_v35  ;;  %v5279_v39 = vadd.f32 -1.0, %v6507_v6  ;;  %v8420_v4 = vmax.f32 %v10749_v47, %v1954_v20  ;;  %v2508_v62 = vld [vmem:[%s10547_s2 + $0x3b8] sm:$0xff]  ;;  %v1951_v8 = vmax.f32 %v1451_v52, %v1701_v43 }
 0x218   :  { %v8408_v58 = vpop.f32.mrf.mxu0  ;;  %3203 = vmatprep.mubr.f32.mxu0 %v10745_v57  ;;  %2836 = vmatprep.subr.mxu1 %v2518_v11  ;;  %v8430_v32 = vmul.f32 1.050701, %v2291_v60  ;;  %v5280_v45 = vadd.f32 -1.0, %v6509_v22  ;;  %v1726_v36 = vadd.f32 %v8322_v10, %v6025_v1  ;;  %v2500_v37 = vld [vmem:[%s10547_s2 + $0x378] sm:$0xff]  ;;  %v1486_v16 = vadd.f32 %v8322_v10, %v8195_v40  ;;  %v2491_v22 = vld [vmem:[%s10547_s2 + $0x330] sm:$0xff] }
 0x219   :  { %2837 = vmatpush1.msra.mxu1 %v2517_v55  ;;  %v2243_v27 = vmul.f32 1.6732632, %v5279_v39  ;;  %v2111_v49 = vmul.f32 1.442695, %v8355_v2  ;;  %v8453_v6 = vmul.f32 1.050701, %v2292_v34  ;;  %6518 = vpow2.f32 %v2109_v28 }
 0x21a   :  { %v6028_v54 = vpop.f32.mrf.mxu0  ;;  %2603 = vmatmul.mubr.f32.gmra.mxu1 %v8400_v33  ;;  %3204 = vmatmul.mubr.f32.gmra.mxu0 %v8400_v33  ;;  %v6511_v7 = vpop.eup %6510  ;;  %v1956_v44 = vmax.f32 %v1476_v30, %v1726_v36  ;;  %v2244_v40 = vmul.f32 1.6732632, %v5280_v45  ;;  %v10751_v35 = vld [vmem:[#allocation13_spill] sm:$0xff]  ;;  %v1711_v21 = vadd.f32 %v8322_v10, %v8374_v18  ;;  %v10753_v43 = vmax.f32 %v7572_v41, %v7577_v63 }
 0x21b   :  { %2607 = vmatprep.mubr.f32.mxu1 %v10745_v57  ;;  %3207 = vmatprep.mubr.f32.mxu0 %v10745_v57  ;;  %v1736_v11 = vadd.f32 %v8322_v10, %v6028_v54  ;;  %v10752_v56 = vmax.f32 %v10750_v15, %v10751_v35  ;;  %v6513_v53 = vpop.eup %6512  ;;  %v2293_v25 = vsel %vm2043_vm5, %v8317_v13, %v2243_v27  ;;  %v5281_v0 = vadd.f32 -1.0, %v6511_v7  ;;  %v2490_v13 = vld [vmem:[%s10547_s2 + $0x328] sm:$0xff]  ;;  %v2472_v35 = vld [vmem:[%s10547_s2 + $0x298] sm:$0xff] }
 0x21c   :  { %v8433_v5 = vpop.f32.mrf.mxu0  ;;  %2838 = vmatprep.subr.mxu1 %v2509_v38  ;;  %v8469_v20 = vmax.f32 %v10753_v43, %v1956_v44  ;;  %v1461_v63 = vadd.f32 %v8322_v10, %v8189_v48  ;;  %6520 = vpow2.f32 %v2111_v49  ;;  %v2294_v41 = vsel %vm2044_vm6, %v8312_v17, %v2244_v40  ;;  %v2482_v48 = vld [vmem:[%s10547_s2 + $0x2e8] sm:$0xff] }
 0x21d   :  { %2839 = vmatpush1.msra.mxu1 %v2508_v62  ;;  %v8458_v1 = vmax.f32 %v10752_v56, %v1951_v8  ;;  %v1958_v46 = vmax.f32 %v1486_v16, %v1736_v11  ;;  %v8485_v18 = vmul.f32 1.050701, %v2293_v25  ;;  %v5282_v39 = vadd.f32 -1.0, %v6513_v53  ;;  %v2481_v8 = vld [vmem:[%s10547_s2 + $0x2e0] sm:$0xff]  ;;  %v10756_v49 = vld [vmem:[#allocation15_spill] sm:$0xff] }
 0x21e   :  { %v6031_v31 = vpop.f32.mrf.mxu0  ;;  %2608 = vmatmul.mubr.f32.gmra.mxu1 %v8430_v32  ;;  %3208 = vmatmul.mubr.f32.gmra.mxu0 %v8430_v32  ;;  %v2245_v47 = vmul.f32 1.6732632, %v5281_v0  ;;  %v1953_v54 = vmax.f32 %v1461_v63, %v1711_v21  ;;  %v10754_v45 = vmax.f32 %v7598_v12, %v7603_v3  ;;  %v1496_v30 = vadd.f32 %v8322_v10, %v8202_v19 }
 0x21f   :  { %2613 = vmatprep.mubr.f32.mxu1 %v10745_v57  ;;  %3211 = vmatprep.mubr.f32.mxu0 %v10745_v57  ;;  %v2113_v38 = vmul.f32 1.442695, %v8458_v1  ;;  %v6515_v62 = vpop.eup %6514  ;;  %v8505_v34 = vmul.f32 1.050701, %v2294_v41  ;;  %v2115_v12 = vmul.f32 1.442695, %v8384_v50  ;;  %v1721_v36 = vadd.f32 %v8322_v10, %v8408_v58 }
 0x220   :  { %v8460_v55 = vpop.f32.mrf.mxu0  ;;  %2840 = vmatprep.subr.mxu1 %v2500_v37  ;;  %v8496_v17 = vmax.f32 %v10754_v45, %v1958_v46  ;;  %v2246_v27 = vmul.f32 1.6732632, %v5282_v39  ;;  %v1746_v37 = vadd.f32 %v8322_v10, %v6031_v31  ;;  %v2295_v19 = vsel %vm2045_vm7, %v8338_v23, %v2245_v47  ;;  %v2473_v58 = vld [vmem:[%s10547_s2 + $0x2a0] sm:$0xff]  ;;  %v2464_v41 = vld [vmem:[%s10547_s2 + $0x258] sm:$0xff]  ;;  %v10760_v39 = vld [vmem:[#allocation23_spill] sm:$0xff] }
 0x221   :  { %2841 = vmatpush1.msra.mxu1 %v2499_v29  ;;  %6522 = vpow2.f32 %v2113_v38  ;;  %v5283_v16 = vadd.f32 -1.0, %v6515_v62  ;;  %v10755_v29 = vld [vmem:[#allocation14_spill] sm:$0xff]  ;;  %v1471_v31 = vadd.f32 %v8322_v10, %v8193_v24  ;;  %v1506_v15 = vadd.f32 %v8322_v10, %v8206_v9  ;;  %v10761_v38 = vld [vmem:[#allocation24_spill] sm:$0xff] }
 0x222   :  { %v6034_v60 = vpop.f32.mrf.mxu0  ;;  %2614 = vmatmul.mubr.f32.gmra.mxu1 %v8453_v6  ;;  %3212 = vmatmul.mubr.f32.gmra.mxu0 %v8453_v6  ;;  %v10757_v44 = vmax.f32 %v10755_v29, %v10756_v49  ;;  %6524 = vpow2.f32 %v2115_v12  ;;  %v1960_v56 = vmax.f32 %v1496_v30, %v1746_v37  ;;  %v8538_v24 = vmul.f32 1.050701, %v2295_v19  ;;  %v10763_v62 = vld [vmem:[#allocation76_spill] sm:$0xff] }
 0x223   :  { %2619 = vmatprep.mubr.f32.mxu1 %v10745_v57  ;;  %3215 = vmatprep.mubr.f32.mxu0 %v10745_v57  ;;  %v6517_v3 = vpop.eup %6516  ;;  %v1756_v40 = vadd.f32 %v8322_v10, %v6034_v60  ;;  %v1955_v53 = vmax.f32 %v1471_v31, %v1721_v36  ;;  %v2296_v43 = vsel %vm2046_vm8, %v8329_v14, %v2246_v27  ;;  %v10758_v60 = vld [vmem:[#allocation20_spill] sm:$0xff]  ;;  %vm2047_vm9 = vcmp.gt.f32.partialorder %v8365_v26, 0.0  ;;  %v10766_v27 = vld [vmem:[#allocation17_spill] sm:$0xff] }
 0x224   :  { %v8488_v52 = vpop.f32.mrf.mxu0  ;;  %2842 = vmatprep.subr.mxu1 %v2491_v22  ;;  %v8520_v11 = vmax.f32 %v10757_v44, %v1953_v54  ;;  %v5284_v9 = vadd.f32 -1.0, %v6517_v3  ;;  %v2247_v22 = vmul.f32 1.6732632, %v5283_v16  ;;  %v10762_v47 = vmax.f32 %v10760_v39, %v10761_v38  ;;  %v10765_v3 = vld [vmem:[#allocation16_spill] sm:$0xff] }
 0x225   :  { %2843 = vmatpush1.msra.mxu1 %v2490_v13  ;;  %v1962_v25 = vmax.f32 %v1506_v15, %v1756_v40  ;;  %v10759_v13 = vmax.f32 %v7624_v61, %v10758_v60  ;;  %v2463_v61 = vld [vmem:[%s10547_s2 + $0x250] sm:$0xff]  ;;  %v1516_v45 = vadd.f32 %v8322_v10, %v10763_v62  ;;  %v8571_v30 = vmul.f32 1.050701, %v2296_v43  ;;  %v10774_v62 = vld [vmem:[#allocation31_spill] sm:$0xff] }
 0x226   :  { %v6037_v28 = vpop.f32.mrf.mxu0  ;;  %2620 = vmatmul.mubr.f32.gmra.mxu1 %v8485_v18  ;;  %3216 = vmatmul.mubr.f32.gmra.mxu0 %v8485_v18  ;;  %v6519_v21 = vpop.eup %6518  ;;  %v2117_v46 = vmul.f32 1.442695, %v8520_v11  ;;  %v2248_v12 = vmul.f32 1.6732632, %v5284_v9  ;;  %v10767_v36 = vmax.f32 %v10765_v3, %v10766_v27  ;;  %v1731_v19 = vadd.f32 %v8322_v10, %v8433_v5  ;;  %v2455_v40 = vld [vmem:[%s10547_s2 + $0x210] sm:$0xff]  ;;  %v10769_v5 = vld [vmem:[#allocation73_spill] sm:$0xff] }
 0x227   :  { %2625 = vmatprep.mubr.f32.mxu1 %v10745_v57  ;;  %3219 = vmatprep.mubr.f32.mxu0 %v10745_v57  ;;  %v8547_v63 = vmax.f32 %v10759_v13, %v1960_v56  ;;  %v8555_v54 = vmax.f32 %v10762_v47, %v1962_v25  ;;  %v1766_v14 = vadd.f32 %v8322_v10, %v6037_v28  ;;  %v5285_v49 = vadd.f32 -1.0, %v6519_v21  ;;  %v10771_v25 = vld [vmem:[#allocation28_spill] sm:$0xff]  ;;  %v2446_v47 = vld [vmem:[%s10547_s2 + $0x1c8] sm:$0xff] }
 0x228   :  { %v8514_v7 = vpop.f32.mrf.mxu0  ;;  %2844 = vmatprep.subr.mxu1 %v2482_v48  ;;  %10764 = vst [vmem:[#allocation8_spill] sm:$0xff] %v8571_v30  ;;  %v8576_v37 = vmax.f32 %v10767_v36, %v1955_v53  ;;  %v2297_v29 = vsel %vm2047_vm9, %v8365_v26, %v2247_v22  ;;  %6526 = vpow2.f32 %v2117_v46  ;;  %v2454_v26 = vld [vmem:[%s10547_s2 + $0x208] sm:$0xff]  ;;  %v1481_v56 = vadd.f32 %v8322_v10, %v10769_v5 }
 0x229   :  { %2845 = vmatpush1.msra.mxu1 %v2481_v8  ;;  %v2119_v8 = vmul.f32 1.442695, %v8420_v4  ;;  %v6521_v28 = vpop.eup %6520  ;;  %v1964_v44 = vmax.f32 %v1516_v45, %v1766_v14  ;;  %v10770_v53 = vld [vmem:[#allocation27_spill] sm:$0xff]  ;;  %v2298_v13 = vsel %vm2048_vm10, %v8349_v51, %v2248_v12  ;;  %v10775_v45 = vld [vmem:[#allocation32_spill] sm:$0xff]  ;;  %vm2049_vm11 = vcmp.gt.f32.partialorder %v8405_v42, 0.0 }
 0x22a   :  { %v6040_v23 = vpop.f32.mrf.mxu0  ;;  %2626 = vmatmul.mubr.f32.gmra.mxu1 %v8505_v34  ;;  %3220 = vmatmul.mubr.f32.gmra.mxu0 %v8505_v34  ;;  %v5286_v9 = vadd.f32 -1.0, %v6521_v28  ;;  %v10772_v21 = vmax.f32 %v10770_v53, %v10771_v25  ;;  %v2121_v39 = vmul.f32 1.442695, %v8576_v37  ;;  %v1957_v38 = vmax.f32 %v1481_v56, %v1731_v19  ;;  %v10782_v56 = vld [vmem:[#allocation80_spill] sm:$0xff] }
 0x22b   :  { %2631 = vmatprep.mubr.f32.mxu1 %v10745_v57  ;;  %3223 = vmatprep.mubr.f32.mxu0 %v10745_v57  ;;  %v1776_v15 = vadd.f32 %v8322_v10, %v6040_v23  ;;  %6528 = vpow2.f32 %v2119_v8  ;;  %v8606_v23 = vmul.f32 1.050701, %v2297_v29  ;;  %v10776_v8 = vmax.f32 %v10774_v62, %v10775_v45  ;;  %v2427_v45 = vld [vmem:[%s10547_s2 + $0x130] sm:$0xff] }
 0x22c   :  { %v8540_v0 = vpop.f32.mrf.mxu0  ;;  %2846 = vmatprep.subr.mxu1 %v2473_v58  ;;  %v10768_v58 = vld [vmem:[#allocation78_spill] sm:$0xff]  ;;  %v8601_v43 = vmax.f32 %v10772_v21, %v1964_v44  ;;  %v2250_v51 = vmul.f32 1.6732632, %v5286_v9  ;;  %v8629_v3 = vmul.f32 1.050701, %v2298_v13  ;;  %v1741_v36 = vadd.f32 %v8322_v10, %v8460_v55 }
 0x22d   :  { %2847 = vmatpush1.msra.mxu1 %v2472_v35  ;;  %v1526_v31 = vadd.f32 %v8322_v10, %v10768_v58  ;;  %10773 = vst [vmem:[#allocation9_spill] sm:$0xff] %v8606_v23  ;;  %v2123_v27 = vmul.f32 1.442695, %v8469_v20  ;;  %6530 = vpow2.f32 %v2121_v39  ;;  %v10778_v44 = vld [vmem:[#allocation18_spill] sm:$0xff]  ;;  %vm2050_vm12 = vcmp.gt.f32.partialorder %v8355_v2, 0.0 }
 0x22e   :  { %v8558_v48 = vpop.f32.mrf.mxu0  ;;  %2632 = vmatmul.mubr.f32.gmra.mxu1 %v8538_v24  ;;  %3224 = vmatmul.mubr.f32.gmra.mxu0 %v8538_v24  ;;  %v6523_v60 = vpop.eup %6522  ;;  %10777 = vst [vmem:[#allocation10_spill] sm:$0xff] %v8629_v3  ;;  %v1536_v9 = vadd.f32 %v8322_v10, %v10782_v56  ;;  %v2300_v53 = vsel %vm2050_vm12, %v8355_v2, %v2250_v51  ;;  %v2428_v2 = vld [vmem:[%s10547_s2 + $0x138] sm:$0xff]  ;;  %vm2051_vm13 = vcmp.gt.f32.partialorder %v8458_v1, 0.0  ;;  %vm2052_vm14 = vcmp.gt.f32.partialorder %v8384_v50, 0.0 }
 0x22f   :  { %2636 = vmatprep.mubr.f32.mxu1 %v10745_v57  ;;  %3227 = vmatprep.mubr.f32.mxu0 %v10745_v57  ;;  %v1966_v22 = vmax.f32 %v1526_v31, %v1776_v15  ;;  %v6525_v12 = vpop.eup %6524  ;;  %v2437_v15 = vld [vmem:[%s10547_s2 + $0x180] sm:$0xff]  ;;  %v1786_v25 = vadd.f32 %v8322_v10, %v8558_v48  ;;  %6532 = vpow2.f32 %v2123_v27  ;;  %v10785_v27 = vld [vmem:[#allocation35_spill] sm:$0xff]  ;;  %vm2053_vm15 = vcmp.gt.f32.partialorder %v8520_v11, 0.0 }
 0x230   :  { %v8580_v16 = vpop.f32.mrf.mxu0  ;;  %2848 = vmatprep.subr.mxu1 %v2464_v41  ;;  %v2249_v41 = vmul.f32 1.6732632, %v5285_v49  ;;  %v5287_v49 = vadd.f32 -1.0, %v6523_v60  ;;  %vm2054_vm0 = vcmp.gt.f32.partialorder %v8420_v4, 0.0  ;;  %vm2055_vm1 = vcmp.gt.f32.partialorder %v8576_v37, 0.0 }
 0x231   :  { %2849 = vmatpush1.msra.mxu1 %v2463_v61  ;;  %v2445_v61 = vld [vmem:[%s10547_s2 + $0x1c0] sm:$0xff]  ;;  %v8625_v28 = vmax.f32 %v10776_v8, %v1966_v22  ;;  %v5288_v22 = vadd.f32 -1.0, %v6525_v12  ;;  %v2532_v8 = vld [vmem:[%s10547_s2 + $0x478] sm:$0xff]  ;;  %v8685_v12 = vmul.f32 1.050701, %v2300_v53  ;;  %vm2056_vm2 = vcmp.gt.f32.partialorder %v8469_v20, 0.0 }
 0x232   :  { %v8589_v35 = vpop.f32.mrf.mxu0  ;;  %2637 = vmatmul.mubr.f32.gmra.mxu1 %v8571_v30  ;;  %3228 = vmatmul.mubr.f32.gmra.mxu0 %v8571_v30  ;;  %v2299_v29 = vsel %vm2049_vm11, %v8405_v42, %v2249_v41  ;;  %v2436_v42 = vld [vmem:[%s10547_s2 + $0x178] sm:$0xff]  ;;  %v2251_v41 = vmul.f32 1.6732632, %v5287_v49  ;;  %vm2058_vm4 = vcmp.gt.f32.partialorder %v8496_v17, 0.0  ;;  %vm2060_vm6 = vcmp.gt.f32.partialorder %v8547_v63, 0.0 }
 0x233   :  { %2641 = vmatprep.mubr.f32.mxu1 %v10745_v57  ;;  %3231 = vmatprep.mubr.f32.mxu0 %v10745_v57  ;;  %v8663_v21 = vmul.f32 1.050701, %v2299_v29  ;;  %v1796_v51 = vadd.f32 %v8322_v10, %v8589_v35  ;;  %v10786_v35 = vld [vmem:[#allocation36_spill] sm:$0xff]  ;;  %vm2062_vm8 = vcmp.gt.f32.partialorder %v8555_v54, 0.0  ;;  %vm2064_vm10 = vcmp.gt.f32.partialorder %v8601_v43, 0.0 }
 0x234   :  { %v8608_v46 = vpop.f32.mrf.mxu0  ;;  %2850 = vmatprep.subr.mxu1 %v2455_v40  ;;  %v10779_v40 = vld [vmem:[#allocation19_spill] sm:$0xff]  ;;  %6074 = vmatprep.subr.mxu0 %v2532_v8  ;;  %vm2066_vm12 = vcmp.gt.f32.partialorder %v8625_v28, 0.0 }
 0x235   :  { %2851 = vmatpush1.msra.mxu1 %v2454_v26  ;;  %v10780_v58 = vmax.f32 %v10778_v44, %v10779_v40  ;;  %v10781_v26 = vld [vmem:[#allocation74_spill] sm:$0xff]  ;;  %10783 = vst [vmem:[#allocation11_spill] sm:$0xff] %v8663_v21  ;;  %v6527_v48 = vpop.eup %6526  ;;  %v2252_v44 = vmul.f32 1.6732632, %v5288_v22  ;;  %v2127_v40 = vmul.f32 1.442695, %v8496_v17  ;;  %6075 = vmatpush3.msra.mxu0 %v2532_v8 }
 0x236   :  { %v8615_v14 = vpop.f32.mrf.mxu0  ;;  %2642 = vmatmul.mubr.f32.gmra.mxu1 %v8606_v23  ;;  %3232 = vmatmul.mubr.f32.gmra.mxu0 %v8606_v23  ;;  %v1491_v55 = vadd.f32 %v8322_v10, %v10781_v26  ;;  %v5289_v53 = vadd.f32 -1.0, %v6527_v48  ;;  %v2419_v22 = vld [vmem:[%s10547_s2 + $0xf0] sm:$0xff] }
 0x237   :  { %2645 = vmatprep.mubr.f32.mxu1 %v10745_v57  ;;  %3235 = vmatprep.mubr.f32.mxu0 %v10745_v57  ;;  %v8641_v31 = vmax.f32 %v10780_v58, %v1957_v38  ;;  %v1968_v38 = vmax.f32 %v1536_v9, %v1786_v25  ;;  %v10788_v58 = vld [vmem:[#allocation21_spill] sm:$0xff]  ;;  %v2301_v9 = vsel %vm2051_vm13, %v8458_v1, %v2251_v41 }
 0x238   :  { %v8635_v19 = vpop.f32.mrf.mxu0  ;;  %2852 = vmatprep.subr.mxu1 %v2446_v47  ;;  %v1959_v60 = vmax.f32 %v1491_v55, %v1741_v36  ;;  %v10784_v47 = vld [vmem:[#allocation82_spill] sm:$0xff]  ;;  %v10787_v36 = vmax.f32 %v10785_v27, %v10786_v35  ;;  %v6529_v49 = vpop.eup %6528  ;;  %v1751_v25 = vadd.f32 %v8322_v10, %v8488_v52  ;;  %v1806_v1 = vadd.f32 %v8322_v10, %v8615_v14  ;;  %v2418_v52 = vld [vmem:[%s10547_s2 + $0xe8] sm:$0xff] }
 0x239   :  { %2853 = vmatpush1.msra.mxu1 %v2445_v61  ;;  %v2125_v39 = vmul.f32 1.442695, %v8641_v31  ;;  %v1546_v61 = vadd.f32 %v8322_v10, %v10784_v47  ;;  %v5290_v8 = vadd.f32 -1.0, %v6529_v49  ;;  %v2302_v14 = vsel %vm2052_vm14, %v8384_v50, %v2252_v44  ;;  %v2410_v49 = vld [vmem:[%s10547_s2 + $0xa8] sm:$0xff] }
 0x23a   :  { %v8649_v5 = vpop.f32.mrf.mxu0  ;;  %2646 = vmatmul.mubr.f32.gmra.mxu1 %v8629_v3  ;;  %3236 = vmatmul.mubr.f32.gmra.mxu0 %v8629_v3  ;;  %v8691_v29 = vmax.f32 %v10787_v36, %v1968_v38  ;;  %v10791_v38 = vld [vmem:[#allocation39_spill] sm:$0xff]  ;;  %v8734_v27 = vmul.f32 1.050701, %v2301_v9  ;;  %v6531_v44 = vpop.eup %6530  ;;  %v2409_v9 = vld [vmem:[%s10547_s2 + $0xa0] sm:$0xff]  ;;  %vm2057_vm3 = vcmp.gt.f32.partialorder %v8641_v31, 0.0 }
 0x23b   :  { %2649 = vmatprep.mubr.f32.mxu1 %v10745_v57  ;;  %3239 = vmatprep.mubr.f32.mxu0 %v10745_v57  ;;  %6534 = vpow2.f32 %v2125_v39  ;;  %v10794_v39 = vld [vmem:[#allocation75_spill] sm:$0xff] }
 0x23c   :  { %v8665_v13 = vpop.f32.mrf.mxu0  ;;  %2854 = vmatprep.subr.mxu1 %v2437_v15  ;;  %v10789_v15 = vld [vmem:[#allocation22_spill] sm:$0xff]  ;;  %v1501_v48 = vadd.f32 %v8322_v10, %v10794_v39  ;;  %6536 = vpow2.f32 %v2127_v40  ;;  %v2514_v50 = vld [vmem:[%s10547_s2 + $0x3e8] sm:$0xff]  ;;  %vm2068_vm14 = vcmp.gt.f32.partialorder %v8691_v29, 0.0 }
 0x23d   :  { %2855 = vmatpush1.msra.mxu1 %v2436_v42  ;;  %v10790_v26 = vmax.f32 %v10788_v58, %v10789_v15  ;;  %v1970_v42 = vmax.f32 %v1546_v61, %v1796_v51  ;;  %v10795_v51 = vld [vmem:[#allocation84_spill] sm:$0xff]  ;;  %v2253_v58 = vmul.f32 1.6732632, %v5289_v53  ;;  %v10796_v40 = vld [vmem:[#allocation86_spill] sm:$0xff]  ;;  %v8752_v53 = vmul.f32 1.050701, %v2302_v14 }
 0x23e   :  { %v8675_v62 = vpop.f32.mrf.mxu0  ;;  %2650 = vmatmul.mubr.f32.gmra.mxu1 %v8663_v21  ;;  %3240 = vmatmul.mubr.f32.gmra.mxu0 %v8663_v21  ;;  %v1961_v15 = vmax.f32 %v1501_v48, %v1751_v25  ;;  %v2254_v25 = vmul.f32 1.6732632, %v5290_v8  ;;  %v10801_v8 = vld [vmem:[#allocation26_spill] sm:$0xff] }
 0x23f   :  { %2654 = vmatprep.mubr.f32.mxu1 %v10745_v57  ;;  %3243 = vmatprep.mubr.f32.mxu0 %v10745_v57  ;;  %v8699_v55 = vmax.f32 %v10790_v26, %v1959_v60  ;;  %v2523_v60 = vld [vmem:[%s10547_s2 + $0x430] sm:$0xff]  ;;  %v1566_v26 = vadd.f32 %v8322_v10, %v10796_v40  ;;  %v2303_v48 = vsel %vm2053_vm15, %v8520_v11, %v2253_v58  ;;  %v2400_v11 = vld [vmem:[%s10547_s2 + $0x58] sm:$0xff] }
 0x240   :  { %v8701_v56 = vpop.f32.mrf.mxu0  ;;  %2856 = vmatprep.subr.mxu1 %v2428_v2  ;;  %v10792_v2 = vld [vmem:[#allocation40_spill] sm:$0xff]  ;;  %6076 = vmatprep.subr.mxu0 %v2523_v60  ;;  %v10803_v58 = vld [vmem:[#allocation77_spill] sm:$0xff] }
 0x241   :  { %2857 = vmatpush1.msra.mxu1 %v2427_v45  ;;  %v10793_v47 = vmax.f32 %v10791_v38, %v10792_v2  ;;  %v1556_v45 = vadd.f32 %v8322_v10, %v10795_v51  ;;  %v2129_v35 = vmul.f32 1.442695, %v8699_v55  ;;  %6077 = vmatpush3.msra.mxu0 %v2523_v60  ;;  %v2131_v38 = vmul.f32 1.442695, %v8547_v63 }
 0x242   :  { %v8719_v41 = vpop.f32.mrf.mxu0  ;;  %2655 = vmatmul.mubr.f32.gmra.mxu1 %v8685_v12  ;;  %3244 = vmatmul.mubr.f32.gmra.mxu0 %v8685_v12  ;;  %v1761_v2 = vadd.f32 %v8322_v10, %v8514_v7  ;;  %v5291_v51 = vadd.f32 -1.0, %v6531_v44  ;;  %v2401_v7 = vld [vmem:[%s10547_s2 + $0x60] sm:$0xff]  ;;  %v2304_v44 = vsel %vm2054_vm0, %v8420_v4, %v2254_v25  ;;  %v2496_v4 = vld [vmem:[%s10547_s2 + $0x358] sm:$0xff]  ;;  %vm2059_vm5 = vcmp.gt.f32.partialorder %v8699_v55, 0.0 }
 0x243   :  { %v8715_v61 = vmax.f32 %v10793_v47, %v1970_v42  ;;  %2659 = vmatprep.mubr.f32.mxu1 %v10745_v57  ;;  %3247 = vmatprep.mubr.f32.mxu0 %v10745_v57  ;;  %v1972_v42 = vmax.f32 %v1556_v45, %v1806_v1  ;;  %6538 = vpow2.f32 %v2129_v35  ;;  %v10797_v47 = vld [vmem:[#allocation43_spill] sm:$0xff]  ;;  %v10798_v1 = vld [vmem:[#allocation44_spill] sm:$0xff]  ;;  %v10800_v45 = vld [vmem:[#allocation25_spill] sm:$0xff] }
 0x244   :  { %v8737_v36 = vpop.f32.mrf.mxu0  ;;  %2858 = vmatprep.subr.mxu1 %v2419_v22  ;;  %v1816_v22 = vadd.f32 %v8322_v10, %v8649_v5  ;;  %6078 = vmatprep.subr.mxu0 %v2514_v50  ;;  %v6533_v5 = vpop.eup %6532  ;;  %v10802_v14 = vmax.f32 %v10800_v45, %v10801_v8  ;;  %6540 = vpow2.f32 %v2131_v38 }
 0x245   :  { %2859 = vmatpush1.msra.mxu1 %v2418_v52  ;;  %v10799_v52 = vmax.f32 %v10797_v47, %v10798_v1  ;;  %6079 = vmatpush3.msra.mxu0 %v2514_v50  ;;  %vm2070_vm0 = vcmp.gt.f32.partialorder %v8715_v61, 0.0 }
 0x246   :  { %2660 = vmatmul.mubr.f32.gmra.mxu1 %v8734_v27  ;;  %3248 = vmatmul.mubr.f32.gmra.mxu0 %v8734_v27  ;;  %v8757_v60 = vpop.f32.mrf.mxu0  ;;  %v8773_v40 = vmax.f32 %v10802_v14, %v1961_v15  ;;  %v1974_v35 = vmax.f32 %v1566_v26, %v1816_v22  ;;  %v1511_v15 = vadd.f32 %v8322_v10, %v10803_v58  ;;  %v8794_v26 = vmul.f32 1.050701, %v2303_v48  ;;  %v10806_v22 = vld [vmem:[#allocation48_spill] sm:$0xff] }
 0x247   :  { %2665 = vmatprep.mubr.f32.mxu1 %v10745_v57  ;;  %3252 = vmatprep.mubr.f32.mxu0 %v10745_v57  ;;  %v8767_v39 = vmax.f32 %v10799_v52, %v1972_v42  ;;  %v5292_v42 = vadd.f32 -1.0, %v6533_v5  ;;  %v2255_v52 = vmul.f32 1.6732632, %v5291_v51  ;;  %v10808_v5 = vld [vmem:[#allocation79_spill] sm:$0xff]  ;;  %v10809_v14 = vld [vmem:[#allocation88_spill] sm:$0xff]  ;;  %v1826_v58 = vadd.f32 %v8322_v10, %v8675_v62 }
 0x248   :  { %2860 = vmatprep.subr.mxu1 %v2410_v49  ;;  %v2505_v49 = vld [vmem:[%s10547_s2 + $0x3a0] sm:$0xff]  ;;  %v8789_v50 = vpop.f32.mrf.mxu0  ;;  %10804 = vst [vmem:[#allocation12_spill] sm:$0xff] %v8794_v26  ;;  %v2133_v45 = vmul.f32 1.442695, %v8773_v40  ;;  %v1963_v8 = vmax.f32 %v1511_v15, %v1761_v2  ;;  %v6535_v25 = vpop.eup %6534  ;;  %v1521_v48 = vadd.f32 %v8322_v10, %v10808_v5  ;;  %v1576_v38 = vadd.f32 %v8322_v10, %v10809_v14 }
 0x249   :  { %2861 = vmatpush1.msra.mxu1 %v2409_v9  ;;  %v10805_v9 = vld [vmem:[#allocation47_spill] sm:$0xff]  ;;  %6080 = vmatprep.subr.mxu0 %v2505_v49  ;;  %v2135_v51 = vmul.f32 1.442695, %v8555_v54  ;;  %v1771_v2 = vadd.f32 %v8322_v10, %v8540_v0  ;;  %v6537_v0 = vpop.eup %6536  ;;  %v2305_v15 = vsel %vm2055_vm1, %v8576_v37, %v2255_v52  ;;  %v2391_v37 = vld [vmem:[%s10547_s2 + $0x10] sm:$0xff]  ;;  %vm2061_vm7 = vcmp.gt.f32.partialorder %v8773_v40, 0.0 }
 0x24a   :  { %2666 = vmatmul.mubr.f32.gmra.mxu1 %v8752_v53  ;;  %3253 = vmatmul.mubr.f32.gmra.mxu0 %v8752_v53  ;;  %v10807_v47 = vmax.f32 %v10805_v9, %v10806_v22  ;;  %v5293_v9 = vadd.f32 -1.0, %v6535_v25  ;;  %6542 = vpow2.f32 %v2133_v45  ;;  %v10811_v22 = vld [vmem:[#allocation29_spill] sm:$0xff]  ;;  %v10817_v25 = vld [vmem:[#allocation52_spill] sm:$0xff] }
 0x24b   :  { %2671 = vmatprep.mubr.f32.mxu1 %v10745_v57  ;;  %3257 = vmatprep.mubr.f32.mxu0 %v10745_v57  ;;  %6544 = vpow2.f32 %v2135_v51  ;;  %v1965_v52 = vmax.f32 %v1521_v48, %v1771_v2 }
 0x24c   :  { %v8799_v1 = vmax.f32 %v10807_v47, %v1974_v35  ;;  %2862 = vmatprep.subr.mxu1 %v2401_v7  ;;  %6081 = vmatpush3.msra.mxu0 %v2505_v49  ;;  %v8814_v35 = vpop.f32.mrf.mxu0  ;;  %v2392_v7 = vld [vmem:[%s10547_s2 + $0x18] sm:$0xff]  ;;  %v8821_v49 = vmul.f32 1.050701, %v2304_v44  ;;  %v10812_v47 = vld [vmem:[#allocation30_spill] sm:$0xff]  ;;  %v2487_v44 = vld [vmem:[%s10547_s2 + $0x310] sm:$0xff] }
 0x24d   :  { %2863 = vmatpush1.msra.mxu1 %v2400_v11  ;;  %v2256_v11 = vmul.f32 1.6732632, %v5292_v42  ;;  %6082 = vmatprep.subr.mxu0 %v2496_v4  ;;  %v10813_v5 = vmax.f32 %v10811_v22, %v10812_v47  ;;  %v10814_v42 = vld [vmem:[#allocation90_spill] sm:$0xff]  ;;  %v2257_v51 = vmul.f32 1.6732632, %v5293_v9 }
 0x24e   :  { %2672 = vmatmul.mubr.f32.gmra.mxu1 %v8794_v26  ;;  %3258 = vmatmul.mubr.f32.gmra.mxu0 %v8794_v26  ;;  %10810 = vst [vmem:[#allocation13_spill] sm:$0xff] %v8821_v49  ;;  %v1586_v62 = vadd.f32 %v8322_v10, %v10814_v42  ;;  %v1976_v26 = vmax.f32 %v1576_v38, %v1826_v58  ;;  %v8845_v45 = vpop.f32.mrf.mxu0 }
 0x24f   :  { %2677 = vmatprep.mubr.f32.mxu1 %v10745_v57  ;;  %3263 = vmatprep.mubr.f32.mxu0 %v10745_v57  ;;  %v8830_v14 = vmax.f32 %v10813_v5, %v1963_v8  ;;  %v8849_v8 = vmul.f32 1.050701, %v2305_v15  ;;  %v2306_v48 = vsel %vm2056_vm2, %v8469_v20, %v2256_v11  ;;  %v2478_v15 = vld [vmem:[%s10547_s2 + $0x2c8] sm:$0xff]  ;;  %v2139_v5 = vmul.f32 1.442695, %v8601_v43  ;;  %v10821_v11 = vld [vmem:[#allocation56_spill] sm:$0xff] }
 0x250   :  { %2864 = vmatprep.subr.mxu1 %v2392_v7  ;;  %6083 = vmatpush3.msra.mxu0 %v2496_v4  ;;  %v1836_v7 = vadd.f32 %v8322_v10, %v8719_v41  ;;  %v5294_v41 = vadd.f32 -1.0, %v6537_v0  ;;  %v10816_v4 = vld [vmem:[#allocation51_spill] sm:$0xff]  ;;  %v6539_v47 = vpop.eup %6538  ;;  %vm2072_vm2 = vcmp.gt.f32.partialorder %v8767_v39, 0.0 }
 0x251   :  { %10815 = vst [vmem:[#allocation14_spill] sm:$0xff] %v8849_v8  ;;  %v10818_v38 = vmax.f32 %v10816_v4, %v10817_v25  ;;  %6084 = vmatprep.subr.mxu0 %v2487_v44  ;;  %2865 = vmatpush1.msra.mxu1 %v2391_v37  ;;  %v2137_v2 = vmul.f32 1.442695, %v8830_v14  ;;  %v10820_v20 = vld [vmem:[#allocation55_spill] sm:$0xff]  ;;  %v10824_v37 = vld [vmem:[#allocation33_spill] sm:$0xff]  ;;  %v10825_v4 = vld [vmem:[#allocation34_spill] sm:$0xff] }
 0x252   :  { %2678 = vmatmul.mubr.f32.gmra.mxu1 %v8821_v49  ;;  %3264 = vmatmul.mubr.f32.gmra.mxu0 %v8821_v49  ;;  %v1978_v22 = vmax.f32 %v1586_v62, %v1836_v7  ;;  %v10822_v9 = vmax.f32 %v10820_v20, %v10821_v11  ;;  %v8876_v62 = vmul.f32 1.050701, %v2306_v48  ;;  %v2258_v7 = vmul.f32 1.6732632, %v5294_v41  ;;  %v2469_v41 = vld [vmem:[%s10547_s2 + $0x280] sm:$0xff]  ;;  %v6541_v48 = vpop.eup %6540 }
 0x253   :  { %2683 = vmatprep.mubr.f32.mxu1 %v10745_v57  ;;  %3269 = vmatprep.mubr.f32.mxu0 %v10745_v57  ;;  %v8854_v58 = vmax.f32 %v10818_v38, %v1976_v26  ;;  %v10819_v26 = vld [vmem:[#allocation92_spill] sm:$0xff]  ;;  %v10826_v25 = vmax.f32 %v10824_v37, %v10825_v4  ;;  %v5295_v20 = vadd.f32 -1.0, %v6539_v47  ;;  %6546 = vpow2.f32 %v2137_v2 }
 0x254   :  { %6085 = vmatpush3.msra.mxu0 %v2487_v44  ;;  %v1596_v0 = vadd.f32 %v8322_v10, %v10819_v26  ;;  %v8870_v42 = vmax.f32 %v10822_v9, %v1978_v22  ;;  %v8872_v44 = vpop.f32.mrf.mxu0  ;;  %10823 = vst [vmem:[#allocation15_spill] sm:$0xff] %v8876_v62  ;;  %v1781_v26 = vadd.f32 %v8322_v10, %v8580_v16  ;;  %v10827_v9 = vld [vmem:[#allocation81_spill] sm:$0xff]  ;;  %v10828_v16 = vld [vmem:[#allocation94_spill] sm:$0xff]  ;;  %6548 = vpow2.f32 %v2139_v5  ;;  %v2531_v5 = vld [vmem:[%s10547_s2 + $0x470] sm:$0xff] }
 0x255   :  { %v8881_v38 = vmax.f32 %v10826_v25, %v1965_v52  ;;  %6086 = vmatprep.subr.mxu0 %v2478_v15  ;;  %v2307_v22 = vsel %vm2057_vm3, %v8641_v31, %v2257_v51  ;;  %v1846_v11 = vadd.f32 %v8322_v10, %v8757_v60  ;;  %v1531_v52 = vadd.f32 %v8322_v10, %v10827_v9  ;;  %v10831_v9 = vld [vmem:[#allocation59_spill] sm:$0xff] }
 0x256   :  { %2684 = vmatmul.mubr.f32.gmra.mxu1 %v8849_v8  ;;  %3270 = vmatmul.mubr.f32.gmra.mxu0 %v8849_v8  ;;  %v1606_v31 = vadd.f32 %v8322_v10, %v10828_v16  ;;  %v8898_v47 = vpop.f32.mrf.mxu0  ;;  %v8902_v51 = vmul.f32 1.050701, %v2307_v22  ;;  %v1856_v37 = vadd.f32 %v8322_v10, %v8814_v35  ;;  %v5296_v4 = vadd.f32 -1.0, %v6541_v48  ;;  %v10834_v48 = vld [vmem:[#allocation37_spill] sm:$0xff] }
 0x257   :  { %2688 = vmatprep.mubr.f32.mxu1 %v10745_v57  ;;  %3275 = vmatprep.mubr.f32.mxu0 %v10745_v57  ;;  %v1980_v60 = vmax.f32 %v1596_v0, %v1846_v11  ;;  %v2141_v2 = vmul.f32 1.442695, %v8881_v38  ;;  %v2308_v0 = vsel %vm2058_vm4, %v8496_v17, %v2258_v7  ;;  %v2259_v25 = vmul.f32 1.6732632, %v5295_v20  ;;  %v10830_v11 = vld [vmem:[#allocation58_spill] sm:$0xff]  ;;  %v6543_v35 = vpop.eup %6542 }
 0x258   :  { %6087 = vmatpush3.msra.mxu0 %v2478_v15  ;;  %10829 = vst [vmem:[#allocation20_spill] sm:$0xff] %v8902_v51  ;;  %v1967_v15 = vmax.f32 %v1531_v52, %v1781_v26  ;;  %v10832_v16 = vmax.f32 %v10830_v11, %v10831_v9  ;;  %v2460_v26 = vld [vmem:[%s10547_s2 + $0x238] sm:$0xff]  ;;  %3436 = vmatprep.subr.mxu1 %v2531_v5  ;;  %v2143_v17 = vmul.f32 1.442695, %v8625_v28  ;;  %v6070_v7 = vpop.f32.mrf.mxu0  ;;  %v6545_v20 = vpop.eup %6544  ;;  %v10838_v11 = vld [vmem:[#allocation62_spill] sm:$0xff]  ;;  %v5297_v8 = vadd.f32 -1.0, %v6543_v35 }
 0x259   :  { %6088 = vmatprep.subr.mxu0 %v2469_v41  ;;  %v1982_v52 = vmax.f32 %v1606_v31, %v1856_v37  ;;  %6550 = vpow2.f32 %v2141_v2  ;;  %v10837_v5 = vld [vmem:[#allocation61_spill] sm:$0xff]  ;;  %v2451_v2 = vld [vmem:[%s10547_s2 + $0x1f0] sm:$0xff]  ;;  %vm2063_vm9 = vcmp.gt.f32.partialorder %v8830_v14, 0.0  ;;  %vm2065_vm11 = vcmp.gt.f32.partialorder %v8881_v38, 0.0 }
 0x25a   :  { %2689 = vmatmul.mubr.f32.gmra.mxu1 %v8876_v62  ;;  %3276 = vmatmul.mubr.f32.gmra.mxu0 %v8876_v62  ;;  %v8914_v22 = vmax.f32 %v10832_v16, %v1980_v60  ;;  %v10835_v60 = vld [vmem:[#allocation38_spill] sm:$0xff]  ;;  %v10839_v9 = vmax.f32 %v10837_v5, %v10838_v11  ;;  %v2309_v62 = vsel %vm2059_vm5, %v8699_v55, %v2259_v25  ;;  %6552 = vpow2.f32 %v2143_v17 }
 0x25b   :  { %2693 = vmatprep.mubr.f32.mxu1 %v10745_v57  ;;  %3281 = vmatprep.mubr.f32.mxu0 %v10745_v57  ;;  %v10836_v31 = vmax.f32 %v10834_v48, %v10835_v60  ;;  %v10842_v55 = vld [vmem:[#allocation98_spill] sm:$0xff]  ;;  %v8956_v35 = vmul.f32 1.050701, %v2309_v62  ;;  %v2261_v5 = vmul.f32 1.6732632, %v5297_v8  ;;  %v2442_v62 = vld [vmem:[%s10547_s2 + $0x1a8] sm:$0xff] }
 0x25c   :  { %6089 = vmatpush3.msra.mxu0 %v2469_v41  ;;  %v8925_v41 = vmul.f32 1.050701, %v2308_v0  ;;  %v8935_v16 = vmax.f32 %v10839_v9, %v1982_v52  ;;  %v1791_v0 = vadd.f32 %v8322_v10, %v8608_v46  ;;  %v10841_v52 = vld [vmem:[#allocation96_spill] sm:$0xff]  ;;  %v1626_v25 = vadd.f32 %v8322_v10, %v10842_v55 }
 0x25d   :  { %v8930_v37 = vmax.f32 %v10836_v31, %v1967_v15  ;;  %6090 = vmatprep.subr.mxu0 %v2460_v26  ;;  %v10840_v15 = vld [vmem:[#allocation83_spill] sm:$0xff]  ;;  %v5298_v46 = vadd.f32 -1.0, %v6545_v20  ;;  %10843 = vst [vmem:[#allocation24_spill] sm:$0xff] %v8956_v35  ;;  %v8962_v31 = vld [vmem:[%s10545_s1 + $0x20] ss:$0 sm:$0xff]  ;;  %vm2074_vm4 = vcmp.gt.f32.partialorder %v8799_v1, 0.0 }
 0x25e   :  { %2694 = vmatmul.mubr.f32.gmra.mxu1 %v8902_v51  ;;  %3282 = vmatmul.mubr.f32.gmra.mxu0 %v8902_v51  ;;  %10833 = vst [vmem:[#allocation23_spill] sm:$0xff] %v8925_v41  ;;  %v2260_v51 = vmul.f32 1.6732632, %v5296_v4  ;;  %v1541_v48 = vadd.f32 %v8322_v10, %v10840_v15  ;;  %v1616_v4 = vadd.f32 %v8322_v10, %v10841_v52 }
 0x25f   :  { %2697 = vmatprep.mubr.f32.mxu1 %v10745_v57  ;;  %3286 = vmatprep.mubr.f32.mxu0 %v10745_v57  ;;  %v2145_v60 = vmul.f32 1.442695, %v8930_v37  ;;  %v1866_v10 = vadd.f32 %v8962_v31, %v8872_v44  ;;  %v1876_v9 = vadd.f32 %v8962_v31, %v6070_v7  ;;  %v2262_v52 = vmul.f32 1.6732632, %v5298_v46 }
 0x260   :  { %6091 = vmatpush3.msra.mxu0 %v2460_v26  ;;  %v8952_v26 = vpop.f32.mrf.mxu0  ;;  %v2310_v20 = vsel %vm2060_vm6, %v8547_v63, %v2260_v51  ;;  %v1969_v11 = vmax.f32 %v1541_v48, %v1791_v0  ;;  %v6547_v17 = vpop.eup %6546  ;;  %v2147_v63 = vmul.f32 1.442695, %v8691_v29  ;;  %v1801_v0 = vadd.f32 %v8962_v31, %v8635_v19  ;;  %v10845_v48 = vld [vmem:[#allocation65_spill] sm:$0xff] }
 0x261   :  { %6092 = vmatprep.subr.mxu0 %v2451_v2  ;;  %v1984_v15 = vmax.f32 %v1616_v4, %v1866_v10  ;;  %v1986_v8 = vmax.f32 %v1626_v25, %v1876_v9  ;;  %v6549_v51 = vpop.eup %6548  ;;  %v8976_v7 = vmul.f32 1.050701, %v2310_v20  ;;  %6554 = vpow2.f32 %v2145_v60  ;;  %v10847_v10 = vld [vmem:[#allocation41_spill] sm:$0xff]  ;;  %v10848_v9 = vld [vmem:[#allocation42_spill] sm:$0xff]  ;;  %v10850_v60 = vld [vmem:[#allocation67_spill] sm:$0xff] }
 0x262   :  { %2698 = vmatmul.mubr.f32.gmra.mxu1 %v8925_v41  ;;  %3287 = vmatmul.mubr.f32.gmra.mxu0 %v8925_v41  ;;  %v6073_v44 = vpop.f32.mrf.mxu0  ;;  %v2311_v25 = vsel %vm2061_vm7, %v8773_v40, %v2261_v5  ;;  %v5299_v46 = vadd.f32 -1.0, %v6547_v17  ;;  %v10851_v41 = vld [vmem:[#allocation68_spill] sm:$0xff]  ;;  %6556 = vpow2.f32 %v2147_v63  ;;  %v2312_v17 = vsel %vm2062_vm8, %v8555_v54, %v2262_v52 }
 0x263   :  { %2701 = vmatprep.mubr.f32.mxu1 %v10745_v57  ;;  %3291 = vmatprep.mubr.f32.mxu0 %v10745_v57  ;;  %v10852_v49 = vmax.f32 %v10850_v60, %v10851_v41  ;;  %v1886_v40 = vadd.f32 %v8962_v31, %v6073_v44  ;;  %v5300_v41 = vadd.f32 -1.0, %v6549_v51  ;;  %v2151_v63 = vmul.f32 1.442695, %v8715_v61  ;;  %v10855_v51 = vld [vmem:[#allocation45_spill] sm:$0xff]  ;;  %v10859_v60 = vld [vmem:[#allocation71_spill] sm:$0xff] }
 0x264   :  { %6093 = vmatpush3.msra.mxu0 %v2451_v2  ;;  %v10844_v2 = vld [vmem:[#allocation64_spill] sm:$0xff]  ;;  %v9023_v54 = vmul.f32 1.050701, %v2312_v17  ;;  %vm2067_vm13 = vcmp.gt.f32.partialorder %v8930_v37, 0.0  ;;  %vm2076_vm6 = vcmp.gt.f32.partialorder %v8854_v58, 0.0  ;;  %vm2078_vm8 = vcmp.gt.f32.partialorder %v8870_v42, 0.0 }
 0x265   :  { %v10846_v4 = vmax.f32 %v10844_v2, %v10845_v48  ;;  %6094 = vmatprep.subr.mxu0 %v2442_v62  ;;  %v8995_v19 = vmax.f32 %v10852_v49, %v1986_v8  ;;  %v10853_v2 = vld [vmem:[#allocation85_spill] sm:$0xff]  ;;  %v9010_v49 = vmul.f32 1.050701, %v2311_v25  ;;  %v2263_v8 = vmul.f32 1.6732632, %v5299_v46 }
 0x266   :  { %2702 = vmatmul.mubr.f32.gmra.mxu1 %v8956_v35  ;;  %3292 = vmatmul.mubr.f32.gmra.mxu0 %v8956_v35  ;;  %v10849_v35 = vmax.f32 %v10847_v10, %v10848_v9  ;;  %v1551_v48 = vadd.f32 %v8962_v31, %v10853_v2  ;;  %v2264_v52 = vmul.f32 1.6732632, %v5300_v41  ;;  %v10858_v9 = vld [vmem:[#allocation70_spill] sm:$0xff]  ;;  %v2415_v41 = vld [vmem:[%s10547_s2 + $0xd0] sm:$0xff] }
 0x267   :  { %2706 = vmatprep.mubr.f32.mxu1 %v10745_v57  ;;  %v8983_v55 = vmax.f32 %v10846_v4, %v1984_v15  ;;  %3295 = vmatprep.mubr.f32.mxu0 %v10745_v57  ;;  %v2433_v15 = vld [vmem:[%s10547_s2 + $0x160] sm:$0xff]  ;;  %v2424_v4 = vld [vmem:[%s10547_s2 + $0x118] sm:$0xff] }
 0x268   :  { %v8990_v20 = vmax.f32 %v10849_v35, %v1969_v11  ;;  %6095 = vmatpush3.msra.mxu0 %v2442_v62  ;;  %v10854_v35 = vld [vmem:[#allocation100_spill] sm:$0xff]  ;;  %v1971_v11 = vmax.f32 %v1551_v48, %v1801_v0  ;;  %v6551_v62 = vpop.eup %6550  ;;  %v10856_v0 = vld [vmem:[#allocation46_spill] sm:$0xff] }
 0x269   :  { %v1636_v5 = vadd.f32 %v8962_v31, %v10854_v35  ;;  %6096 = vmatprep.subr.mxu0 %v2433_v15  ;;  %v10857_v25 = vmax.f32 %v10855_v51, %v10856_v0  ;;  %v6553_v48 = vpop.eup %6552  ;;  %v5301_v35 = vadd.f32 -1.0, %v6551_v62  ;;  %v2406_v51 = vld [vmem:[%s10547_s2 + $0x88] sm:$0xff] }
 0x26a   :  { %2707 = vmatmul.mubr.f32.gmra.mxu1 %v8976_v7  ;;  %3296 = vmatmul.mubr.f32.gmra.mxu0 %v8976_v7  ;;  %v2149_v44 = vmul.f32 1.442695, %v8990_v20  ;;  %vm2069_vm15 = vcmp.gt.f32.partialorder %v8990_v20, 0.0 }
 0x26b   :  { %2711 = vmatprep.mubr.f32.mxu1 %v10745_v57  ;;  %3299 = vmatprep.mubr.f32.mxu0 %v10745_v57  ;;  %v1988_v10 = vmax.f32 %v1636_v5, %v1886_v40  ;;  %v9028_v46 = vmax.f32 %v10857_v25, %v1971_v11  ;;  %v2313_v40 = vsel %vm2063_vm9, %v8830_v14, %v2263_v8  ;;  %v10861_v11 = vld [vmem:[#allocation87_spill] sm:$0xff] }
 0x26c   :  { %6097 = vmatpush3.msra.mxu0 %v2433_v15  ;;  %v10860_v15 = vmax.f32 %v10858_v9, %v10859_v60  ;;  %6558 = vpow2.f32 %v2149_v44  ;;  %v1811_v5 = vadd.f32 %v8962_v31, %v8665_v13  ;;  %v1561_v17 = vadd.f32 %v8962_v31, %v10861_v11  ;;  %v10862_v60 = vld [vmem:[#allocation49_spill] sm:$0xff] }
 0x26d   :  { %6098 = vmatprep.subr.mxu0 %v2424_v4  ;;  %v9048_v14 = vmul.f32 1.050701, %v2313_v40  ;;  %v5302_v13 = vadd.f32 -1.0, %v6553_v48  ;;  %6560 = vpow2.f32 %v2151_v63  ;;  %v2153_v62 = vmul.f32 1.442695, %v9028_v46 }
 0x26e   :  { %2712 = vmatmul.mubr.f32.gmra.mxu1 %v9010_v49  ;;  %3300 = vmatmul.mubr.f32.gmra.mxu0 %v9010_v49  ;;  %v9033_v2 = vmax.f32 %v10860_v15, %v1988_v10  ;;  %v6555_v8 = vpop.eup %6554  ;;  %v2314_v44 = vsel %vm2064_vm10, %v8601_v43, %v2264_v52  ;;  %v1973_v10 = vmax.f32 %v1561_v17, %v1811_v5  ;;  %v2155_v52 = vmul.f32 1.442695, %v8767_v39  ;;  %v10863_v15 = vld [vmem:[#allocation50_spill] sm:$0xff] }
 0x26f   :  { %2717 = vmatprep.mubr.f32.mxu1 %v10745_v57  ;;  %3304 = vmatprep.mubr.f32.mxu0 %v10745_v57  ;;  %v9060_v63 = vmul.f32 1.050701, %v2314_v44  ;;  %v2266_v43 = vmul.f32 1.6732632, %v5302_v13  ;;  %6562 = vpow2.f32 %v2153_v62  ;;  %v6557_v0 = vpop.eup %6556  ;;  %v5303_v9 = vadd.f32 -1.0, %v6555_v8  ;;  %v2397_v5 = vld [vmem:[%s10547_s2 + $0x40] sm:$0xff] }
 0x270   :  { %6099 = vmatpush3.msra.mxu0 %v2424_v4  ;;  %v2265_v4 = vmul.f32 1.6732632, %v5301_v35  ;;  %v10864_v48 = vmax.f32 %v10862_v60, %v10863_v15  ;;  %v1821_v35 = vadd.f32 %v8962_v31, %v8701_v56  ;;  %v5304_v56 = vadd.f32 -1.0, %v6557_v0 }
 0x271   :  { %6100 = vmatprep.subr.mxu0 %v2415_v41  ;;  %6564 = vpow2.f32 %v2155_v52  ;;  %v2316_v17 = vsel %vm2066_vm12, %v8625_v28, %v2266_v43  ;;  %v2267_v13 = vmul.f32 1.6732632, %v5303_v9  ;;  %v2159_v28 = vmul.f32 1.442695, %v8799_v1  ;;  %v10867_v9 = vld [vmem:[#allocation54_spill] sm:$0xff] }
 0x272   :  { %2718 = vmatmul.mubr.f32.gmra.mxu1 %v9023_v54  ;;  %3305 = vmatmul.mubr.f32.gmra.mxu0 %v9023_v54  ;;  %v2315_v25 = vsel %vm2065_vm11, %v8881_v38, %v2265_v4  ;;  %v9067_v40 = vmax.f32 %v10864_v48, %v1973_v10  ;;  %v9090_v4 = vmul.f32 1.050701, %v2316_v17  ;;  %v2268_v10 = vmul.f32 1.6732632, %v5304_v56  ;;  %v10869_v48 = vld [vmem:[#allocation57_spill] sm:$0xff] }
 0x273   :  { %2723 = vmatprep.mubr.f32.mxu1 %v10745_v57  ;;  %3309 = vmatprep.mubr.f32.mxu0 %v10745_v57  ;;  %v9081_v11 = vmul.f32 1.050701, %v2315_v25  ;;  %v2317_v52 = vsel %vm2067_vm13, %v8930_v37, %v2267_v13  ;;  %v10866_v25 = vld [vmem:[#allocation53_spill] sm:$0xff]  ;;  %vm2071_vm1 = vcmp.gt.f32.partialorder %v9028_v46, 0.0  ;;  %vm2080_vm10 = vcmp.gt.f32.partialorder %v8914_v22, 0.0 }
 0x274   :  { %6101 = vmatpush3.msra.mxu0 %v2415_v41  ;;  %v10865_v41 = vld [vmem:[#allocation89_spill] sm:$0xff]  ;;  %v2157_v62 = vmul.f32 1.442695, %v9067_v40  ;;  %v10868_v60 = vmax.f32 %v10866_v25, %v10867_v9  ;;  %v1841_v9 = vadd.f32 %v8962_v31, %v8789_v50  ;;  %vm2073_vm3 = vcmp.gt.f32.partialorder %v9067_v40, 0.0 }
 0x275   :  { %6102 = vmatprep.subr.mxu0 %v2406_v51  ;;  %v1571_v38 = vadd.f32 %v8962_v31, %v10865_v41  ;;  %vm2082_vm12 = vcmp.gt.f32.partialorder %v8935_v16, 0.0 }
 0x276   :  { %2724 = vmatmul.mubr.f32.gmra.mxu1 %v9048_v14  ;;  %3310 = vmatmul.mubr.f32.gmra.mxu0 %v9048_v14  ;;  %6566 = vpow2.f32 %v2157_v62  ;;  %v2318_v62 = vsel %vm2068_vm14, %v8691_v29, %v2268_v10  ;;  %v2163_v29 = vmul.f32 1.442695, %v8854_v58  ;;  %vm2084_vm14 = vcmp.gt.f32.partialorder %v8983_v55, 0.0 }
 0x277   :  { %2729 = vmatprep.mubr.f32.mxu1 %v10745_v57  ;;  %3315 = vmatprep.mubr.f32.mxu0 %v10745_v57  ;;  %v1975_v8 = vmax.f32 %v1571_v38, %v1821_v35  ;;  %v1331_v35 = vadd.f32 %v8962_v31, %v10869_v48  ;;  %v9113_v38 = vmul.f32 1.050701, %v2317_v52  ;;  %6568 = vpow2.f32 %v2159_v28 }
 0x278   :  { %6103 = vmatpush3.msra.mxu0 %v2406_v51  ;;  %v1831_v51 = vadd.f32 %v8962_v31, %v8737_v36  ;;  %v10871_v36 = vld [vmem:[#allocation2_spill] sm:$0xff] }
 0x279   :  { %6104 = vmatprep.subr.mxu0 %v2397_v5  ;;  %v6559_v44 = vpop.eup %6558  ;;  %v9100_v15 = vmax.f32 %v10868_v60, %v1975_v8  ;;  %v1081_v37 = vadd.f32 %v8962_v31, %v10871_v36  ;;  %v10872_v60 = vld [vmem:[#allocation3_spill] sm:$0xff] }
 0x27a   :  { %2730 = vmatmul.mubr.f32.gmra.mxu1 %v9060_v63  ;;  %3316 = vmatmul.mubr.f32.gmra.mxu0 %v9060_v63  ;;  %v6561_v43 = vpop.eup %6560  ;;  %v5305_v0 = vadd.f32 -1.0, %v6559_v44  ;;  %v1091_v48 = vadd.f32 %v8962_v31, %v10872_v60 }
 0x27b   :  { %2735 = vmatprep.mubr.f32.mxu1 %v10745_v57  ;;  %3321 = vmatprep.mubr.f32.mxu0 %v10745_v57  ;;  %v5306_v56 = vadd.f32 -1.0, %v6561_v43  ;;  %v2161_v44 = vmul.f32 1.442695, %v9100_v15  ;;  %v1927_v25 = vmax.f32 %v1081_v37, %v1331_v35  ;;  %v9122_v43 = vmul.f32 1.050701, %v2318_v62  ;;  %v10873_v35 = vld [vmem:[#allocation60_spill] sm:$0xff] }
 0x27c   :  { %6105 = vmatpush3.msra.mxu0 %v2397_v5  ;;  %v10870_v5 = vld [vmem:[#allocation91_spill] sm:$0xff]  ;;  %v6563_v13 = vpop.eup %6562  ;;  %v2269_v8 = vmul.f32 1.6732632, %v5305_v0  ;;  %vm2075_vm5 = vcmp.gt.f32.partialorder %v9100_v15, 0.0 }
 0x27d   :  { %6286 = vmatprep.subr.mxu0 %v10745_v57  ;;  %v1581_v41 = vadd.f32 %v8962_v31, %v10870_v5  ;;  %v5307_v0 = vadd.f32 -1.0, %v6563_v13  ;;  %6570 = vpow2.f32 %v2161_v44  ;;  %v1341_v5 = vadd.f32 %v8962_v31, %v10873_v35 }
 0x27e   :  { %2736 = vmatmul.mubr.f32.gmra.mxu1 %v9081_v11  ;;  %3322 = vmatmul.mubr.f32.gmra.mxu0 %v9081_v11  ;;  %v6565_v28 = vpop.eup %6564  ;;  %v2319_v52 = vsel %vm2069_vm15, %v8990_v20, %v2269_v8  ;;  %6572 = vpow2.f32 %v2163_v29 }
 0x27f   :  { %2740 = vmatprep.mubr.f32.mxu1 %v10745_v57  ;;  %3327 = vmatprep.mubr.f32.mxu0 %v10745_v57  ;;  %v1977_v17 = vmax.f32 %v1581_v41, %v1831_v51  ;;  %v2270_v51 = vmul.f32 1.6732632, %v5306_v56  ;;  %v10874_v41 = vld [vmem:[#allocation93_spill] sm:$0xff]  ;;  %v9141_v50 = vmul.f32 1.050701, %v2319_v52  ;;  %v5308_v56 = vadd.f32 -1.0, %v6565_v28 }
 0x280   :  { %v1591_v36 = vadd.f32 %v8962_v31, %v10874_v41  ;;  %v1929_v8 = vmax.f32 %v1091_v48, %v1341_v5  ;;  %v10876_v48 = vld [vmem:[#allocation95_spill] sm:$0xff]  ;;  %v10877_v5 = vld [vmem:[#allocation4_spill] sm:$0xff] }
 0x281   :  { %v9125_v10 = vmax.f32 %v1927_v25, %v1977_v17  ;;  %v2320_v37 = vsel %vm2070_vm0, %v8715_v61, %v2270_v51  ;;  %v2271_v17 = vmul.f32 1.6732632, %v5307_v0  ;;  %v2167_v25 = vmul.f32 1.442695, %v8870_v42 }
 0x282   :  { %2741 = vmatmul.mubr.f32.gmra.mxu1 %v9090_v4  ;;  %3328 = vmatmul.mubr.f32.gmra.mxu0 %v9090_v4  ;;  %v1979_v13 = vmax.f32 %v1591_v36, %v1841_v9  ;;  %v9150_v44 = vmul.f32 1.050701, %v2320_v37  ;;  %v1851_v61 = vadd.f32 %v8962_v31, %v8845_v45  ;;  %v2272_v51 = vmul.f32 1.6732632, %v5308_v56  ;;  %v10875_v9 = vld [vmem:[#allocation63_spill] sm:$0xff] }
 0x283   :  { %2745 = vmatprep.mubr.f32.mxu1 %v10745_v57  ;;  %3333 = vmatprep.mubr.f32.mxu0 %v10745_v57  ;;  %v2165_v20 = vmul.f32 1.442695, %v9125_v10  ;;  %v6567_v62 = vpop.eup %6566  ;;  %v2321_v29 = vsel %vm2071_vm1, %v9028_v46, %v2271_v17  ;;  %v1351_v60 = vadd.f32 %v8962_v31, %v10875_v9  ;;  %v1601_v35 = vadd.f32 %v8962_v31, %v10876_v48 }
 0x284   :  { %v5309_v28 = vadd.f32 -1.0, %v6567_v62  ;;  %v9156_v52 = vmax.f32 %v1929_v8, %v1979_v13  ;;  %v6569_v0 = vpop.eup %6568  ;;  %v1101_v45 = vadd.f32 %v8962_v31, %v10877_v5  ;;  %v9169_v46 = vmul.f32 1.050701, %v2321_v29 }
 0x285   :  { %6574 = vpow2.f32 %v2165_v20  ;;  %v1981_v41 = vmax.f32 %v1601_v35, %v1851_v61  ;;  %v2322_v36 = vsel %vm2072_vm2, %v8767_v39, %v2272_v51  ;;  %v5310_v20 = vadd.f32 -1.0, %v6569_v0  ;;  %v10878_v0 = vld [vmem:[#allocation66_spill] sm:$0xff]  ;;  %v10880_v35 = vld [vmem:[#allocation5_spill] sm:$0xff] }
 0x286   :  { %2746 = vmatmul.mubr.f32.gmra.mxu1 %v9113_v38  ;;  %3334 = vmatmul.mubr.f32.gmra.mxu0 %v9113_v38  ;;  %6576 = vpow2.f32 %v2167_v25  ;;  %v2273_v37 = vmul.f32 1.6732632, %v5309_v28  ;;  %v2169_v56 = vmul.f32 1.442695, %v9156_v52  ;;  %v1931_v13 = vmax.f32 %v1101_v45, %v1351_v60  ;;  %v10879_v60 = vld [vmem:[#allocation97_spill] sm:$0xff] }
 0x287   :  { %2749 = vmatprep.mubr.f32.mxu1 %v10745_v57  ;;  %3338 = vmatprep.mubr.f32.mxu0 %v10745_v57  ;;  %v9178_v62 = vmul.f32 1.050701, %v2322_v36  ;;  %v2171_v39 = vmul.f32 1.442695, %v8914_v22  ;;  %v1861_v25 = vadd.f32 %v8962_v31, %v8898_v47  ;;  %v2274_v51 = vmul.f32 1.6732632, %v5310_v20 }
 0x288   :  { %v9181_v8 = vmax.f32 %v1931_v13, %v1981_v41  ;;  %v2323_v29 = vsel %vm2073_vm3, %v9067_v40, %v2273_v37  ;;  %6578 = vpow2.f32 %v2169_v56  ;;  %v1361_v9 = vadd.f32 %v8962_v31, %v10878_v0 }
 0x289   :  { %v1611_v48 = vadd.f32 %v8962_v31, %v10879_v60  ;;  %v1111_v5 = vadd.f32 %v8962_v31, %v10880_v35  ;;  %v9197_v47 = vmul.f32 1.050701, %v2323_v29  ;;  %6580 = vpow2.f32 %v2171_v39 }
 0x28a   :  { %2750 = vmatmul.mubr.f32.gmra.mxu1 %v9122_v43  ;;  %3339 = vmatmul.mubr.f32.gmra.mxu0 %v9122_v43  ;;  %v6571_v17 = vpop.eup %6570  ;;  %v2173_v40 = vmul.f32 1.442695, %v9181_v8  ;;  %v2324_v36 = vsel %vm2074_vm4, %v8799_v1, %v2274_v51  ;;  %v2175_v13 = vmul.f32 1.442695, %v8935_v16  ;;  %v1871_v29 = vadd.f32 %v8962_v31, %v8952_v26 }
 0x28b   :  { %2753 = vmatprep.mubr.f32.mxu1 %v10745_v57  ;;  %3343 = vmatprep.mubr.f32.mxu0 %v10745_v57  ;;  %v6573_v61 = vpop.eup %6572  ;;  %v5311_v28 = vadd.f32 -1.0, %v6571_v17  ;;  %v1983_v45 = vmax.f32 %v1611_v48, %v1861_v25  ;;  %v1933_v56 = vmax.f32 %v1111_v5, %v1361_v9  ;;  %v9206_v17 = vmul.f32 1.050701, %v2324_v36  ;;  %v10882_v9 = vld [vmem:[#allocation69_spill] sm:$0xff]  ;;  %v10883_v48 = vld [vmem:[#allocation99_spill] sm:$0xff] }
 0x28c   :  { %v5312_v20 = vadd.f32 -1.0, %v6573_v61  ;;  %6582 = vpow2.f32 %v2173_v40  ;;  %v1371_v60 = vadd.f32 %v8962_v31, %v10882_v9  ;;  %v1621_v35 = vadd.f32 %v8962_v31, %v10883_v48  ;;  %v10885_v9 = vld [vmem:[#allocation72_spill] sm:$0xff]  ;;  %v10886_v48 = vld [vmem:[#allocation101_spill] sm:$0xff] }
 0x28d   :  { %v2275_v37 = vmul.f32 1.6732632, %v5311_v28  ;;  %v9209_v39 = vmax.f32 %v1933_v56, %v1983_v45  ;;  %v10881_v28 = vld [vmem:[#allocation6_spill] sm:$0xff]  ;;  %6584 = vpow2.f32 %v2175_v13  ;;  %vm2077_vm7 = vcmp.gt.f32.partialorder %v9125_v10, 0.0 }
 0x28e   :  { %2754 = vmatmul.mubr.f32.gmra.mxu1 %v9141_v50  ;;  %3344 = vmatmul.mubr.f32.gmra.mxu0 %v9141_v50  ;;  %v2276_v25 = vmul.f32 1.6732632, %v5312_v20  ;;  %v1121_v0 = vadd.f32 %v8962_v31, %v10881_v28  ;;  %v1880_v20 = vpop.f32.mrf.mxu0  ;;  %v10884_v28 = vld [vmem:[#allocation7_spill] sm:$0xff]  ;;  %vm2079_vm9 = vcmp.gt.f32.partialorder %v9156_v52, 0.0  ;;  %vm2081_vm11 = vcmp.gt.f32.partialorder %v9181_v8, 0.0 }
 0x28f   :  { %2757 = vmatprep.mubr.f32.mxu1 %v10745_v57  ;;  %3347 = vmatprep.mubr.f32.mxu0 %v10745_v57  ;;  %v2325_v61 = vsel %vm2075_vm5, %v9100_v15, %v2275_v37  ;;  %v2177_v5 = vmul.f32 1.442695, %v9209_v39  ;;  %vm2083_vm13 = vcmp.gt.f32.partialorder %v9209_v39, 0.0  ;;  %vm2086_vm0 = vcmp.gt.f32.partialorder %v8995_v19, 0.0 }
 0x290   :  { %v9225_v26 = vmul.f32 1.050701, %v2325_v61  ;;  %v2326_v40 = vsel %vm2076_vm6, %v8854_v58, %v2276_v25  ;;  %v1935_v37 = vmax.f32 %v1121_v0, %v1371_v60  ;;  %v2179_v58 = vmul.f32 1.442695, %v8983_v55 }
 0x291   :  { %v9234_v56 = vmul.f32 1.050701, %v2326_v40  ;;  %6586 = vpow2.f32 %v2177_v5  ;;  %v1131_v0 = vadd.f32 %v8962_v31, %v10884_v28  ;;  %v1381_v60 = vadd.f32 %v8962_v31, %v10885_v9 }
 0x292   :  { %2758 = vmatmul.mubr.f32.gmra.mxu1 %v9150_v44  ;;  %3348 = vmatmul.mubr.f32.gmra.mxu0 %v9150_v44  ;;  %v6575_v41 = vpop.eup %6574  ;;  %6588 = vpow2.f32 %v2179_v58  ;;  %vm2088_vm2 = vcmp.gt.f32.partialorder %v9033_v2, 0.0 }
 0x293   :  { %2761 = vmatprep.mubr.f32.mxu1 %v10745_v57  ;;  %3351 = vmatprep.mubr.f32.mxu0 %v10745_v57  ;;  %v6577_v1 = vpop.eup %6576  ;;  %v5313_v51 = vadd.f32 -1.0, %v6575_v41  ;;  %v1985_v41 = vmax.f32 %v1621_v35, %v1871_v29  ;;  %v1881_v29 = vadd.f32 %v8962_v31, %v1880_v20  ;;  %v1631_v35 = vadd.f32 %v8962_v31, %v10886_v48 }
 0x294   :  { %v5314_v15 = vadd.f32 -1.0, %v6577_v1  ;;  %v1937_v31 = vmax.f32 %v1131_v0, %v1381_v60  ;;  %v2187_v48 = vmul.f32 1.442695, %v9033_v2 }
 0x295   :  { %v2277_v45 = vmul.f32 1.6732632, %v5313_v51  ;;  %v6579_v36 = vpop.eup %6578  ;;  %v9238_v51 = vmax.f32 %v1935_v37, %v1985_v41 }
 0x296   :  { %2762 = vmatmul.mubr.f32.gmra.mxu1 %v9169_v46  ;;  %3352 = vmatmul.mubr.f32.gmra.mxu0 %v9169_v46  ;;  %v2278_v1 = vmul.f32 1.6732632, %v5314_v15  ;;  %v6581_v13 = vpop.eup %6580  ;;  %v5315_v61 = vadd.f32 -1.0, %v6579_v36  ;;  %v1987_v36 = vmax.f32 %v1631_v35, %v1881_v29 }
 0x297   :  { %2765 = vmatprep.mubr.f32.mxu1 %v10745_v57  ;;  %3356 = vmatprep.mubr.f32.mxu0 %v10745_v57  ;;  %v2327_v25 = vsel %vm2077_vm7, %v9125_v10, %v2277_v45  ;;  %v5316_v15 = vadd.f32 -1.0, %v6581_v13  ;;  %v2181_v41 = vmul.f32 1.442695, %v9238_v51  ;;  %vm2085_vm15 = vcmp.gt.f32.partialorder %v9238_v51, 0.0 }
 0x298   :  { %v9252_v10 = vmul.f32 1.050701, %v2327_v25  ;;  %v2328_v40 = vsel %vm2078_vm8, %v8870_v42, %v2278_v1  ;;  %v2279_v45 = vmul.f32 1.6732632, %v5315_v61  ;;  %v2183_v42 = vmul.f32 1.442695, %v8995_v19 }
 0x299   :  { %v6583_v5 = vpop.eup %6582  ;;  %v9261_v20 = vmul.f32 1.050701, %v2328_v40  ;;  %v2280_v37 = vmul.f32 1.6732632, %v5316_v15  ;;  %6590 = vpow2.f32 %v2181_v41  ;;  %v9265_v13 = vmax.f32 %v1937_v31, %v1987_v36 }
 0x29a   :  { %2766 = vmatmul.mubr.f32.gmra.mxu1 %v9178_v62  ;;  %3357 = vmatmul.mubr.f32.gmra.mxu0 %v9178_v62  ;;  %v2329_v1 = vsel %vm2079_vm9, %v9156_v52, %v2279_v45  ;;  %v5317_v58 = vadd.f32 -1.0, %v6583_v5  ;;  %v6585_v25 = vpop.eup %6584  ;;  %6592 = vpow2.f32 %v2183_v42  ;;  %vm6619_vm7 = vmmov 0  }
 0x29b   :  { %2769 = vmatprep.mubr.f32.mxu1 %v10745_v57  ;;  %3361 = vmatprep.mubr.f32.mxu0 %v10745_v57  ;;  %v9272_v61 = vmul.f32 1.050701, %v2329_v1  ;;  %v2330_v52 = vsel %vm2080_vm10, %v8914_v22, %v2280_v37  ;;  %v5318_v28 = vadd.f32 -1.0, %v6585_v25  ;;  %v2185_v9 = vmul.f32 1.442695, %v9265_v13 }
 0x29c   :  { %v2281_v0 = vmul.f32 1.6732632, %v5317_v58  ;;  %v9280_v60 = vmul.f32 1.050701, %v2330_v52  ;;  %vm2087_vm1 = vcmp.gt.f32.partialorder %v9265_v13, 0.0 }
 0x29d   :  { %v2282_v22 = vmul.f32 1.6732632, %v5318_v28  ;;  %6594 = vpow2.f32 %v2185_v9 }
 0x29e   :  { %2770 = vmatmul.mubr.f32.gmra.mxu1 %v9197_v47  ;;  %3362 = vmatmul.mubr.f32.gmra.mxu0 %v9197_v47  ;;  %v6587_v29 = vpop.eup %6586  ;;  %v2331_v15 = vsel %vm2081_vm11, %v9181_v8, %v2281_v0  ;;  %6596 = vpow2.f32 %v2187_v48 }
 0x29f   :  { %2773 = vmatprep.mubr.f32.mxu1 %v10745_v57  ;;  %3367 = vmatprep.mubr.f32.mxu0 %v10745_v57  ;;  %v6589_v35 = vpop.eup %6588  ;;  %v5319_v5 = vadd.f32 -1.0, %v6587_v29  ;;  %v9290_v40 = vmul.f32 1.050701, %v2331_v15  ;;  %v2332_v45 = vsel %vm2082_vm12, %v8935_v16, %v2282_v22 }
 0x2a0   :  { %v5320_v41 = vadd.f32 -1.0, %v6589_v35  ;;  %v9297_v31 = vmul.f32 1.050701, %v2332_v45 }
 0x2a1   :  { %v2283_v36 = vmul.f32 1.6732632, %v5319_v5 }
 0x2a2   :  { %2774 = vmatmul.mubr.f32.gmra.mxu1 %v9206_v17  ;;  %3368 = vmatmul.mubr.f32.gmra.mxu0 %v9206_v17  ;;  %v2284_v42 = vmul.f32 1.6732632, %v5320_v41 }
 0x2a3   :  { %2777 = vmatprep.mubr.f32.mxu1 %v10745_v57  ;;  %3373 = vmatprep.mubr.f32.mxu0 %v10745_v57  ;;  %v2333_v16 = vsel %vm2083_vm13, %v9209_v39, %v2283_v36 }
 0x2a4   :  { %v9306_v58 = vmul.f32 1.050701, %v2333_v16  ;;  %v2334_v25 = vsel %vm2084_vm14, %v8983_v55, %v2284_v42 }
 0x2a5   :  { %v9313_v39 = vmul.f32 1.050701, %v2334_v25 }
 0x2a6   :  { %2778 = vmatmul.mubr.f32.gmra.mxu1 %v9225_v26  ;;  %3374 = vmatmul.mubr.f32.gmra.mxu0 %v9225_v26  ;;  %v6591_v8 = vpop.eup %6590 }
 0x2a7   :  { %2781 = vmatprep.mubr.f32.mxu1 %v10745_v57  ;;  %3379 = vmatprep.mubr.f32.mxu0 %v10745_v57  ;;  %v6593_v37 = vpop.eup %6592  ;;  %v5321_v1 = vadd.f32 -1.0, %v6591_v8 }
 0x2a8   :  { %v5322_v29 = vadd.f32 -1.0, %v6593_v37 }
 0x2a9   :  { %v2285_v52 = vmul.f32 1.6732632, %v5321_v1 }
 0x2aa   :  { %2782 = vmatmul.mubr.f32.gmra.mxu1 %v9234_v56  ;;  %3380 = vmatmul.mubr.f32.gmra.mxu0 %v9234_v56  ;;  %v6595_v28 = vpop.eup %6594  ;;  %v2286_v0 = vmul.f32 1.6732632, %v5322_v29 }
 0x2ab   :  { %2785 = vmatprep.mubr.f32.mxu1 %v10745_v57  ;;  %3385 = vmatprep.mubr.f32.mxu0 %v10745_v57  ;;  %v2335_v9 = vsel %vm2085_vm15, %v9238_v51, %v2285_v52  ;;  %v5323_v48 = vadd.f32 -1.0, %v6595_v28  ;;  %v6597_v55 = vpop.eup %6596  ;;  %v2530_v52 = vld [vmem:[%s10547_s2 + $0x468] sm:$0xff] }
 0x2ac   :  { %v9322_v35 = vmul.f32 1.050701, %v2335_v9  ;;  %v2336_v22 = vsel %vm2086_vm0, %v8995_v19, %v2286_v0  ;;  %v5324_v15 = vadd.f32 -1.0, %v6597_v55  ;;  %v2522_v28 = vld [vmem:[%s10547_s2 + $0x428] sm:$0xff] }
 0x2ad   :  { %v2287_v5 = vmul.f32 1.6732632, %v5323_v48  ;;  %v9329_v51 = vmul.f32 1.050701, %v2336_v22  ;;  %v2521_v48 = vld [vmem:[%s10547_s2 + $0x420] sm:$0xff] }
 0x2ae   :  { %2786 = vmatmul.mubr.f32.gmra.mxu1 %v9252_v10  ;;  %3386 = vmatmul.mubr.f32.gmra.mxu0 %v9252_v10  ;;  %v2288_v45 = vmul.f32 1.6732632, %v5324_v15 }
 0x2af   :  { %2789 = vmatprep.mubr.f32.mxu1 %v10745_v57  ;;  %3390 = vmatprep.mubr.f32.mxu0 %v10745_v57  ;;  %v2337_v41 = vsel %vm2087_vm1, %v9265_v13, %v2287_v5  ;;  %v2513_v5 = vld [vmem:[%s10547_s2 + $0x3e0] sm:$0xff] }
 0x2b0   :  { %v9338_v19 = vmul.f32 1.050701, %v2337_v41  ;;  %v2338_v36 = vsel %vm2088_vm2, %v9033_v2, %v2288_v45 }
 0x2b1   :  { %v9345_v13 = vmul.f32 1.050701, %v2338_v36  ;;  %v2512_v36 = vld [vmem:[%s10547_s2 + $0x3d8] sm:$0xff] }
 0x2b2   :  { %2790 = vmatmul.mubr.f32.gmra.mxu1 %v9261_v20  ;;  %3391 = vmatmul.mubr.f32.gmra.mxu0 %v9261_v20 }
 0x2b3   :  { %2793 = vmatprep.mubr.f32.mxu1 %v10745_v57  ;;  %3395 = vmatprep.mubr.f32.mxu0 %v10745_v57 }
 0x2b6   :  { %2794 = vmatmul.mubr.f32.gmra.mxu1 %v9272_v61  ;;  %3396 = vmatmul.mubr.f32.gmra.mxu0 %v9272_v61 }
 0x2b7   :  { %2797 = vmatprep.mubr.f32.mxu1 %v10745_v57  ;;  %3399 = vmatprep.mubr.f32.mxu0 %v10745_v57 }
 0x2ba   :  { %2798 = vmatmul.mubr.f32.gmra.mxu1 %v9280_v60  ;;  %3400 = vmatmul.mubr.f32.gmra.mxu0 %v9280_v60 }
 0x2bb   :  { %2801 = vmatprep.mubr.f32.mxu1 %v10745_v57  ;;  %3403 = vmatprep.mubr.f32.mxu0 %v10745_v57 }
 0x2be   :  { %2802 = vmatmul.mubr.f32.gmra.mxu1 %v9290_v40  ;;  %3404 = vmatmul.mubr.f32.gmra.mxu0 %v9290_v40 }
 0x2bf   :  { %2805 = vmatprep.mubr.f32.mxu1 %v10745_v57  ;;  %3407 = vmatprep.mubr.f32.mxu0 %v10745_v57 }
 0x2c2   :  { %2806 = vmatmul.mubr.f32.gmra.mxu1 %v9297_v31  ;;  %3408 = vmatmul.mubr.f32.gmra.mxu0 %v9297_v31 }
 0x2c3   :  { %2809 = vmatprep.mubr.f32.mxu1 %v10745_v57  ;;  %3411 = vmatprep.mubr.f32.mxu0 %v10745_v57 }
 0x2c6   :  { %2810 = vmatmul.mubr.f32.gmra.mxu1 %v9306_v58  ;;  %3412 = vmatmul.mubr.f32.gmra.mxu0 %v9306_v58 }
 0x2c7   :  { %2813 = vmatprep.mubr.f32.mxu1 %v10745_v57  ;;  %3415 = vmatprep.mubr.f32.mxu0 %v10745_v57 }
 0x2ca   :  { %2814 = vmatmul.mubr.f32.gmra.mxu1 %v9313_v39  ;;  %3416 = vmatmul.mubr.f32.gmra.mxu0 %v9313_v39 }
 0x2cb   :  { %2817 = vmatprep.mubr.f32.mxu1 %v10745_v57  ;;  %3419 = vmatprep.mubr.f32.mxu0 %v10745_v57 }
 0x2ce   :  { %2818 = vmatmul.mubr.f32.gmra.mxu1 %v9322_v35  ;;  %3420 = vmatmul.mubr.f32.gmra.mxu0 %v9322_v35 }
 0x2cf   :  { %2821 = vmatprep.mubr.f32.mxu1 %v10745_v57  ;;  %3423 = vmatprep.mubr.f32.mxu0 %v10745_v57 }
 0x2d2   :  { %2822 = vmatmul.mubr.f32.gmra.mxu1 %v9329_v51  ;;  %3424 = vmatmul.mubr.f32.gmra.mxu0 %v9329_v51 }
 0x2d3   :  { %2825 = vmatprep.mubr.f32.mxu1 %v10745_v57  ;;  %3427 = vmatprep.mubr.f32.mxu0 %v10745_v57 }
 0x2d6   :  { %v2599_v8 = vpop.f32.mrf.mxu1  ;;  %2826 = vmatmul.mubr.f32.gmra.mxu1 %v9338_v19  ;;  %v3201_v37 = vpop.f32.mrf.mxu0  ;;  %3428 = vmatmul.mubr.f32.gmra.mxu0 %v9338_v19 }
 0x2d7   :  { %2829 = vmatprep.mubr.f32.mxu1 %v10745_v57  ;;  %3431 = vmatprep.mubr.f32.mxu0 %v10745_v57 }
 0x2d8   :  { %v2601_v42 = vpop.f32.mrf.mxu1  ;;  %v3202_v16 = vpop.f32.mrf.mxu0 }
 0x2d9   :  { %v2504_v16 = vld [vmem:[%s10547_s2 + $0x398] sm:$0xff] }
 0x2da   :  { %v2604_v1 = vpop.f32.mrf.mxu1  ;;  %2830 = vmatmul.mubr.f32.gmra.mxu1 %v9345_v13  ;;  %v3205_v25 = vpop.f32.mrf.mxu0  ;;  %3432 = vmatmul.mubr.f32.gmra.mxu0 %v9345_v13 }
 0x2db   :  { %6106 = vmatprep.mubr.f32.mxu0 %v8372_v59  ;;  %2898 = vmatprep.mubr.f32.mxu1 %v10745_v57 }
 0x2dc   :  { %v2606_v2 = vpop.f32.mrf.mxu1  ;;  %v3206_v29 = vpop.f32.mrf.mxu0 }
 0x2dd   :  { %v2503_v29 = vld [vmem:[%s10547_s2 + $0x390] sm:$0xff] }
 0x2de   :  { %v2609_v0 = vpop.f32.mrf.mxu1  ;;  %2899 = vmatmul.mubr.f32.vlgmr.msra.gmra.mxu1 %v8372_v59  ;;  %v3209_v9 = vpop.f32.mrf.mxu0  ;;  %6107 = vmatmul.mubr.f32.vlgmr.msra.gmra.mxu0 %v8400_v33 }
 0x2df   :  { %3437 = vmatpush1.msra.mxu1 %v2530_v52  ;;  %6109 = vmatprep.mubr.f32.mxu0 %v8430_v32  ;;  %v2495_v9 = vld [vmem:[%s10547_s2 + $0x350] sm:$0xff] }
 0x2e0   :  { %v2611_v55 = vpop.f32.mrf.mxu1  ;;  %v3210_v22 = vpop.f32.mrf.mxu0  ;;  %2902 = vmatprep.mubr.f32.mxu1 %v10745_v57  ;;  %3438 = vmatprep.subr.mxu1 %v2522_v28 }
 0x2e1   :  { %v9364_v15 = vadd.f32 %v2611_v55, %v2599_v8  ;;  %3439 = vmatpush1.msra.mxu1 %v2521_v48  ;;  %v2494_v22 = vld [vmem:[%s10547_s2 + $0x348] sm:$0xff] }
 0x2e2   :  { %v2615_v45 = vpop.f32.mrf.mxu1  ;;  %2903 = vmatmul.mubr.f32.gmra.mxu1 %v8400_v33  ;;  %v3213_v41 = vpop.f32.mrf.mxu0  ;;  %6110 = vmatmul.mubr.f32.gmra.mxu0 %v8453_v6 }
 0x2e3   :  { %6112 = vmatprep.mubr.f32.mxu0 %v8485_v18  ;;  %2906 = vmatprep.mubr.f32.mxu1 %v10745_v57 }
 0x2e4   :  { %v2617_v8 = vpop.f32.mrf.mxu1  ;;  %v3214_v37 = vpop.f32.mrf.mxu0  ;;  %3440 = vmatprep.subr.mxu1 %v2513_v5 }
 0x2e5   :  { %v9376_v42 = vadd.f32 %v2617_v8, %v2604_v1  ;;  %3441 = vmatpush1.msra.mxu1 %v2512_v36  ;;  %v2486_v36 = vld [vmem:[%s10547_s2 + $0x308] sm:$0xff] }
 0x2e6   :  { %v2621_v25 = vpop.f32.mrf.mxu1  ;;  %2907 = vmatmul.mubr.f32.gmra.mxu1 %v8430_v32  ;;  %v3217_v2 = vpop.f32.mrf.mxu0  ;;  %6113 = vmatmul.mubr.f32.gmra.mxu0 %v8505_v34 }
 0x2e7   :  { %6115 = vmatprep.mubr.f32.mxu0 %v8538_v24  ;;  %2910 = vmatprep.mubr.f32.mxu1 %v10745_v57 }
 0x2e8   :  { %v2623_v1 = vpop.f32.mrf.mxu1  ;;  %v3218_v52 = vpop.f32.mrf.mxu0  ;;  %3442 = vmatprep.subr.mxu1 %v2504_v16  ;;  %v2485_v16 = vld [vmem:[%s10547_s2 + $0x300] sm:$0xff] }
 0x2e9   :  { %v9388_v28 = vadd.f32 %v2623_v1, %v2609_v0  ;;  %3443 = vmatpush1.msra.mxu1 %v2503_v29  ;;  %v2477_v1 = vld [vmem:[%s10547_s2 + $0x2c0] sm:$0xff] }
 0x2ea   :  { %v2627_v48 = vpop.f32.mrf.mxu1  ;;  %2911 = vmatmul.mubr.f32.gmra.mxu1 %v8453_v6  ;;  %v3221_v55 = vpop.f32.mrf.mxu0  ;;  %6116 = vmatmul.mubr.f32.gmra.mxu0 %v8571_v30 }
 0x2eb   :  { %6118 = vmatprep.mubr.f32.mxu0 %v8606_v23  ;;  %2914 = vmatprep.mubr.f32.mxu1 %v10745_v57  ;;  %v2476_v55 = vld [vmem:[%s10547_s2 + $0x2b8] sm:$0xff] }
 0x2ec   :  { %v2629_v0 = vpop.f32.mrf.mxu1  ;;  %v3222_v5 = vpop.f32.mrf.mxu0  ;;  %3444 = vmatprep.subr.mxu1 %v2495_v9 }
 0x2ed   :  { %v9400_v41 = vadd.f32 %v2629_v0, %v2615_v45  ;;  %3445 = vmatpush1.msra.mxu1 %v2494_v22  ;;  %v2468_v5 = vld [vmem:[%s10547_s2 + $0x278] sm:$0xff] }
 0x2ee   :  { %v2633_v8 = vpop.f32.mrf.mxu1  ;;  %2915 = vmatmul.mubr.f32.gmra.mxu1 %v8485_v18  ;;  %v3225_v37 = vpop.f32.mrf.mxu0  ;;  %6119 = vmatmul.mubr.f32.gmra.mxu0 %v8629_v3 }
 0x2ef   :  { %6121 = vmatprep.mubr.f32.mxu0 %v8663_v21  ;;  %2919 = vmatprep.mubr.f32.mxu1 %v10745_v57  ;;  %v2467_v37 = vld [vmem:[%s10547_s2 + $0x270] sm:$0xff] }
 0x2f0   :  { %v2634_v45 = vpop.f32.mrf.mxu1  ;;  %v3226_v2 = vpop.f32.mrf.mxu0  ;;  %3446 = vmatprep.subr.mxu1 %v2486_v36 }
 0x2f1   :  { %v9412_v29 = vadd.f32 %v2634_v45, %v2621_v25  ;;  %3447 = vmatpush1.msra.mxu1 %v2485_v16  ;;  %v10888_v16 = vld [vmem:[#allocation12_spill] sm:$0xff] }
 0x2f2   :  { %v2638_v52 = vpop.f32.mrf.mxu1  ;;  %2920 = vmatmul.mubr.f32.gmra.mxu1 %v8505_v34  ;;  %v3229_v9 = vpop.f32.mrf.mxu0  ;;  %6122 = vmatmul.mubr.f32.gmra.mxu0 %v8685_v12  ;;  %v2459_v2 = vld [vmem:[%s10547_s2 + $0x230] sm:$0xff] }
 0x2f3   :  { %6124 = vmatprep.mubr.f32.mxu0 %v8734_v27  ;;  %2924 = vmatprep.mubr.f32.mxu1 %v10745_v57  ;;  %v10889_v9 = vld [vmem:[#allocation13_spill] sm:$0xff] }
 0x2f4   :  { %v2639_v25 = vpop.f32.mrf.mxu1  ;;  %v3230_v22 = vpop.f32.mrf.mxu0  ;;  %3448 = vmatprep.subr.mxu1 %v2477_v1 }
 0x2f5   :  { %v9424_v0 = vadd.f32 %v2639_v25, %v2627_v48  ;;  %3449 = vmatpush1.msra.mxu1 %v2476_v55  ;;  %v2458_v55 = vld [vmem:[%s10547_s2 + $0x228] sm:$0xff]  ;;  %v10890_v25 = vld [vmem:[#allocation14_spill] sm:$0xff] }
 0x2f6   :  { %v2643_v36 = vpop.f32.mrf.mxu1  ;;  %2925 = vmatmul.mubr.f32.gmra.mxu1 %v8538_v24  ;;  %v3233_v8 = vpop.f32.mrf.mxu0  ;;  %6125 = vmatmul.mubr.f32.gmra.mxu0 %v8752_v53 }
 0x2f7   :  { %10887 = vst [vmem:[#allocation76_spill] sm:$0xff] %v9424_v0  ;;  %6127 = vmatprep.mubr.f32.mxu0 %v10888_v16  ;;  %2929 = vmatprep.mubr.f32.mxu1 %v10745_v57  ;;  %v2450_v36 = vld [vmem:[%s10547_s2 + $0x1e8] sm:$0xff]  ;;  %v10894_v0 = vld [vmem:[#allocation24_spill] sm:$0xff] }
 0x2f8   :  { %v2644_v48 = vpop.f32.mrf.mxu1  ;;  %v3234_v45 = vpop.f32.mrf.mxu0  ;;  %3450 = vmatprep.subr.mxu1 %v2468_v5 }
 0x2f9   :  { %3451 = vmatpush1.msra.mxu1 %v2467_v37  ;;  %v10891_v48 = vld [vmem:[#allocation15_spill] sm:$0xff]  ;;  %v2449_v45 = vld [vmem:[%s10547_s2 + $0x1e0] sm:$0xff] }
 0x2fa   :  { %v2647_v1 = vpop.f32.mrf.mxu1  ;;  %2930 = vmatmul.mubr.f32.gmra.mxu1 %v8571_v30  ;;  %v3237_v52 = vpop.f32.mrf.mxu0  ;;  %6128 = vmatmul.mubr.f32.gmra.mxu0 %v10889_v9  ;;  %v2422_v30 = vld [vmem:[%s10547_s2 + $0x108] sm:$0xff] }
 0x2fb   :  { %6130 = vmatprep.mubr.f32.mxu0 %v10890_v25  ;;  %2934 = vmatprep.mubr.f32.mxu1 %v10745_v57  ;;  %v10892_v1 = vld [vmem:[#allocation20_spill] sm:$0xff] }
 0x2fc   :  { %v2648_v22 = vpop.f32.mrf.mxu1  ;;  %v3238_v5 = vpop.f32.mrf.mxu0  ;;  %3452 = vmatprep.subr.mxu1 %v2459_v2 }
 0x2fd   :  { %3453 = vmatpush1.msra.mxu1 %v2458_v55  ;;  %v2441_v55 = vld [vmem:[%s10547_s2 + $0x1a0] sm:$0xff] }
 0x2fe   :  { %v2651_v8 = vpop.f32.mrf.mxu1  ;;  %2935 = vmatmul.mubr.f32.gmra.mxu1 %v8606_v23  ;;  %v3241_v37 = vpop.f32.mrf.mxu0  ;;  %6131 = vmatmul.mubr.f32.gmra.mxu0 %v10891_v48  ;;  %v2440_v23 = vld [vmem:[%s10547_s2 + $0x198] sm:$0xff] }
 0x2ff   :  { %6133 = vmatprep.mubr.f32.mxu0 %v10892_v1  ;;  %2939 = vmatprep.mubr.f32.mxu1 %v10745_v57  ;;  %v10893_v37 = vld [vmem:[#allocation23_spill] sm:$0xff] }
 0x300   :  { %v2653_v2 = vpop.f32.mrf.mxu1  ;;  %v3242_v52 = vpop.f32.mrf.mxu0  ;;  %3454 = vmatprep.subr.mxu1 %v2450_v36 }
 0x301   :  { %3455 = vmatpush1.msra.mxu1 %v2449_v45  ;;  %v2432_v2 = vld [vmem:[%s10547_s2 + $0x158] sm:$0xff] }
 0x302   :  { %v2656_v22 = vpop.f32.mrf.mxu1  ;;  %2940 = vmatmul.mubr.f32.gmra.mxu1 %v8629_v3  ;;  %v3245_v5 = vpop.f32.mrf.mxu0  ;;  %6134 = vmatmul.mubr.f32.gmra.mxu0 %v10893_v37  ;;  %v2431_v3 = vld [vmem:[%s10547_s2 + $0x150] sm:$0xff] }
 0x303   :  { %6136 = vmatprep.mubr.f32.mxu0 %v10894_v0  ;;  %2944 = vmatprep.mubr.f32.mxu1 %v10745_v57 }
 0x304   :  { %v2658_v36 = vpop.f32.mrf.mxu1  ;;  %v3246_v45 = vpop.f32.mrf.mxu0  ;;  %3456 = vmatprep.subr.mxu1 %v2441_v55 }
 0x305   :  { %3457 = vmatpush1.msra.mxu1 %v2440_v23  ;;  %v2423_v45 = vld [vmem:[%s10547_s2 + $0x110] sm:$0xff] }
 0x306   :  { %v2661_v52 = vpop.f32.mrf.mxu1  ;;  %2945 = vmatmul.mubr.f32.gmra.mxu1 %v8663_v21  ;;  %v9470_v5 = vpop.f32.mrf.mxu0  ;;  %6137 = vmatmul.mubr.f32.gmra.mxu0 %v8976_v7 }
 0x307   :  { %10895 = vst [vmem:[#allocation16_spill] sm:$0xff] %v9470_v5  ;;  %6139 = vmatprep.mubr.f32.mxu0 %v9010_v49  ;;  %2949 = vmatprep.mubr.f32.mxu1 %v10745_v57 }
 0x308   :  { %v2663_v23 = vpop.f32.mrf.mxu1  ;;  %v3251_v55 = vpop.f32.mrf.mxu0  ;;  %3458 = vmatprep.subr.mxu1 %v2432_v2 }
 0x309   :  { %v9478_v36 = vadd.f32 %v2663_v23, %v2651_v8  ;;  %3459 = vmatpush1.msra.mxu1 %v2431_v3  ;;  %v2414_v23 = vld [vmem:[%s10547_s2 + $0xc8] sm:$0xff] }
 0x30a   :  { %v2667_v5 = vpop.f32.mrf.mxu1  ;;  %2950 = vmatmul.mubr.f32.gmra.mxu1 %v8685_v12  ;;  %v9484_v21 = vpop.f32.mrf.mxu0  ;;  %6140 = vmatmul.mubr.f32.gmra.mxu0 %v9023_v54 }
 0x30b   :  { %10896 = vst [vmem:[#allocation17_spill] sm:$0xff] %v9478_v36  ;;  %10897 = vst [vmem:[#allocation78_spill] sm:$0xff] %v9484_v21  ;;  %6142 = vmatprep.mubr.f32.mxu0 %v9048_v14  ;;  %2954 = vmatprep.mubr.f32.mxu1 %v10745_v57  ;;  %v2413_v36 = vld [vmem:[%s10547_s2 + $0xc0] sm:$0xff] }
 0x30c   :  { %v2669_v3 = vpop.f32.mrf.mxu1  ;;  %v3256_v8 = vpop.f32.mrf.mxu0  ;;  %3460 = vmatprep.subr.mxu1 %v2423_v45 }
 0x30d   :  { %v9492_v2 = vadd.f32 %v2669_v3, %v2656_v22  ;;  %3461 = vmatpush1.msra.mxu1 %v2422_v30  ;;  %v2405_v3 = vld [vmem:[%s10547_s2 + $0x80] sm:$0xff] }
 0x30e   :  { %v2673_v55 = vpop.f32.mrf.mxu1  ;;  %2955 = vmatmul.mubr.f32.gmra.mxu1 %v8734_v27  ;;  %v9498_v21 = vpop.f32.mrf.mxu0  ;;  %6143 = vmatmul.mubr.f32.gmra.mxu0 %v9060_v63 }
 0x30f   :  { %10898 = vst [vmem:[#allocation73_spill] sm:$0xff] %v9492_v2  ;;  %10899 = vst [vmem:[#allocation27_spill] sm:$0xff] %v9498_v21  ;;  %6145 = vmatprep.mubr.f32.mxu0 %v9081_v11  ;;  %2959 = vmatprep.mubr.f32.mxu1 %v10745_v57  ;;  %v2404_v2 = vld [vmem:[%s10547_s2 + $0x78] sm:$0xff] }
 0x310   :  { %v2675_v30 = vpop.f32.mrf.mxu1  ;;  %v9506_v22 = vpop.f32.mrf.mxu0  ;;  %3462 = vmatprep.subr.mxu1 %v2414_v23 }
 0x311   :  { %10900 = vst [vmem:[#allocation28_spill] sm:$0xff] %v9506_v22  ;;  %v9508_v45 = vadd.f32 %v2675_v30, %v2661_v52  ;;  %3463 = vmatpush1.msra.mxu1 %v2413_v36 }
 0x312   :  { %v2679_v8 = vpop.f32.mrf.mxu1  ;;  %2960 = vmatmul.mubr.f32.gmra.mxu1 %v8752_v53  ;;  %v9514_v21 = vpop.f32.mrf.mxu0  ;;  %6146 = vmatmul.mubr.f32.gmra.mxu0 %v9090_v4 }
 0x313   :  { %10901 = vst [vmem:[#allocation31_spill] sm:$0xff] %v9508_v45  ;;  %10902 = vst [vmem:[#allocation32_spill] sm:$0xff] %v9514_v21  ;;  %6148 = vmatprep.mubr.f32.mxu0 %v9113_v38  ;;  %2964 = vmatprep.mubr.f32.mxu1 %v10745_v57 }
 0x314   :  { %v2681_v52 = vpop.f32.mrf.mxu1  ;;  %v9522_v36 = vpop.f32.mrf.mxu0  ;;  %3464 = vmatprep.subr.mxu1 %v2405_v3 }
 0x315   :  { %10903 = vst [vmem:[#allocation18_spill] sm:$0xff] %v9522_v36  ;;  %v9524_v23 = vadd.f32 %v2681_v52, %v2667_v5  ;;  %3465 = vmatpush1.msra.mxu1 %v2404_v2  ;;  %v2396_v5 = vld [vmem:[%s10547_s2 + $0x38] sm:$0xff] }
 0x316   :  { %v2685_v30 = vpop.f32.mrf.mxu1  ;;  %2965 = vmatmul.mubr.f32.gmra.mxu1 %v10888_v16  ;;  %v9527_v21 = vpop.f32.mrf.mxu0  ;;  %6149 = vmatmul.mubr.f32.gmra.mxu0 %v9122_v43 }
 0x317   :  { %10904 = vst [vmem:[#allocation19_spill] sm:$0xff] %v9527_v21  ;;  %6151 = vmatprep.mubr.f32.mxu0 %v9141_v50  ;;  %2970 = vmatprep.mubr.f32.mxu1 %v10745_v57  ;;  %v2395_v30 = vld [vmem:[%s10547_s2 + $0x30] sm:$0xff] }
 0x318   :  { %v2686_v22 = vpop.f32.mrf.mxu1  ;;  %v9532_v45 = vpop.f32.mrf.mxu0  ;;  %3466 = vmatprep.subr.mxu1 %v2396_v5 }
 0x319   :  { %10905 = vst [vmem:[#allocation74_spill] sm:$0xff] %v9532_v45  ;;  %v9537_v3 = vadd.f32 %v2686_v22, %v2673_v55  ;;  %3467 = vmatpush1.msra.mxu1 %v2395_v30 }
 0x31a   :  { %v2690_v2 = vpop.f32.mrf.mxu1  ;;  %2971 = vmatmul.mubr.f32.gmra.mxu1 %v10889_v9  ;;  %v9540_v52 = vpop.f32.mrf.mxu0  ;;  %6152 = vmatmul.mubr.f32.gmra.mxu0 %v9150_v44 }
 0x31b   :  { %10906 = vst [vmem:[#allocation80_spill] sm:$0xff] %v9540_v52  ;;  %6154 = vmatprep.mubr.f32.mxu0 %v9169_v46  ;;  %2976 = vmatprep.mubr.f32.mxu1 %v10745_v57 }
 0x31c   :  { %v2691_v21 = vpop.f32.mrf.mxu1  ;;  %v9548_v45 = vpop.f32.mrf.mxu0 }
 0x31d   :  { %10907 = vst [vmem:[#allocation82_spill] sm:$0xff] %v9548_v45  ;;  %v9550_v55 = vadd.f32 %v2691_v21, %v2679_v8 }
 0x31e   :  { %v2695_v22 = vpop.f32.mrf.mxu1  ;;  %2977 = vmatmul.mubr.f32.gmra.mxu1 %v10890_v25  ;;  %v3283_v5 = vpop.f32.mrf.mxu0  ;;  %6155 = vmatmul.mubr.f32.gmra.mxu0 %v9178_v62 }
 0x31f   :  { %6157 = vmatprep.mubr.f32.mxu0 %v9197_v47  ;;  %2981 = vmatprep.mubr.f32.mxu1 %v10745_v57 }
 0x320   :  { %v2696_v2 = vpop.f32.mrf.mxu1  ;;  %v9556_v52 = vpop.f32.mrf.mxu0 }
 0x321   :  { %10908 = vst [vmem:[#allocation35_spill] sm:$0xff] %v9556_v52 }
 0x322   :  { %v2699_v36 = vpop.f32.mrf.mxu1  ;;  %2982 = vmatmul.mubr.f32.gmra.mxu1 %v10891_v48  ;;  %v3288_v45 = vpop.f32.mrf.mxu0  ;;  %6158 = vmatmul.mubr.f32.gmra.mxu0 %v9206_v17 }
 0x323   :  { %6160 = vmatprep.mubr.f32.mxu0 %v9225_v26  ;;  %2986 = vmatprep.mubr.f32.mxu1 %v10745_v57 }
 0x324   :  { %v2700_v21 = vpop.f32.mrf.mxu1  ;;  %v9562_v8 = vpop.f32.mrf.mxu0 }
 0x325   :  { %10909 = vst [vmem:[#allocation36_spill] sm:$0xff] %v9562_v8 }
 0x326   :  { %v2703_v30 = vpop.f32.mrf.mxu1  ;;  %2987 = vmatmul.mubr.f32.gmra.mxu1 %v10892_v1  ;;  %v3293_v22 = vpop.f32.mrf.mxu0  ;;  %6161 = vmatmul.mubr.f32.gmra.mxu0 %v9234_v56 }
 0x327   :  { %6163 = vmatprep.mubr.f32.mxu0 %v9252_v10  ;;  %2991 = vmatprep.mubr.f32.mxu1 %v10745_v57 }
 0x328   :  { %v2705_v45 = vpop.f32.mrf.mxu1  ;;  %v3294_v36 = vpop.f32.mrf.mxu0 }
 0x32a   :  { %v2708_v5 = vpop.f32.mrf.mxu1  ;;  %2992 = vmatmul.mubr.f32.gmra.mxu1 %v10893_v37  ;;  %v3297_v2 = vpop.f32.mrf.mxu0  ;;  %6164 = vmatmul.mubr.f32.gmra.mxu0 %v9261_v20 }
 0x32b   :  { %6166 = vmatprep.mubr.f32.mxu0 %v9272_v61  ;;  %2996 = vmatprep.mubr.f32.mxu1 %v10745_v57 }
 0x32c   :  { %v2710_v21 = vpop.f32.mrf.mxu1  ;;  %v3298_v22 = vpop.f32.mrf.mxu0 }
 0x32e   :  { %v2713_v8 = vpop.f32.mrf.mxu1  ;;  %2997 = vmatmul.mubr.f32.gmra.mxu1 %v10894_v0  ;;  %v9573_v52 = vpop.f32.mrf.mxu0  ;;  %6167 = vmatmul.mubr.f32.gmra.mxu0 %v9280_v60 }
 0x32f   :  { %10910 = vst [vmem:[#allocation21_spill] sm:$0xff] %v9573_v52  ;;  %6169 = vmatprep.mubr.f32.mxu0 %v9290_v40  ;;  %3001 = vmatprep.mubr.f32.mxu1 %v10745_v57 }
 0x330   :  { %v2715_v45 = vpop.f32.mrf.mxu1  ;;  %v3303_v36 = vpop.f32.mrf.mxu0 }
 0x331   :  { %v9578_v2 = vadd.f32 %v2715_v45, %v2703_v30 }
 0x332   :  { %v2719_v37 = vpop.f32.mrf.mxu1  ;;  %3002 = vmatmul.mubr.f32.gmra.mxu1 %v8976_v7  ;;  %v9581_v21 = vpop.f32.mrf.mxu0  ;;  %6170 = vmatmul.mubr.f32.gmra.mxu0 %v9297_v31 }
 0x333   :  { %10911 = vst [vmem:[#allocation22_spill] sm:$0xff] %v9578_v2  ;;  %10912 = vst [vmem:[#allocation39_spill] sm:$0xff] %v9581_v21  ;;  %6172 = vmatprep.mubr.f32.mxu0 %v9306_v58  ;;  %3006 = vmatprep.mubr.f32.mxu1 %v10745_v57 }
 0x334   :  { %v2721_v22 = vpop.f32.mrf.mxu1  ;;  %v3308_v52 = vpop.f32.mrf.mxu0 }
 0x335   :  { %v9586_v0 = vadd.f32 %v2721_v22, %v2708_v5 }
 0x336   :  { %v2725_v1 = vpop.f32.mrf.mxu1  ;;  %3007 = vmatmul.mubr.f32.gmra.mxu1 %v9010_v49  ;;  %v9589_v30 = vpop.f32.mrf.mxu0  ;;  %6173 = vmatmul.mubr.f32.gmra.mxu0 %v9313_v39 }
 0x337   :  { %10913 = vst [vmem:[#allocation40_spill] sm:$0xff] %v9586_v0  ;;  %10914 = vst [vmem:[#allocation75_spill] sm:$0xff] %v9589_v30  ;;  %6175 = vmatprep.mubr.f32.mxu0 %v9322_v35  ;;  %3011 = vmatprep.mubr.f32.mxu1 %v10745_v57 }
 0x338   :  { %v2727_v45 = vpop.f32.mrf.mxu1  ;;  %v9594_v36 = vpop.f32.mrf.mxu0 }
 0x339   :  { %10915 = vst [vmem:[#allocation84_spill] sm:$0xff] %v9594_v36  ;;  %v9596_v21 = vadd.f32 %v2727_v45, %v2713_v8 }
 0x33a   :  { %v2731_v2 = vpop.f32.mrf.mxu1  ;;  %3012 = vmatmul.mubr.f32.gmra.mxu1 %v9023_v54  ;;  %v9599_v52 = vpop.f32.mrf.mxu0  ;;  %6176 = vmatmul.mubr.f32.gmra.mxu0 %v9329_v51 }
 0x33b   :  { %10916 = vst [vmem:[#allocation86_spill] sm:$0xff] %v9596_v21  ;;  %10917 = vst [vmem:[#allocation43_spill] sm:$0xff] %v9599_v52  ;;  %6178 = vmatprep.mubr.f32.mxu0 %v9338_v19  ;;  %3016 = vmatprep.mubr.f32.mxu1 %v10745_v57 }
 0x33c   :  { %v2733_v5 = vpop.f32.mrf.mxu1  ;;  %v9604_v22 = vpop.f32.mrf.mxu0 }
 0x33d   :  { %10918 = vst [vmem:[#allocation44_spill] sm:$0xff] %v9604_v22  ;;  %v9606_v30 = vadd.f32 %v2733_v5, %v2719_v37 }
 0x33e   :  { %v2737_v0 = vpop.f32.mrf.mxu1  ;;  %3017 = vmatmul.mubr.f32.gmra.mxu1 %v9048_v14  ;;  %v9609_v8 = vpop.f32.mrf.mxu0  ;;  %6179 = vmatmul.mubr.f32.gmra.mxu0 %v9345_v13 }
 0x33f   :  { %10919 = vst [vmem:[#allocation25_spill] sm:$0xff] %v9606_v30  ;;  %10920 = vst [vmem:[#allocation26_spill] sm:$0xff] %v9609_v8  ;;  %3022 = vmatprep.mubr.f32.mxu1 %v10745_v57  ;;  %6318 = vmatprep.mubr.msk.f32.mxu0 %vm6619_vm7, %v10745_v57 }
 0x340   :  { %v2738_v45 = vpop.f32.mrf.mxu1  ;;  %v9613_v52 = vpop.f32.mrf.mxu0 }
 0x341   :  { %10921 = vst [vmem:[#allocation77_spill] sm:$0xff] %v9613_v52  ;;  %v9615_v36 = vadd.f32 %v2738_v45, %v2725_v1 }
 0x342   :  { %v2742_v21 = vpop.f32.mrf.mxu1  ;;  %3023 = vmatmul.mubr.f32.gmra.mxu1 %v9060_v63  ;;  %v9618_v22 = vpop.f32.mrf.mxu0 }
 0x343   :  { %10922 = vst [vmem:[#allocation47_spill] sm:$0xff] %v9615_v36  ;;  %10923 = vst [vmem:[#allocation48_spill] sm:$0xff] %v9618_v22  ;;  %3028 = vmatprep.mubr.f32.mxu1 %v10745_v57 }
 0x344   :  { %v2743_v0 = vpop.f32.mrf.mxu1  ;;  %v9621_v37 = vpop.f32.mrf.mxu0 }
 0x345   :  { %10924 = vst [vmem:[#allocation79_spill] sm:$0xff] %v9621_v37  ;;  %v9623_v5 = vadd.f32 %v2743_v0, %v2731_v2 }
 0x346   :  { %v2747_v8 = vpop.f32.mrf.mxu1  ;;  %3029 = vmatmul.mubr.f32.gmra.mxu1 %v9081_v11  ;;  %v3335_v30 = vpop.f32.mrf.mxu0 }
 0x347   :  { %3033 = vmatprep.mubr.f32.mxu1 %v10745_v57 }
 0x348   :  { %v2748_v1 = vpop.f32.mrf.mxu1  ;;  %v9627_v45 = vpop.f32.mrf.mxu0 }
 0x349   :  { %10925 = vst [vmem:[#allocation88_spill] sm:$0xff] %v9627_v45 }
 0x34a   :  { %v2751_v21 = vpop.f32.mrf.mxu1  ;;  %3034 = vmatmul.mubr.f32.gmra.mxu1 %v9090_v4  ;;  %v3340_v22 = vpop.f32.mrf.mxu0 }
 0x34b   :  { %3038 = vmatprep.mubr.f32.mxu1 %v10745_v57 }
 0x34c   :  { %v2752_v52 = vpop.f32.mrf.mxu1  ;;  %v9631_v36 = vpop.f32.mrf.mxu0 }
 0x34d   :  { %10926 = vst [vmem:[#allocation29_spill] sm:$0xff] %v9631_v36 }
 0x34e   :  { %v2755_v2 = vpop.f32.mrf.mxu1  ;;  %3039 = vmatmul.mubr.f32.gmra.mxu1 %v9113_v38  ;;  %v3345_v8 = vpop.f32.mrf.mxu0 }
 0x34f   :  { %3043 = vmatprep.mubr.f32.mxu1 %v10745_v57 }
 0x350   :  { %v2756_v30 = vpop.f32.mrf.mxu1  ;;  %v3346_v0 = vpop.f32.mrf.mxu0 }
 0x352   :  { %v2759_v1 = vpop.f32.mrf.mxu1  ;;  %3044 = vmatmul.mubr.f32.gmra.mxu1 %v9122_v43  ;;  %v3349_v21 = vpop.f32.mrf.mxu0 }
 0x353   :  { %3048 = vmatprep.mubr.f32.mxu1 %v10745_v57 }
 0x354   :  { %v2760_v22 = vpop.f32.mrf.mxu1  ;;  %v3350_v45 = vpop.f32.mrf.mxu0 }
 0x356   :  { %v2763_v37 = vpop.f32.mrf.mxu1  ;;  %3049 = vmatmul.mubr.f32.gmra.mxu1 %v9141_v50  ;;  %v9638_v52 = vpop.f32.mrf.mxu0 }
 0x357   :  { %10927 = vst [vmem:[#allocation30_spill] sm:$0xff] %v9638_v52  ;;  %3053 = vmatprep.mubr.f32.mxu1 %v10745_v57 }
 0x358   :  { %v2764_v2 = vpop.f32.mrf.mxu1  ;;  %v3355_v8 = vpop.f32.mrf.mxu0 }
 0x35a   :  { %v2767_v36 = vpop.f32.mrf.mxu1  ;;  %3054 = vmatmul.mubr.f32.gmra.mxu1 %v9150_v44  ;;  %v9642_v30 = vpop.f32.mrf.mxu0 }
 0x35b   :  { %10928 = vst [vmem:[#allocation90_spill] sm:$0xff] %v9642_v30  ;;  %3058 = vmatprep.mubr.f32.mxu1 %v10745_v57 }
 0x35c   :  { %v2768_v0 = vpop.f32.mrf.mxu1  ;;  %v3360_v1 = vpop.f32.mrf.mxu0 }
 0x35e   :  { %v2771_v21 = vpop.f32.mrf.mxu1  ;;  %3059 = vmatmul.mubr.f32.gmra.mxu1 %v9169_v46  ;;  %v9646_v37 = vpop.f32.mrf.mxu0 }
 0x35f   :  { %10929 = vst [vmem:[#allocation51_spill] sm:$0xff] %v9646_v37  ;;  %3063 = vmatprep.mubr.f32.mxu1 %v10745_v57 }
 0x360   :  { %v2772_v45 = vpop.f32.mrf.mxu1  ;;  %v9649_v22 = vpop.f32.mrf.mxu0 }
 0x361   :  { %10930 = vst [vmem:[#allocation52_spill] sm:$0xff] %v9649_v22 }
 0x362   :  { %v2775_v2 = vpop.f32.mrf.mxu1  ;;  %3064 = vmatmul.mubr.f32.gmra.mxu1 %v9178_v62  ;;  %v9652_v36 = vpop.f32.mrf.mxu0 }
 0x363   :  { %10931 = vst [vmem:[#allocation92_spill] sm:$0xff] %v9652_v36  ;;  %3068 = vmatprep.mubr.f32.mxu1 %v10745_v57 }
 0x364   :  { %v2776_v8 = vpop.f32.mrf.mxu1  ;;  %v9655_v0 = vpop.f32.mrf.mxu0 }
 0x365   :  { %10932 = vst [vmem:[#allocation55_spill] sm:$0xff] %v9655_v0 }
 0x366   :  { %v2779_v1 = vpop.f32.mrf.mxu1  ;;  %3069 = vmatmul.mubr.f32.gmra.mxu1 %v9197_v47  ;;  %v9658_v21 = vpop.f32.mrf.mxu0 }
 0x367   :  { %10933 = vst [vmem:[#allocation56_spill] sm:$0xff] %v9658_v21  ;;  %3073 = vmatprep.mubr.f32.mxu1 %v10745_v57 }
 0x368   :  { %v2780_v45 = vpop.f32.mrf.mxu1  ;;  %v9661_v37 = vpop.f32.mrf.mxu0 }
 0x369   :  { %10934 = vst [vmem:[#allocation33_spill] sm:$0xff] %v9661_v37 }
 0x36a   :  { %v2783_v2 = vpop.f32.mrf.mxu1  ;;  %3074 = vmatmul.mubr.f32.gmra.mxu1 %v9206_v17  ;;  %v9664_v22 = vpop.f32.mrf.mxu0 }
 0x36b   :  { %10935 = vst [vmem:[#allocation34_spill] sm:$0xff] %v9664_v22  ;;  %3078 = vmatprep.mubr.f32.mxu1 %v10745_v57 }
 0x36c   :  { %v2784_v8 = vpop.f32.mrf.mxu1  ;;  %v9667_v36 = vpop.f32.mrf.mxu0 }
 0x36d   :  { %10936 = vst [vmem:[#allocation81_spill] sm:$0xff] %v9667_v36 }
 0x36e   :  { %v2787_v1 = vpop.f32.mrf.mxu1  ;;  %3079 = vmatmul.mubr.f32.gmra.mxu1 %v9225_v26  ;;  %v3387_v0 = vpop.f32.mrf.mxu0 }
 0x36f   :  { %3082 = vmatprep.mubr.f32.mxu1 %v10745_v57 }
 0x370   :  { %v2788_v21 = vpop.f32.mrf.mxu1  ;;  %v9671_v45 = vpop.f32.mrf.mxu0 }
 0x371   :  { %10937 = vst [vmem:[#allocation94_spill] sm:$0xff] %v9671_v45 }
 0x372   :  { %v2791_v37 = vpop.f32.mrf.mxu1  ;;  %3083 = vmatmul.mubr.f32.gmra.mxu1 %v9234_v56  ;;  %v3392_v2 = vpop.f32.mrf.mxu0 }
 0x373   :  { %3086 = vmatprep.mubr.f32.mxu1 %v10745_v57 }
 0x374   :  { %v2792_v22 = vpop.f32.mrf.mxu1  ;;  %v9675_v30 = vpop.f32.mrf.mxu0 }
 0x375   :  { %10938 = vst [vmem:[#allocation58_spill] sm:$0xff] %v9675_v30 }
 0x376   :  { %v2795_v8 = vpop.f32.mrf.mxu1  ;;  %3087 = vmatmul.mubr.f32.gmra.mxu1 %v9252_v10  ;;  %v3397_v1 = vpop.f32.mrf.mxu0 }
 0x377   :  { %3090 = vmatprep.mubr.f32.mxu1 %v10745_v57 }
 0x378   :  { %v2796_v0 = vpop.f32.mrf.mxu1  ;;  %v3398_v36 = vpop.f32.mrf.mxu0 }
 0x37a   :  { %v2799_v21 = vpop.f32.mrf.mxu1  ;;  %3091 = vmatmul.mubr.f32.gmra.mxu1 %v9261_v20  ;;  %v3401_v37 = vpop.f32.mrf.mxu0 }
 0x37b   :  { %3094 = vmatprep.mubr.f32.mxu1 %v10745_v57 }
 0x37c   :  { %v2800_v2 = vpop.f32.mrf.mxu1  ;;  %v3402_v45 = vpop.f32.mrf.mxu0 }
 0x37e   :  { %v2803_v52 = vpop.f32.mrf.mxu1  ;;  %3095 = vmatmul.mubr.f32.gmra.mxu1 %v9272_v61  ;;  %v3405_v22 = vpop.f32.mrf.mxu0 }
 0x37f   :  { %3098 = vmatprep.mubr.f32.mxu1 %v10745_v57 }
 0x380   :  { %v2804_v8 = vpop.f32.mrf.mxu1  ;;  %v3406_v1 = vpop.f32.mrf.mxu0 }
 0x382   :  { %v2807_v30 = vpop.f32.mrf.mxu1  ;;  %3099 = vmatmul.mubr.f32.gmra.mxu1 %v9280_v60  ;;  %v3409_v36 = vpop.f32.mrf.mxu0 }
 0x383   :  { %3102 = vmatprep.mubr.f32.mxu1 %v10745_v57 }
 0x384   :  { %v2808_v0 = vpop.f32.mrf.mxu1  ;;  %v3410_v21 = vpop.f32.mrf.mxu0 }
 0x386   :  { %v2811_v37 = vpop.f32.mrf.mxu1  ;;  %3103 = vmatmul.mubr.f32.gmra.mxu1 %v9290_v40  ;;  %v3413_v45 = vpop.f32.mrf.mxu0 }
 0x387   :  { %3106 = vmatprep.mubr.f32.mxu1 %v10745_v57 }
 0x388   :  { %v2812_v52 = vpop.f32.mrf.mxu1  ;;  %v3414_v2 = vpop.f32.mrf.mxu0 }
 0x38a   :  { %v2815_v22 = vpop.f32.mrf.mxu1  ;;  %3107 = vmatmul.mubr.f32.gmra.mxu1 %v9297_v31  ;;  %v3417_v8 = vpop.f32.mrf.mxu0 }
 0x38b   :  { %3110 = vmatprep.mubr.f32.mxu1 %v10745_v57 }
 0x38c   :  { %v2816_v30 = vpop.f32.mrf.mxu1  ;;  %v3418_v1 = vpop.f32.mrf.mxu0 }
 0x38e   :  { %v2819_v36 = vpop.f32.mrf.mxu1  ;;  %3111 = vmatmul.mubr.f32.gmra.mxu1 %v9306_v58  ;;  %v3421_v0 = vpop.f32.mrf.mxu0 }
 0x38f   :  { %3114 = vmatprep.mubr.f32.mxu1 %v10745_v57 }
 0x390   :  { %v2820_v21 = vpop.f32.mrf.mxu1  ;;  %v3422_v37 = vpop.f32.mrf.mxu0 }
 0x392   :  { %v2823_v45 = vpop.f32.mrf.mxu1  ;;  %3115 = vmatmul.mubr.f32.gmra.mxu1 %v9313_v39  ;;  %v3425_v52 = vpop.f32.mrf.mxu0 }
 0x393   :  { %3118 = vmatprep.mubr.f32.mxu1 %v10745_v57 }
 0x394   :  { %v2824_v2 = vpop.f32.mrf.mxu1  ;;  %v3426_v22 = vpop.f32.mrf.mxu0 }
 0x396   :  { %v2827_v8 = vpop.f32.mrf.mxu1  ;;  %3119 = vmatmul.mubr.f32.gmra.mxu1 %v9322_v35  ;;  %v3429_v30 = vpop.f32.mrf.mxu0 }
 0x397   :  { %3122 = vmatprep.mubr.f32.mxu1 %v10745_v57 }
 0x398   :  { %v2828_v1 = vpop.f32.mrf.mxu1  ;;  %v3430_v36 = vpop.f32.mrf.mxu0 }
 0x39a   :  { %v2831_v0 = vpop.f32.mrf.mxu1  ;;  %3123 = vmatmul.mubr.f32.gmra.mxu1 %v9329_v51  ;;  %v3433_v21 = vpop.f32.mrf.mxu0 }
 0x39b   :  { %3126 = vmatprep.mubr.f32.mxu1 %v10745_v57 }
 0x39c   :  { %v2832_v37 = vpop.f32.mrf.mxu1  ;;  %v3434_v45 = vpop.f32.mrf.mxu0 }
 0x39e   :  { %v2900_v52 = vpop.f32.mrf.mxu1  ;;  %3127 = vmatmul.mubr.f32.gmra.mxu1 %v9338_v19  ;;  %v6108_v2 = vpop.f32.mrf.mxu0 }
 0x39f   :  { %3130 = vmatprep.mubr.f32.mxu1 %v10745_v57 }
 0x3a0   :  { %v2901_v22 = vpop.f32.mrf.mxu1  ;;  %v3803_v8 = vpop.f32.mrf.mxu0 }
 0x3a2   :  { %v2904_v30 = vpop.f32.mrf.mxu1  ;;  %3131 = vmatmul.mubr.f32.gmra.mxu1 %v9345_v13  ;;  %v6111_v1 = vpop.f32.mrf.mxu0 }
 0x3a3   :  { %3500 = vmatprep.mubr.f32.mxu1 %v10745_v57 }
 0x3a4   :  { %v2905_v36 = vpop.f32.mrf.mxu1  ;;  %v3811_v0 = vpop.f32.mrf.mxu0 }
 0x3a6   :  { %v2908_v21 = vpop.f32.mrf.mxu1  ;;  %3501 = vmatmul.mubr.f32.vlgmr.msra.gmra.mxu1 %v8372_v59  ;;  %v6114_v37 = vpop.f32.mrf.mxu0 }
 0x3a7   :  { %3504 = vmatprep.mubr.f32.mxu1 %v10745_v57 }
 0x3a8   :  { %v2909_v45 = vpop.f32.mrf.mxu1  ;;  %v3819_v52 = vpop.f32.mrf.mxu0 }
 0x3aa   :  { %v2912_v2 = vpop.f32.mrf.mxu1  ;;  %3505 = vmatmul.mubr.f32.gmra.mxu1 %v8400_v33  ;;  %v6117_v22 = vpop.f32.mrf.mxu0 }
 0x3ab   :  { %3508 = vmatprep.mubr.f32.mxu1 %v10745_v57 }
 0x3ac   :  { %v2913_v8 = vpop.f32.mrf.mxu1  ;;  %v3827_v30 = vpop.f32.mrf.mxu0 }
 0x3ae   :  { %v2916_v1 = vpop.f32.mrf.mxu1  ;;  %3509 = vmatmul.mubr.f32.gmra.mxu1 %v8430_v32  ;;  %v6120_v36 = vpop.f32.mrf.mxu0 }
 0x3af   :  { %v4026_v0 = vadd.f32 %v9364_v15, %v2916_v1  ;;  %3512 = vmatprep.mubr.f32.mxu1 %v10745_v57 }
 0x3b0   :  { %v2918_v59 = vpop.f32.mrf.mxu1  ;;  %v3835_v21 = vpop.f32.mrf.mxu0 }
 0x3b2   :  { %v2921_v37 = vpop.f32.mrf.mxu1  ;;  %3513 = vmatmul.mubr.f32.gmra.mxu1 %v8453_v6  ;;  %v6123_v45 = vpop.f32.mrf.mxu0 }
 0x3b3   :  { %v4027_v33 = vadd.f32 %v9376_v42, %v2921_v37  ;;  %3516 = vmatprep.mubr.f32.mxu1 %v10745_v57 }
 0x3b4   :  { %v2923_v52 = vpop.f32.mrf.mxu1  ;;  %v3843_v2 = vpop.f32.mrf.mxu0 }
 0x3b5   :  { %v10939_v2 = vld [vmem:[#allocation8_spill] sm:$0xff] }
 0x3b6   :  { %v2926_v22 = vpop.f32.mrf.mxu1  ;;  %3517 = vmatmul.mubr.f32.gmra.mxu1 %v8485_v18  ;;  %v6126_v32 = vpop.f32.mrf.mxu0 }
 0x3b7   :  { %v4028_v15 = vadd.f32 %v9388_v28, %v2926_v22  ;;  %3520 = vmatprep.mubr.f32.mxu1 %v10745_v57  ;;  %v10940_v22 = vld [vmem:[#allocation76_spill] sm:$0xff] }
 0x3b8   :  { %v2928_v8 = vpop.f32.mrf.mxu1  ;;  %v3851_v30 = vpop.f32.mrf.mxu0 }
 0x3ba   :  { %v2931_v1 = vpop.f32.mrf.mxu1  ;;  %3521 = vmatmul.mubr.f32.gmra.mxu1 %v8505_v34  ;;  %v6129_v6 = vpop.f32.mrf.mxu0 }
 0x3bb   :  { %v4029_v42 = vadd.f32 %v9400_v41, %v2931_v1  ;;  %3524 = vmatprep.mubr.f32.mxu1 %v10745_v57  ;;  %v10941_v1 = vld [vmem:[#allocation9_spill] sm:$0xff] }
 0x3bc   :  { %v2933_v36 = vpop.f32.mrf.mxu1  ;;  %v3859_v59 = vpop.f32.mrf.mxu0 }
 0x3be   :  { %v2936_v21 = vpop.f32.mrf.mxu1  ;;  %3525 = vmatmul.mubr.f32.gmra.mxu1 %v8538_v24  ;;  %v6132_v18 = vpop.f32.mrf.mxu0 }
 0x3bf   :  { %v4030_v28 = vadd.f32 %v9412_v29, %v2936_v21  ;;  %3528 = vmatprep.mubr.f32.mxu1 %v10745_v57  ;;  %v10942_v21 = vld [vmem:[#allocation10_spill] sm:$0xff] }
 0x3c0   :  { %v2938_v37 = vpop.f32.mrf.mxu1  ;;  %v3867_v45 = vpop.f32.mrf.mxu0 }
 0x3c2   :  { %v2941_v52 = vpop.f32.mrf.mxu1  ;;  %3529 = vmatmul.mubr.f32.gmra.mxu1 %v10939_v2  ;;  %v6135_v34 = vpop.f32.mrf.mxu0 }
 0x3c3   :  { %v4031_v41 = vadd.f32 %v10940_v22, %v2941_v52  ;;  %3532 = vmatprep.mubr.f32.mxu1 %v10745_v57  ;;  %v10943_v34 = vld [vmem:[#allocation11_spill] sm:$0xff] }
 0x3c4   :  { %v2943_v32 = vpop.f32.mrf.mxu1  ;;  %v3875_v8 = vpop.f32.mrf.mxu0 }
 0x3c6   :  { %v2946_v30 = vpop.f32.mrf.mxu1  ;;  %3533 = vmatmul.mubr.f32.gmra.mxu1 %v10941_v1  ;;  %v6138_v24 = vpop.f32.mrf.mxu0 }
 0x3c7   :  { %3536 = vmatprep.mubr.f32.mxu1 %v10745_v57 }
 0x3c8   :  { %v2947_v29 = vpop.f32.mrf.mxu1  ;;  %v3883_v6 = vpop.f32.mrf.mxu0 }
 0x3c9   :  { %v9725_v36 = vadd.f32 %v4026_v0, %v2947_v29 }
 0x3ca   :  { %v2951_v59 = vpop.f32.mrf.mxu1  ;;  %3537 = vmatmul.mubr.f32.gmra.mxu1 %v10942_v21  ;;  %v6141_v18 = vpop.f32.mrf.mxu0  ;;  %v10945_v21 = vld [vmem:[#allocation17_spill] sm:$0xff] }
 0x3cb   :  { %3540 = vmatprep.mubr.f32.mxu1 %v10745_v57 }
 0x3cc   :  { %v2952_v37 = vpop.f32.mrf.mxu1  ;;  %v3891_v45 = vpop.f32.mrf.mxu0 }
 0x3cd   :  { %v9729_v52 = vadd.f32 %v4027_v33, %v2952_v37 }
 0x3ce   :  { %v2956_v2 = vpop.f32.mrf.mxu1  ;;  %3541 = vmatmul.mubr.f32.gmra.mxu1 %v10943_v34  ;;  %v9732_v22 = vpop.f32.mrf.mxu0 }
 0x3cf   :  { %3544 = vmatprep.mubr.f32.mxu1 %v10745_v57 }
 0x3d0   :  { %v2957_v32 = vpop.f32.mrf.mxu1  ;;  %v9735_v0 = vpop.f32.mrf.mxu0 }
 0x3d1   :  { %v9737_v8 = vadd.f32 %v4028_v15, %v2957_v32 }
 0x3d2   :  { %v2961_v30 = vpop.f32.mrf.mxu1  ;;  %3545 = vmatmul.mubr.f32.gmra.mxu1 %v8685_v12  ;;  %v9740_v1 = vpop.f32.mrf.mxu0 }
 0x3d3   :  { %3548 = vmatprep.mubr.f32.mxu1 %v10745_v57 }
 0x3d4   :  { %v2962_v33 = vpop.f32.mrf.mxu1  ;;  %v9743_v24 = vpop.f32.mrf.mxu0 }
 0x3d5   :  { %v9745_v29 = vadd.f32 %v4029_v42, %v2962_v33  ;;  %v10946_v42 = vld [vmem:[#allocation73_spill] sm:$0xff] }
 0x3d6   :  { %v2966_v6 = vpop.f32.mrf.mxu1  ;;  %3549 = vmatmul.mubr.f32.gmra.mxu1 %v8734_v27  ;;  %v9748_v59 = vpop.f32.mrf.mxu0 }
 0x3d7   :  { %10944 = vst [vmem:[#allocation59_spill] sm:$0xff] %v9748_v59  ;;  %v4078_v15 = vadd.f32 %v10945_v21, %v2966_v6  ;;  %3552 = vmatprep.mubr.f32.mxu1 %v10745_v57  ;;  %v10947_v21 = vld [vmem:[#allocation31_spill] sm:$0xff] }
 0x3d8   :  { %v2968_v18 = vpop.f32.mrf.mxu1  ;;  %v9752_v12 = vpop.f32.mrf.mxu0 }
 0x3d9   :  { %v9754_v37 = vadd.f32 %v4030_v28, %v2968_v18 }
 0x3da   :  { %v2972_v45 = vpop.f32.mrf.mxu1  ;;  %3553 = vmatmul.mubr.f32.gmra.mxu1 %v8752_v53  ;;  %v6153_v2 = vpop.f32.mrf.mxu0 }
 0x3db   :  { %v4079_v34 = vadd.f32 %v10946_v42, %v2972_v45  ;;  %3556 = vmatprep.mubr.f32.mxu1 %v10745_v57 }
 0x3dc   :  { %v2974_v27 = vpop.f32.mrf.mxu1  ;;  %v3929_v32 = vpop.f32.mrf.mxu0 }
 0x3dd   :  { %v9759_v30 = vadd.f32 %v4031_v41, %v2974_v27 }
 0x3de   :  { %v2978_v33 = vpop.f32.mrf.mxu1  ;;  %3557 = vmatmul.mubr.f32.gmra.mxu1 %v10888_v16  ;;  %v6156_v6 = vpop.f32.mrf.mxu0 }
 0x3df   :  { %v4080_v59 = vadd.f32 %v10947_v21, %v2978_v33  ;;  %3560 = vmatprep.mubr.f32.mxu1 %v10745_v57 }
 0x3e0   :  { %v2980_v28 = vpop.f32.mrf.mxu1  ;;  %v3937_v18 = vpop.f32.mrf.mxu0 }
 0x3e2   :  { %v2983_v53 = vpop.f32.mrf.mxu1  ;;  %3561 = vmatmul.mubr.f32.gmra.mxu1 %v10889_v9  ;;  %v9765_v45 = vpop.f32.mrf.mxu0 }
 0x3e3   :  { %v4081_v2 = vadd.f32 %v9524_v23, %v2983_v53  ;;  %3564 = vmatprep.mubr.f32.mxu1 %v10745_v57  ;;  %v10951_v53 = vld [vmem:[#allocation20_spill] sm:$0xff] }
 0x3e4   :  { %v2985_v41 = vpop.f32.mrf.mxu1  ;;  %v9769_v42 = vpop.f32.mrf.mxu0 }
 0x3e6   :  { %v2988_v16 = vpop.f32.mrf.mxu1  ;;  %3565 = vmatmul.mubr.f32.gmra.mxu1 %v10890_v25  ;;  %v9772_v27 = vpop.f32.mrf.mxu0 }
 0x3e7   :  { %10948 = vst [vmem:[#allocation37_spill] sm:$0xff] %v9772_v27  ;;  %v4082_v32 = vadd.f32 %v9537_v3, %v2988_v16  ;;  %3568 = vmatprep.mubr.f32.mxu1 %v10745_v57  ;;  %v10952_v27 = vld [vmem:[#allocation23_spill] sm:$0xff] }
 0x3e8   :  { %v2990_v33 = vpop.f32.mrf.mxu1  ;;  %v9776_v9 = vpop.f32.mrf.mxu0 }
 0x3ea   :  { %v2993_v6 = vpop.f32.mrf.mxu1  ;;  %3569 = vmatmul.mubr.f32.gmra.mxu1 %v10891_v48  ;;  %v9779_v23 = vpop.f32.mrf.mxu0 }
 0x3eb   :  { %10949 = vst [vmem:[#allocation38_spill] sm:$0xff] %v9779_v23  ;;  %v4083_v21 = vadd.f32 %v9550_v55, %v2993_v6  ;;  %3572 = vmatprep.mubr.f32.mxu1 %v10745_v57 }
 0x3ec   :  { %v2995_v28 = vpop.f32.mrf.mxu1  ;;  %v9783_v25 = vpop.f32.mrf.mxu0 }
 0x3ed   :  { %10950 = vst [vmem:[#allocation61_spill] sm:$0xff] %v9783_v25  ;;  %v10953_v25 = vld [vmem:[#allocation24_spill] sm:$0xff] }
 0x3ee   :  { %v2998_v18 = vpop.f32.mrf.mxu1  ;;  %3573 = vmatmul.mubr.f32.gmra.mxu1 %v10951_v53  ;;  %v6168_v3 = vpop.f32.mrf.mxu0 }
 0x3ef   :  { %3576 = vmatprep.mubr.f32.mxu1 %v10745_v57 }
 0x3f0   :  { %v2999_v41 = vpop.f32.mrf.mxu1  ;;  %v3975_v16 = vpop.f32.mrf.mxu0 }
 0x3f1   :  { %v9787_v33 = vadd.f32 %v4078_v15, %v2999_v41  ;;  %v10954_v41 = vld [vmem:[#allocation22_spill] sm:$0xff] }
 0x3f2   :  { %v3003_v48 = vpop.f32.mrf.mxu1  ;;  %3577 = vmatmul.mubr.f32.gmra.mxu1 %v10952_v27  ;;  %v6171_v23 = vpop.f32.mrf.mxu0  ;;  %v4216_v27 = vld [vmem:[%s10545_s1 + $0xa8] sm:$0xff] }
 0x3f3   :  { %3580 = vmatprep.mubr.f32.mxu1 %v10745_v57  ;;  %6181 = vmatprep.subr.mxu1 %v4216_v27 }
 0x3f4   :  { %v3004_v55 = vpop.f32.mrf.mxu1  ;;  %v3983_v6 = vpop.f32.mrf.mxu0  ;;  %6182 = vmatpush3.msra.mxu1 %v4216_v27 }
 0x3f5   :  { %v9791_v28 = vadd.f32 %v4079_v34, %v3004_v55  ;;  %v10955_v55 = vld [vmem:[#allocation40_spill] sm:$0xff] }
 0x3f6   :  { %v3008_v18 = vpop.f32.mrf.mxu1  ;;  %3581 = vmatmul.mubr.f32.gmra.mxu1 %v10953_v25 }
 0x3f7   :  { %3585 = vmatprep.mubr.f32.mxu1 %v10745_v57 }
 0x3f8   :  { %v3009_v53 = vpop.f32.mrf.mxu1 }
 0x3f9   :  { %v9795_v3 = vadd.f32 %v4080_v59, %v3009_v53 }
 0x3fa   :  { %v3013_v15 = vpop.f32.mrf.mxu1  ;;  %3586 = vmatmul.mubr.f32.gmra.mxu1 %v8976_v7 }
 0x3fb   :  { %3590 = vmatprep.mubr.f32.mxu1 %v10745_v57 }
 0x3fc   :  { %v3014_v34 = vpop.f32.mrf.mxu1 }
 0x3fd   :  { %v9802_v23 = vadd.f32 %v4081_v2, %v3014_v34  ;;  %v10957_v34 = vld [vmem:[#allocation25_spill] sm:$0xff] }
 0x3fe   :  { %v3018_v25 = vpop.f32.mrf.mxu1  ;;  %3591 = vmatmul.mubr.f32.gmra.mxu1 %v9010_v49  ;;  %v10956_v49 = vld [vmem:[#allocation86_spill] sm:$0xff] }
 0x3ff   :  { %v4132_v59 = vadd.f32 %v10954_v41, %v3018_v25  ;;  %3596 = vmatprep.mubr.f32.mxu1 %v10745_v57  ;;  %v10958_v41 = vld [vmem:[#allocation47_spill] sm:$0xff] }
 0x400   :  { %v3020_v16 = vpop.f32.mrf.mxu1 }
 0x401   :  { %v9807_v7 = vadd.f32 %v4082_v32, %v3020_v16  ;;  %v4215_v32 = vld [vmem:[%s10545_s1 + $0xa0] sm:$0xff] }
 0x402   :  { %v3024_v48 = vpop.f32.mrf.mxu1  ;;  %3597 = vmatmul.mubr.f32.gmra.mxu1 %v9023_v54  ;;  %6183 = vmatprep.subr.mxu1 %v4215_v32 }
 0x403   :  { %v4133_v6 = vadd.f32 %v10955_v55, %v3024_v48  ;;  %3602 = vmatprep.mubr.f32.mxu1 %v10745_v57  ;;  %6184 = vmatpush3.msra.mxu1 %v4215_v32 }
 0x404   :  { %v3026_v18 = vpop.f32.mrf.mxu1 }
 0x405   :  { %v9812_v2 = vadd.f32 %v4083_v21, %v3026_v18 }
 0x406   :  { %v3030_v53 = vpop.f32.mrf.mxu1  ;;  %3603 = vmatmul.mubr.f32.gmra.mxu1 %v9048_v14 }
 0x407   :  { %v4134_v15 = vadd.f32 %v10956_v49, %v3030_v53  ;;  %3608 = vmatprep.mubr.f32.mxu1 %v10745_v57  ;;  %v4214_v53 = vld [vmem:[%s10545_s1 + $0x98] sm:$0xff] }
 0x408   :  { %v3032_v27 = vpop.f32.mrf.mxu1  ;;  %6185 = vmatprep.subr.mxu1 %v4214_v53 }
 0x409   :  { %6186 = vmatpush3.msra.mxu1 %v4214_v53 }
 0x40a   :  { %v3035_v54 = vpop.f32.mrf.mxu1  ;;  %3609 = vmatmul.mubr.f32.gmra.mxu1 %v9060_v63 }
 0x40b   :  { %v4135_v25 = vadd.f32 %v10957_v34, %v3035_v54  ;;  %3614 = vmatprep.mubr.f32.mxu1 %v10745_v57  ;;  %v4213_v34 = vld [vmem:[%s10545_s1 + $0x90] sm:$0xff] }
 0x40c   :  { %v3037_v21 = vpop.f32.mrf.mxu1  ;;  %6187 = vmatprep.subr.mxu1 %v4213_v34 }
 0x40d   :  { %6188 = vmatpush3.msra.mxu1 %v4213_v34 }
 0x40e   :  { %v3040_v14 = vpop.f32.mrf.mxu1  ;;  %3615 = vmatmul.mubr.f32.gmra.mxu1 %v9081_v11 }
 0x40f   :  { %v4136_v16 = vadd.f32 %v10958_v41, %v3040_v14  ;;  %3619 = vmatprep.mubr.f32.mxu1 %v10745_v57 }
 0x410   :  { %v3042_v48 = vpop.f32.mrf.mxu1 }
 0x411   :  { %v4212_v48 = vld [vmem:[%s10545_s1 + $0x88] sm:$0xff] }
 0x412   :  { %v3045_v55 = vpop.f32.mrf.mxu1  ;;  %3620 = vmatmul.mubr.f32.gmra.mxu1 %v9090_v4  ;;  %6189 = vmatprep.subr.mxu1 %v4212_v48 }
 0x413   :  { %v4137_v18 = vadd.f32 %v9623_v5, %v3045_v55  ;;  %3624 = vmatprep.mubr.f32.mxu1 %v10745_v57  ;;  %6190 = vmatpush3.msra.mxu1 %v4212_v48 }
 0x414   :  { %v3047_v63 = vpop.f32.mrf.mxu1 }
 0x416   :  { %v3050_v49 = vpop.f32.mrf.mxu1  ;;  %3625 = vmatmul.mubr.f32.gmra.mxu1 %v9113_v38 }
 0x417   :  { %3628 = vmatprep.mubr.f32.mxu1 %v10745_v57 }
 0x418   :  { %v3051_v11 = vpop.f32.mrf.mxu1 }
 0x419   :  { %v9834_v27 = vadd.f32 %v4132_v59, %v3051_v11 }
 0x41a   :  { %v3055_v4 = vpop.f32.mrf.mxu1  ;;  %3629 = vmatmul.mubr.f32.gmra.mxu1 %v9122_v43 }
 0x41b   :  { %3632 = vmatprep.mubr.f32.mxu1 %v10745_v57 }
 0x41c   :  { %v3056_v5 = vpop.f32.mrf.mxu1 }
 0x41d   :  { %v9838_v32 = vadd.f32 %v4133_v6, %v3056_v5  ;;  %v4210_v5 = vld [vmem:[%s10545_s1 + $0x78] sm:$0xff] }
 0x41e   :  { %v3060_v54 = vpop.f32.mrf.mxu1  ;;  %3633 = vmatmul.mubr.f32.gmra.mxu1 %v9141_v50 }
 0x41f   :  { %3637 = vmatprep.mubr.f32.mxu1 %v10745_v57 }
 0x420   :  { %v3061_v38 = vpop.f32.mrf.mxu1 }
 0x421   :  { %v9845_v59 = vadd.f32 %v4134_v15, %v3061_v38 }
 0x422   :  { %v3065_v21 = vpop.f32.mrf.mxu1  ;;  %3638 = vmatmul.mubr.f32.gmra.mxu1 %v9150_v44 }
 0x423   :  { %3642 = vmatprep.mubr.f32.mxu1 %v10745_v57 }
 0x424   :  { %v3066_v43 = vpop.f32.mrf.mxu1 }
 0x425   :  { %v9849_v6 = vadd.f32 %v4135_v25, %v3066_v43  ;;  %v4209_v43 = vld [vmem:[%s10545_s1 + $0x70] sm:$0xff] }
 0x426   :  { %v3070_v50 = vpop.f32.mrf.mxu1  ;;  %3643 = vmatmul.mubr.f32.gmra.mxu1 %v9169_v46 }
 0x427   :  { %3648 = vmatprep.mubr.f32.mxu1 %v10745_v57 }
 0x428   :  { %v3071_v14 = vpop.f32.mrf.mxu1 }
 0x429   :  { %v9853_v41 = vadd.f32 %v4136_v16, %v3071_v14 }
 0x42a   :  { %v3075_v15 = vpop.f32.mrf.mxu1  ;;  %3649 = vmatmul.mubr.f32.gmra.mxu1 %v9178_v62 }
 0x42b   :  { %3654 = vmatprep.mubr.f32.mxu1 %v10745_v57 }
 0x42c   :  { %v3076_v44 = vpop.f32.mrf.mxu1 }
 0x42d   :  { %v9860_v25 = vadd.f32 %v4137_v18, %v3076_v44 }
 0x42e   :  { %v3080_v55 = vpop.f32.mrf.mxu1  ;;  %3655 = vmatmul.mubr.f32.gmra.mxu1 %v9197_v47  ;;  %v4211_v47 = vld [vmem:[%s10545_s1 + $0x80] sm:$0xff] }
 0x42f   :  { %3660 = vmatprep.mubr.f32.mxu1 %v10745_v57  ;;  %6191 = vmatprep.subr.mxu1 %v4211_v47 }
 0x430   :  { %v3081_v46 = vpop.f32.mrf.mxu1  ;;  %6192 = vmatpush3.msra.mxu1 %v4211_v47 }
 0x431   :  { %6193 = vmatprep.subr.mxu1 %v4210_v5 }
 0x432   :  { %v3084_v16 = vpop.f32.mrf.mxu1  ;;  %3661 = vmatmul.mubr.f32.gmra.mxu1 %v9206_v17 }
 0x433   :  { %3666 = vmatprep.mubr.f32.mxu1 %v10745_v57  ;;  %6194 = vmatpush3.msra.mxu1 %v4210_v5 }
 0x434   :  { %v3085_v62 = vpop.f32.mrf.mxu1  ;;  %6195 = vmatprep.subr.mxu1 %v4209_v43 }
 0x435   :  { %6196 = vmatpush3.msra.mxu1 %v4209_v43  ;;  %v4204_v43 = vld [vmem:[%s10545_s1 + $0x48] sm:$0xff] }
 0x436   :  { %v3088_v63 = vpop.f32.mrf.mxu1  ;;  %3667 = vmatmul.mubr.f32.gmra.mxu1 %v9225_v26 }
 0x437   :  { %3671 = vmatprep.mubr.f32.mxu1 %v10745_v57  ;;  %v4207_v63 = vld [vmem:[%s10545_s1 + $0x60] sm:$0xff] }
 0x438   :  { %v3089_v18 = vpop.f32.mrf.mxu1 }
 0x43a   :  { %v3092_v53 = vpop.f32.mrf.mxu1  ;;  %3672 = vmatmul.mubr.f32.gmra.mxu1 %v9234_v56 }
 0x43b   :  { %3676 = vmatprep.mubr.f32.mxu1 %v10745_v57 }
 0x43c   :  { %v3093_v49 = vpop.f32.mrf.mxu1 }
 0x43e   :  { %v3096_v17 = vpop.f32.mrf.mxu1  ;;  %3677 = vmatmul.mubr.f32.gmra.mxu1 %v9252_v10 }
 0x43f   :  { %3680 = vmatprep.mubr.f32.mxu1 %v10745_v57  ;;  %v4206_v17 = vld [vmem:[%s10545_s1 + $0x58] sm:$0xff] }
 0x440   :  { %v3097_v26 = vpop.f32.mrf.mxu1 }
 0x442   :  { %v3100_v11 = vpop.f32.mrf.mxu1  ;;  %3681 = vmatmul.mubr.f32.gmra.mxu1 %v9261_v20 }
 0x443   :  { %3684 = vmatprep.mubr.f32.mxu1 %v10745_v57 }
 0x444   :  { %v3101_v56 = vpop.f32.mrf.mxu1 }
 0x446   :  { %v3104_v4 = vpop.f32.mrf.mxu1  ;;  %3685 = vmatmul.mubr.f32.gmra.mxu1 %v9272_v61 }
 0x447   :  { %3689 = vmatprep.mubr.f32.mxu1 %v10745_v57  ;;  %v4205_v4 = vld [vmem:[%s10545_s1 + $0x50] sm:$0xff] }
 0x448   :  { %v3105_v54 = vpop.f32.mrf.mxu1 }
 0x44a   :  { %v3108_v10 = vpop.f32.mrf.mxu1  ;;  %3690 = vmatmul.mubr.f32.gmra.mxu1 %v9280_v60 }
 0x44b   :  { %3694 = vmatprep.mubr.f32.mxu1 %v10745_v57 }
 0x44c   :  { %v3109_v20 = vpop.f32.mrf.mxu1 }
 0x44e   :  { %v3112_v38 = vpop.f32.mrf.mxu1  ;;  %3695 = vmatmul.mubr.f32.gmra.mxu1 %v9290_v40 }
 0x44f   :  { %3700 = vmatprep.mubr.f32.mxu1 %v10745_v57 }
 0x450   :  { %v3113_v61 = vpop.f32.mrf.mxu1 }
 0x452   :  { %v3116_v34 = vpop.f32.mrf.mxu1  ;;  %3701 = vmatmul.mubr.f32.gmra.mxu1 %v9297_v31 }
 0x453   :  { %3706 = vmatprep.mubr.f32.mxu1 %v10745_v57 }
 0x454   :  { %v3117_v21 = vpop.f32.mrf.mxu1 }
 0x456   :  { %v3120_v60 = vpop.f32.mrf.mxu1  ;;  %3707 = vmatmul.mubr.f32.gmra.mxu1 %v9306_v58  ;;  %v4208_v58 = vld [vmem:[%s10545_s1 + $0x68] sm:$0xff] }
 0x457   :  { %3712 = vmatprep.mubr.f32.mxu1 %v10745_v57  ;;  %6197 = vmatprep.subr.mxu1 %v4208_v58 }
 0x458   :  { %v3121_v40 = vpop.f32.mrf.mxu1  ;;  %6198 = vmatpush3.msra.mxu1 %v4208_v58 }
 0x459   :  { %6199 = vmatprep.subr.mxu1 %v4207_v63 }
 0x45a   :  { %v3124_v50 = vpop.f32.mrf.mxu1  ;;  %3713 = vmatmul.mubr.f32.gmra.mxu1 %v9313_v39 }
 0x45b   :  { %3718 = vmatprep.mubr.f32.mxu1 %v10745_v57  ;;  %6200 = vmatpush3.msra.mxu1 %v4207_v63  ;;  %v10959_v63 = vld [vmem:[#allocation16_spill] sm:$0xff] }
 0x45c   :  { %v3125_v31 = vpop.f32.mrf.mxu1  ;;  %6201 = vmatprep.subr.mxu1 %v4206_v17 }
 0x45d   :  { %6202 = vmatpush3.msra.mxu1 %v4206_v17 }
 0x45e   :  { %v3128_v14 = vpop.f32.mrf.mxu1  ;;  %3719 = vmatmul.mubr.f32.gmra.mxu1 %v9322_v35  ;;  %6203 = vmatprep.subr.mxu1 %v4205_v4 }
 0x45f   :  { %3723 = vmatprep.mubr.f32.mxu1 %v10745_v57  ;;  %6204 = vmatpush3.msra.mxu1 %v4205_v4 }
 0x460   :  { %v3129_v15 = vpop.f32.mrf.mxu1  ;;  %6205 = vmatprep.subr.mxu1 %v4204_v43 }
 0x461   :  { %6206 = vmatpush3.msra.mxu1 %v4204_v43  ;;  %v4203_v15 = vld [vmem:[%s10545_s1 + $0x40] sm:$0xff] }
 0x462   :  { %v3132_v44 = vpop.f32.mrf.mxu1  ;;  %3724 = vmatmul.mubr.f32.gmra.mxu1 %v9329_v51  ;;  %6207 = vmatprep.subr.mxu1 %v4203_v15 }
 0x463   :  { %3728 = vmatprep.mubr.f32.mxu1 %v10745_v57  ;;  %6208 = vmatpush3.msra.mxu1 %v4203_v15  ;;  %v4202_v15 = vld [vmem:[%s10545_s1 + $0x38] sm:$0xff] }
 0x464   :  { %v3133_v39 = vpop.f32.mrf.mxu1  ;;  %6209 = vmatprep.subr.mxu1 %v4202_v15 }
 0x465   :  { %6210 = vmatpush3.msra.mxu1 %v4202_v15  ;;  %v10973_v15 = vld [vmem:[#allocation39_spill] sm:$0xff] }
 0x466   :  { %v3502_v48 = vpop.f32.mrf.mxu1  ;;  %3729 = vmatmul.mubr.f32.gmra.mxu1 %v9338_v19 }
 0x467   :  { %3732 = vmatprep.mubr.f32.mxu1 %v10745_v57 }
 0x468   :  { %v3503_v35 = vpop.f32.mrf.mxu1 }
 0x46a   :  { %v3506_v55 = vpop.f32.mrf.mxu1  ;;  %3733 = vmatmul.mubr.f32.gmra.mxu1 %v9345_v13 }
 0x46c   :  { %v3507_v46 = vpop.f32.mrf.mxu1 }
 0x46e   :  { %v3510_v16 = vpop.f32.mrf.mxu1 }
 0x470   :  { %v3511_v62 = vpop.f32.mrf.mxu1 }
 0x472   :  { %v3514_v51 = vpop.f32.mrf.mxu1 }
 0x473   :  { %v4038_v51 = vadd.f32 %v9725_v36, %v10959_v63 }
 0x474   :  { %v3515_v18 = vpop.f32.mrf.mxu1 }
 0x476   :  { %v3518_v53 = vpop.f32.mrf.mxu1 }
 0x478   :  { %v3519_v47 = vpop.f32.mrf.mxu1 }
 0x479   :  { %v10960_v47 = vld [vmem:[#allocation78_spill] sm:$0xff] }
 0x47a   :  { %v3522_v19 = vpop.f32.mrf.mxu1 }
 0x47b   :  { %v4039_v19 = vadd.f32 %v9729_v52, %v10960_v47 }
 0x47c   :  { %v3523_v49 = vpop.f32.mrf.mxu1 }
 0x47d   :  { %v10961_v49 = vld [vmem:[#allocation28_spill] sm:$0xff] }
 0x47e   :  { %v3526_v13 = vpop.f32.mrf.mxu1  ;;  %v4044_v17 = vadd.f32 %v4038_v51, %v10961_v49 }
 0x480   :  { %v3527_v26 = vpop.f32.mrf.mxu1 }
 0x482   :  { %v3530_v11 = vpop.f32.mrf.mxu1 }
 0x484   :  { %v3531_v56 = vpop.f32.mrf.mxu1 }
 0x485   :  { %v10962_v56 = vld [vmem:[#allocation27_spill] sm:$0xff] }
 0x486   :  { %v3534_v5 = vpop.f32.mrf.mxu1  ;;  %v4040_v4 = vadd.f32 %v9737_v8, %v10962_v56 }
 0x487   :  { %v10963_v5 = vld [vmem:[#allocation18_spill] sm:$0xff] }
 0x488   :  { %v3535_v54 = vpop.f32.mrf.mxu1 }
 0x489   :  { %v4045_v54 = vadd.f32 %v4039_v19, %v10963_v5 }
 0x48a   :  { %v3538_v10 = vpop.f32.mrf.mxu1 }
 0x48c   :  { %v3539_v20 = vpop.f32.mrf.mxu1 }
 0x48e   :  { %v3542_v38 = vpop.f32.mrf.mxu1 }
 0x490   :  { %v3543_v61 = vpop.f32.mrf.mxu1 }
 0x491   :  { %v10964_v61 = vld [vmem:[#allocation32_spill] sm:$0xff] }
 0x492   :  { %v3546_v34 = vpop.f32.mrf.mxu1  ;;  %v4041_v36 = vadd.f32 %v9745_v29, %v10964_v61  ;;  %v4201_v29 = vld [vmem:[%s10545_s1 + $0x30] sm:$0xff] }
 0x493   :  { %v10965_v34 = vld [vmem:[#allocation74_spill] sm:$0xff]  ;;  %6211 = vmatprep.subr.mxu1 %v4201_v29 }
 0x494   :  { %v3547_v21 = vpop.f32.mrf.mxu1  ;;  %6212 = vmatpush3.msra.mxu1 %v4201_v29  ;;  %v10974_v29 = vld [vmem:[#allocation84_spill] sm:$0xff] }
 0x495   :  { %v4046_v21 = vadd.f32 %v4040_v4, %v10965_v34 }
 0x496   :  { %v3550_v60 = vpop.f32.mrf.mxu1 }
 0x498   :  { %v3551_v40 = vpop.f32.mrf.mxu1 }
 0x499   :  { %v10966_v40 = vld [vmem:[#allocation19_spill] sm:$0xff] }
 0x49a   :  { %v3554_v50 = vpop.f32.mrf.mxu1 }
 0x49b   :  { %v4042_v50 = vadd.f32 %v9754_v37, %v10966_v40  ;;  %v9943_v37 = vld [vmem:[%s10545_s1 + $0x130] sm:$0xff] }
 0x49c   :  { %v3555_v31 = vpop.f32.mrf.mxu1  ;;  %6216 = vmatprep.subr.mxu1 %v9943_v37 }
 0x49e   :  { %v3558_v14 = vpop.f32.mrf.mxu1 }
 0x49f   :  { %v10967_v14 = vld [vmem:[#allocation82_spill] sm:$0xff] }
 0x4a0   :  { %v3559_v58 = vpop.f32.mrf.mxu1 }
 0x4a1   :  { %v4047_v58 = vadd.f32 %v4041_v36, %v10967_v14  ;;  %v10972_v14 = vld [vmem:[#allocation21_spill] sm:$0xff] }
 0x4a2   :  { %v3562_v44 = vpop.f32.mrf.mxu1 }
 0x4a4   :  { %v3563_v39 = vpop.f32.mrf.mxu1 }
 0x4a6   :  { %v3566_v48 = vpop.f32.mrf.mxu1 }
 0x4a7   :  { %v10968_v48 = vld [vmem:[#allocation80_spill] sm:$0xff] }
 0x4a8   :  { %v3567_v35 = vpop.f32.mrf.mxu1 }
 0x4a9   :  { %v4043_v35 = vadd.f32 %v9759_v30, %v10968_v48 }
 0x4aa   :  { %v3570_v55 = vpop.f32.mrf.mxu1 }
 0x4ac   :  { %v3571_v46 = vpop.f32.mrf.mxu1 }
 0x4ad   :  { %v10969_v46 = vld [vmem:[#allocation35_spill] sm:$0xff] }
 0x4ae   :  { %v3574_v16 = vpop.f32.mrf.mxu1 }
 0x4af   :  { %v4048_v16 = vadd.f32 %v4042_v50, %v10969_v46 }
 0x4b0   :  { %v3575_v62 = vpop.f32.mrf.mxu1 }
 0x4b2   :  { %v3578_v18 = vpop.f32.mrf.mxu1 }
 0x4b4   :  { %v3579_v53 = vpop.f32.mrf.mxu1 }
 0x4b5   :  { %v10970_v53 = vld [vmem:[#allocation36_spill] sm:$0xff] }
 0x4b6   :  { %v3582_v13 = vpop.f32.mrf.mxu1  ;;  %v4049_v47 = vadd.f32 %v4043_v35, %v10970_v53 }
 0x4b7   :  { %v4050_v26 = vadd.f32 %v4044_v17, %v3582_v13 }
 0x4b8   :  { %v3584_v11 = vpop.f32.mrf.mxu1 }
 0x4ba   :  { %v3587_v10 = vpop.f32.mrf.mxu1 }
 0x4bb   :  { %v4051_v20 = vadd.f32 %v4045_v54, %v3587_v10 }
 0x4bc   :  { %v3589_v38 = vpop.f32.mrf.mxu1 }
 0x4be   :  { %v3592_v43 = vpop.f32.mrf.mxu1 }
 0x4bf   :  { %v4052_v52 = vadd.f32 %v4046_v21, %v3592_v43 }
 0x4c0   :  { %v3594_v60 = vpop.f32.mrf.mxu1 }
 0x4c1   :  { %v4056_v31 = vadd.f32 %v4050_v26, %v3594_v60 }
 0x4c2   :  { %v3598_v8 = vpop.f32.mrf.mxu1 }
 0x4c3   :  { %v4053_v44 = vadd.f32 %v4047_v58, %v3598_v8  ;;  %v4062_v49 = vadd.f32 %v4056_v31, %v9735_v0 }
 0x4c4   :  { %v3600_v39 = vpop.f32.mrf.mxu1 }
 0x4c5   :  { %v4057_v55 = vadd.f32 %v4051_v20, %v3600_v39 }
 0x4c6   :  { %v3604_v62 = vpop.f32.mrf.mxu1 }
 0x4c7   :  { %v4054_v63 = vadd.f32 %v4048_v16, %v3604_v62  ;;  %v4063_v4 = vadd.f32 %v9732_v22, %v4057_v55  ;;  %v10975_v55 = vld [vmem:[#allocation75_spill] sm:$0xff]  ;;  %v10976_v16 = vld [vmem:[#allocation44_spill] sm:$0xff] }
 0x4c8   :  { %v3606_v51 = vpop.f32.mrf.mxu1  ;;  %v4092_v46 = vadd.f32 %v9795_v3, %v10975_v55 }
 0x4c9   :  { %v4058_v18 = vadd.f32 %v4052_v52, %v3606_v51 }
 0x4ca   :  { %v3610_v19 = vpop.f32.mrf.mxu1 }
 0x4cb   :  { %v4064_v17 = vadd.f32 %v4058_v18, %v9743_v24  ;;  %v4055_v13 = vadd.f32 %v4049_v47, %v3610_v19  ;;  %v10971_v24 = vld [vmem:[#allocation59_spill] sm:$0xff] }
 0x4cc   :  { %v3612_v30 = vpop.f32.mrf.mxu1  ;;  %v10977_v47 = vld [vmem:[#allocation43_spill] sm:$0xff] }
 0x4cd   :  { %v4068_v26 = vmax.f32 %v4062_v49, %v4064_v17  ;;  %v4059_v11 = vadd.f32 %v4053_v44, %v3612_v30  ;;  %v4093_v19 = vadd.f32 %v9802_v23, %v10977_v47 }
 0x4ce   :  { %v3616_v56 = vpop.f32.mrf.mxu1 }
 0x4cf   :  { %v4065_v5 = vadd.f32 %v9740_v1, %v4059_v11  ;;  %v4090_v1 = vadd.f32 %v9787_v33, %v10972_v14  ;;  %v10979_v56 = vld [vmem:[#allocation26_spill] sm:$0xff] }
 0x4d0   :  { %v3617_v54 = vpop.f32.mrf.mxu1 }
 0x4d1   :  { %v4069_v10 = vmax.f32 %v4063_v4, %v4065_v5  ;;  %v4060_v20 = vadd.f32 %v4054_v63, %v3617_v54  ;;  %v4096_v44 = vadd.f32 %v4090_v1, %v10974_v29  ;;  %v4094_v4 = vadd.f32 %v9807_v7, %v10979_v56  ;;  %v10980_v5 = vld [vmem:[#allocation79_spill] sm:$0xff] }
 0x4d2   :  { %v3621_v38 = vpop.f32.mrf.mxu1  ;;  %v4099_v54 = vadd.f32 %v4093_v19, %v10980_v5  ;;  %v10989_v19 = vld [vmem:[#allocation52_spill] sm:$0xff] }
 0x4d3   :  { %v4066_v61 = vadd.f32 %v4060_v20, %v9752_v12  ;;  %v4091_v12 = vadd.f32 %v9791_v28, %v10973_v15  ;;  %v10978_v28 = vld [vmem:[#allocation77_spill] sm:$0xff] }
 0x4d4   :  { %v3622_v36 = vpop.f32.mrf.mxu1  ;;  %v4098_v49 = vadd.f32 %v4092_v46, %v10978_v28 }
 0x4d5   :  { %v4070_v34 = vmax.f32 %v4068_v26, %v4066_v61  ;;  %v4061_v0 = vadd.f32 %v4055_v13, %v3622_v36  ;;  %v4097_v62 = vadd.f32 %v4091_v12, %v10976_v16  ;;  %v10981_v36 = vld [vmem:[#allocation48_spill] sm:$0xff] }
 0x4d6   :  { %v3626_v21 = vpop.f32.mrf.mxu1 }
 0x4d7   :  { %v4067_v43 = vadd.f32 %v10971_v24, %v4061_v0  ;;  %v10982_v0 = vld [vmem:[#allocation88_spill] sm:$0xff] }
 0x4d8   :  { %v3627_v52 = vpop.f32.mrf.mxu1  ;;  %v4100_v21 = vadd.f32 %v4094_v4, %v10982_v0 }
 0x4d9   :  { %v4071_v60 = vmax.f32 %v4069_v10, %v4067_v43 }
 0x4da   :  { %v3630_v40 = vpop.f32.mrf.mxu1 }
 0x4db   :  { %v10983_v40 = vld [vmem:[#allocation37_spill] sm:$0xff] }
 0x4dc   :  { %v3631_v50 = vpop.f32.mrf.mxu1 }
 0x4de   :  { %v3634_v31 = vpop.f32.mrf.mxu1 }
 0x4df   :  { %v4102_v48 = vadd.f32 %v4096_v44, %v3634_v31  ;;  %v10984_v31 = vld [vmem:[#allocation29_spill] sm:$0xff]  ;;  %v10986_v44 = vld [vmem:[#allocation38_spill] sm:$0xff] }
 0x4e0   :  { %v3636_v22 = vpop.f32.mrf.mxu1 }
 0x4e2   :  { %v3639_v58 = vpop.f32.mrf.mxu1 }
 0x4e3   :  { %v4103_v18 = vadd.f32 %v4097_v62, %v3639_v58 }
 0x4e4   :  { %v3641_v8 = vpop.f32.mrf.mxu1 }
 0x4e6   :  { %v3644_v39 = vpop.f32.mrf.mxu1 }
 0x4e7   :  { %v4104_v26 = vadd.f32 %v4098_v49, %v3644_v39  ;;  %v6174_v49 = vpop.f32.mrf.mxu0 }
 0x4e8   :  { %v3646_v35 = vpop.f32.mrf.mxu1 }
 0x4e9   :  { %v4108_v63 = vadd.f32 %v4102_v48, %v3646_v35  ;;  %v3991_v5 = vpop.f32.mrf.mxu0 }
 0x4ea   :  { %v3650_v51 = vpop.f32.mrf.mxu1 }
 0x4eb   :  { %v4114_v33 = vadd.f32 %v4108_v63, %v9769_v42  ;;  %v4105_v38 = vadd.f32 %v4099_v54, %v3650_v51  ;;  %v10987_v63 = vld [vmem:[#allocation30_spill] sm:$0xff] }
 0x4ec   :  { %v3652_v53 = vpop.f32.mrf.mxu1  ;;  %v4144_v51 = vadd.f32 %v9834_v27, %v10987_v63 }
 0x4ed   :  { %v4120_v17 = vmax.f32 %v4070_v34, %v4114_v33  ;;  %v4109_v13 = vadd.f32 %v4103_v18, %v3652_v53  ;;  %v4095_v34 = vadd.f32 %v9812_v2, %v10981_v36  ;;  %v10988_v53 = vld [vmem:[#allocation90_spill] sm:$0xff] }
 0x4ee   :  { %v3656_v30 = vpop.f32.mrf.mxu1  ;;  %v4145_v47 = vadd.f32 %v9838_v32, %v10988_v53  ;;  %v4150_v28 = vadd.f32 %v4144_v51, %v10989_v19 }
 0x4ef   :  { %v4115_v11 = vadd.f32 %v9765_v45, %v4109_v13  ;;  %v4106_v52 = vadd.f32 %v4100_v21, %v3656_v30 }
 0x4f0   :  { %v3658_v3 = vpop.f32.mrf.mxu1 }
 0x4f1   :  { %v4121_v10 = vmax.f32 %v4071_v60, %v4115_v11  ;;  %v4110_v42 = vadd.f32 %v4104_v26, %v3658_v3  ;;  %v4101_v60 = vadd.f32 %v4095_v34, %v10984_v31  ;;  %v10990_v26 = vld [vmem:[#allocation51_spill] sm:$0xff]  ;;  %v6177_v34 = vpop.f32.mrf.mxu0 }
 0x4f2   :  { %v3662_v20 = vpop.f32.mrf.mxu1  ;;  %v4146_v11 = vadd.f32 %v9845_v59, %v10990_v26  ;;  %v10991_v3 = vld [vmem:[#allocation55_spill] sm:$0xff] }
 0x4f3   :  { %v4116_v23 = vadd.f32 %v4110_v42, %v9776_v9  ;;  %v4107_v58 = vadd.f32 %v4101_v60, %v3662_v20  ;;  %v10985_v9 = vld [vmem:[#allocation61_spill] sm:$0xff]  ;;  %v4151_v56 = vadd.f32 %v4145_v47, %v10991_v3  ;;  %v10992_v20 = vld [vmem:[#allocation92_spill] sm:$0xff]  ;;  %v4001_v31 = vpop.f32.mrf.mxu0 }
 0x4f4   :  { %v3664_v61 = vpop.f32.mrf.mxu1  ;;  %v4147_v32 = vadd.f32 %v9849_v6, %v10992_v20 }
 0x4f5   :  { %v4122_v24 = vmax.f32 %v4120_v17, %v4116_v23  ;;  %v4111_v45 = vadd.f32 %v4105_v38, %v3664_v61  ;;  %v10993_v38 = vld [vmem:[#allocation33_spill] sm:$0xff] }
 0x4f6   :  { %v3668_v43 = vpop.f32.mrf.mxu1  ;;  %v4152_v23 = vadd.f32 %v4146_v11, %v10993_v38 }
 0x4f7   :  { %v4117_v7 = vadd.f32 %v10983_v40, %v4111_v45  ;;  %v10994_v45 = vld [vmem:[#allocation56_spill] sm:$0xff] }
 0x4f8   :  { %v3669_v50 = vpop.f32.mrf.mxu1  ;;  %v4148_v43 = vadd.f32 %v9853_v41, %v10994_v45  ;;  %v4434_v45 = vld [vmem:[%s10545_s1 + $0x1a8] sm:$0xff] }
 0x4f9   :  { %v4123_v22 = vmax.f32 %v4121_v10, %v4117_v7  ;;  %v4112_v14 = vadd.f32 %v4106_v52, %v3669_v50  ;;  %v10995_v52 = vld [vmem:[#allocation81_spill] sm:$0xff] }
 0x4fa   :  { %v3673_v1 = vpop.f32.mrf.mxu1  ;;  %v4153_v40 = vadd.f32 %v4147_v32, %v10995_v52  ;;  %v4433_v52 = vld [vmem:[%s10545_s1 + $0x1a0] sm:$0xff] }
 0x4fb   :  { %v4118_v8 = vadd.f32 %v4112_v14, %v10985_v9  ;;  %v10996_v1 = vld [vmem:[#allocation34_spill] sm:$0xff] }
 0x4fc   :  { %v3674_v15 = vpop.f32.mrf.mxu1  ;;  %v10997_v9 = vld [vmem:[#allocation94_spill] sm:$0xff] }
 0x4fd   :  { %v4124_v12 = vmax.f32 %v4122_v24, %v4118_v8  ;;  %v4113_v2 = vadd.f32 %v4107_v58, %v3674_v15  ;;  %v4149_v58 = vadd.f32 %v9860_v25, %v10996_v1  ;;  %v4154_v8 = vadd.f32 %v4148_v43, %v10997_v9  ;;  %v5325_v25 = vld [vmem:[%s10545_s1 + $0x28] ss:$0 sm:$0xff]  ;;  %v4318_v43 = vld [vmem:[%s10545_s1 + $0xf0] sm:$0xff]  ;;  %v4312_v9 = vld [vmem:[%s10545_s1 + $0xc0] sm:$0xff] }
 0x4fe   :  { %v3678_v29 = vpop.f32.mrf.mxu1  ;;  %v4313_v1 = vld [vmem:[%s10545_s1 + $0xc8] sm:$0xff] }
 0x4ff   :  { %v4119_v39 = vadd.f32 %v10986_v44, %v4113_v2  ;;  %v6180_v2 = vpop.f32.mrf.mxu0 }
 0x500   :  { %v3679_v48 = vpop.f32.mrf.mxu1 }
 0x501   :  { %v4125_v35 = vmax.f32 %v4123_v22, %v4119_v39  ;;  %v10998_v48 = vld [vmem:[#allocation58_spill] sm:$0xff] }
 0x502   :  { %v3682_v55 = vpop.f32.mrf.mxu1 }
 0x504   :  { %v3683_v46 = vpop.f32.mrf.mxu1 }
 0x506   :  { %v3686_v16 = vpop.f32.mrf.mxu1 }
 0x507   :  { %v4156_v13 = vadd.f32 %v4150_v28, %v3686_v16  ;;  %v4011_v16 = vpop.f32.mrf.mxu0 }
 0x508   :  { %v3688_v62 = vpop.f32.mrf.mxu1 }
 0x50a   :  { %v3691_v18 = vpop.f32.mrf.mxu1 }
 0x50b   :  { %v4157_v27 = vadd.f32 %v4151_v56, %v3691_v18 }
 0x50c   :  { %v3693_v33 = vpop.f32.mrf.mxu1 }
 0x50e   :  { %v3696_v17 = vpop.f32.mrf.mxu1 }
 0x50f   :  { %v4158_v21 = vadd.f32 %v4152_v23, %v3696_v17  ;;  %v4325_v23 = vld [vmem:[%s10545_s1 + $0x128] sm:$0xff] }
 0x510   :  { %v3698_v30 = vpop.f32.mrf.mxu1 }
 0x511   :  { %v4162_v4 = vadd.f32 %v4156_v13, %v3698_v30 }
 0x512   :  { %v3702_v54 = vpop.f32.mrf.mxu1 }
 0x513   :  { %v4168_v10 = vadd.f32 %v4162_v4, %v3991_v5  ;;  %v4159_v22 = vadd.f32 %v4153_v40, %v3702_v54  ;;  %v4317_v40 = vld [vmem:[%s10545_s1 + $0xe8] sm:$0xff] }
 0x514   :  { %v3704_v42 = vpop.f32.mrf.mxu1 }
 0x515   :  { %v4174_v61 = vmax.f32 %v4124_v12, %v4168_v10  ;;  %v4163_v36 = vadd.f32 %v4157_v27, %v3704_v42 }
 0x516   :  { %v3708_v0 = vpop.f32.mrf.mxu1 }
 0x517   :  { %v4169_v24 = vadd.f32 %v6174_v49, %v4163_v36  ;;  %v4160_v44 = vadd.f32 %v4154_v8, %v3708_v0  ;;  %v4323_v36 = vld [vmem:[%s10545_s1 + $0x118] sm:$0xff]  ;;  %v4320_v0 = vld [vmem:[%s10545_s1 + $0x100] sm:$0xff]  ;;  %v4427_v8 = vld [vmem:[%s10545_s1 + $0x170] sm:$0xff] }
 0x518   :  { %v3710_v59 = vpop.f32.mrf.mxu1 }
 0x519   :  { %v4175_v7 = vmax.f32 %v4125_v35, %v4169_v24  ;;  %v4164_v50 = vadd.f32 %v4158_v21, %v3710_v59  ;;  %v4155_v35 = vadd.f32 %v4149_v58, %v10998_v48  ;;  %v4436_v21 = vld [vmem:[%s10545_s1 + $0x1b8] sm:$0xff]  ;;  %v4435_v24 = vld [vmem:[%s10545_s1 + $0x1b0] sm:$0xff] }
 0x51a   :  { %v3714_v60 = vpop.f32.mrf.mxu1  ;;  %v4319_v59 = vld [vmem:[%s10545_s1 + $0xf8] sm:$0xff]  ;;  %6287 = vmatpush3.msra.mxu0 %v4436_v21 }
 0x51b   :  { %v4170_v6 = vadd.f32 %v4164_v50, %v4001_v31  ;;  %v4161_v63 = vadd.f32 %v4155_v35, %v3714_v60  ;;  %6288 = vmatprep.subr.mxu0 %v10745_v57  ;;  %v4316_v50 = vld [vmem:[%s10545_s1 + $0xe0] sm:$0xff]  ;;  %v4431_v31 = vld [vmem:[%s10545_s1 + $0x190] sm:$0xff]  ;;  %v4315_v60 = vld [vmem:[%s10545_s1 + $0xd8] sm:$0xff] }
 0x51c   :  { %v3716_v14 = vpop.f32.mrf.mxu1  ;;  %6289 = vmatpush3.msra.mxu0 %v4435_v24  ;;  %v4428_v58 = vld [vmem:[%s10545_s1 + $0x178] sm:$0xff] }
 0x51d   :  { %v4176_v15 = vmax.f32 %v4174_v61, %v4170_v6  ;;  %v4165_v12 = vadd.f32 %v4159_v22, %v3716_v14  ;;  %v4324_v61 = vld [vmem:[%s10545_s1 + $0x120] sm:$0xff]  ;;  %6290 = vmatprep.subr.mxu0 %v10745_v57  ;;  %v4430_v22 = vld [vmem:[%s10545_s1 + $0x188] sm:$0xff]  ;;  %v4314_v6 = vld [vmem:[%s10545_s1 + $0xd0] sm:$0xff] }
 0x51e   :  { %v3720_v29 = vpop.f32.mrf.mxu1  ;;  %6291 = vmatpush3.msra.mxu0 %v4434_v45  ;;  %v4429_v14 = vld [vmem:[%s10545_s1 + $0x180] sm:$0xff] }
 0x51f   :  { %v4171_v41 = vadd.f32 %v6177_v34, %v4165_v12  ;;  %v4322_v34 = vld [vmem:[%s10545_s1 + $0x110] sm:$0xff]  ;;  %6292 = vmatprep.subr.mxu0 %v10745_v57  ;;  %v4426_v12 = vld [vmem:[%s10545_s1 + $0x168] sm:$0xff] }
 0x520   :  { %v3721_v39 = vpop.f32.mrf.mxu1  ;;  %6293 = vmatpush3.msra.mxu0 %v4433_v52  ;;  %v5328_v29 = vld [vmem:[%s10545_s1 + $0xb0] ss:$0 sm:$0xff] }
 0x521   :  { %v4177_v55 = vmax.f32 %v4175_v7, %v4171_v41  ;;  %v4166_v46 = vadd.f32 %v4160_v44, %v3721_v39  ;;  %v4432_v7 = vld [vmem:[%s10545_s1 + $0x198] sm:$0xff]  ;;  %6294 = vmatprep.subr.mxu0 %v10745_v57 }
 0x522   :  { %v3725_v62 = vpop.f32.mrf.mxu1  ;;  %6295 = vmatpush3.msra.mxu0 %v4432_v7 }
 0x523   :  { %v4172_v51 = vadd.f32 %v4166_v46, %v4011_v16  ;;  %6296 = vmatprep.subr.mxu0 %v10745_v57 }
 0x524   :  { %v3726_v18 = vpop.f32.mrf.mxu1  ;;  %6297 = vmatpush3.msra.mxu0 %v4431_v31 }
 0x525   :  { %v4178_v33 = vmax.f32 %v4176_v15, %v4172_v51  ;;  %v4167_v53 = vadd.f32 %v4161_v63, %v3726_v18  ;;  %6298 = vmatprep.subr.mxu0 %v10745_v57  ;;  %v4311_v15 = vld [vmem:[%s10545_s1 + $0xb8] sm:$0xff] }
 0x526   :  { %v3730_v47 = vpop.f32.mrf.mxu1  ;;  %6299 = vmatpush3.msra.mxu0 %v4430_v22 }
 0x527   :  { %v4185_v19 = vadd.f32 %v5325_v25, %v4178_v33  ;;  %v4173_v28 = vadd.f32 %v6180_v2, %v4167_v53  ;;  %6300 = vmatprep.subr.mxu0 %v10745_v57  ;;  %v4425_v2 = vld [vmem:[%s10545_s1 + $0x160] sm:$0xff] }
 0x528   :  { %v3731_v49 = vpop.f32.mrf.mxu1  ;;  %6301 = vmatpush3.msra.mxu0 %v4429_v14  ;;  %v4636_v14 = vld [vmem:[%s10545_s1 + $0x330] sm:$0xff] }
 0x529   :  { %v4189_v17 = vmul.f32 1.442695, %v4185_v19  ;;  %v4179_v13 = vmax.f32 %v4177_v55, %v4173_v28  ;;  %vm4187_vm3 = vcmp.gt.f32.partialorder %v4185_v19, 0.0  ;;  %6302 = vmatprep.subr.mxu0 %v10745_v57  ;;  %v4451_v28 = vld [vmem:[%s10545_s1 + $0x2b0] sm:$0xff]  ;;  %v4450_v49 = vld [vmem:[%s10545_s1 + $0x2a8] sm:$0xff] }
 0x52a   :  { %v3734_v30 = vpop.f32.mrf.mxu1  ;;  %6303 = vmatpush3.msra.mxu0 %v4428_v58  ;;  %v4635_v58 = vld [vmem:[%s10545_s1 + $0x328] sm:$0xff] }
 0x52b   :  { %6598 = vpow2.f32 %v4189_v17  ;;  %v4186_v26 = vadd.f32 %v5325_v25, %v4179_v13  ;;  %6304 = vmatprep.subr.mxu0 %v10745_v57  ;;  %v4449_v17 = vld [vmem:[%s10545_s1 + $0x2a0] sm:$0xff]  ;;  %v4448_v13 = vld [vmem:[%s10545_s1 + $0x298] sm:$0xff]  ;;  %v4447_v30 = vld [vmem:[%s10545_s1 + $0x290] sm:$0xff] }
 0x52c   :  { %v3735_v11 = vpop.f32.mrf.mxu1  ;;  %6305 = vmatpush3.msra.mxu0 %v4427_v8  ;;  %v4634_v8 = vld [vmem:[%s10545_s1 + $0x320] sm:$0xff] }
 0x52d   :  { %v4191_v3 = vmul.f32 1.442695, %v4186_v26  ;;  %vm4188_vm4 = vcmp.gt.f32.partialorder %v4186_v26, 0.0  ;;  %6306 = vmatprep.subr.mxu0 %v10745_v57  ;;  %v4446_v11 = vld [vmem:[%s10545_s1 + $0x288] sm:$0xff] }
 0x52e   :  { %6307 = vmatpush3.msra.mxu0 %v4426_v12  ;;  %v4633_v12 = vld [vmem:[%s10545_s1 + $0x318] sm:$0xff] }
 0x52f   :  { %6600 = vpow2.f32 %v4191_v3  ;;  %6308 = vmatprep.subr.mxu0 %v10745_v57  ;;  %v4445_v3 = vld [vmem:[%s10545_s1 + $0x280] sm:$0xff] }
 0x530   :  { %6309 = vmatpush3.msra.mxu0 %v4425_v2  ;;  %v4618_v2 = vld [vmem:[%s10545_s1 + $0x220] sm:$0xff] }
 0x531   :  { %6310 = vmatprep.subr.mxu0 %v10745_v57 }
 0x538   :  { %v6599_v56 = vpop.eup %6598 }
 0x539   :  { %v5326_v4 = vadd.f32 -1.0, %v6599_v56  ;;  %v4423_v56 = vld [vmem:[%s10545_s1 + $0x150] sm:$0xff] }
 0x53b   :  { %v4195_v5 = vmul.f32 1.6732632, %v5326_v4  ;;  %v4422_v4 = vld [vmem:[%s10545_s1 + $0x148] sm:$0xff] }
 0x53c   :  { %v6601_v54 = vpop.eup %6600 }
 0x53d   :  { %v5327_v27 = vadd.f32 -1.0, %v6601_v54  ;;  %v4197_v10 = vsel %vm4187_vm3, %v4185_v19, %v4195_v5  ;;  %v4452_v19 = vld [vmem:[%s10545_s1 + $0x2b8] sm:$0xff]  ;;  %v4421_v54 = vld [vmem:[%s10545_s1 + $0x140] sm:$0xff] }
 0x53e   :  { %v4199_v42 = vmul.f32 1.050701, %v4197_v10  ;;  %v4444_v5 = vld [vmem:[%s10545_s1 + $0x278] sm:$0xff]  ;;  %v4442_v10 = vld [vmem:[%s10545_s1 + $0x268] sm:$0xff] }
 0x53f   :  { %v4196_v20 = vmul.f32 1.6732632, %v5327_v27  ;;  %v4443_v27 = vld [vmem:[%s10545_s1 + $0x270] sm:$0xff] }
 0x540   :  { %6213 = vmatprep.mubr.f32.mxu1 %v4199_v42  ;;  %v4441_v42 = vld [vmem:[%s10545_s1 + $0x260] sm:$0xff] }
 0x541   :  { %v4198_v32 = vsel %vm4188_vm4, %v4186_v26, %v4196_v20  ;;  %v4424_v26 = vld [vmem:[%s10545_s1 + $0x158] sm:$0xff] }
 0x542   :  { %v4200_v38 = vmul.f32 1.050701, %v4198_v32  ;;  %6311 = vmatpush3.msra.mxu0 %v4424_v26  ;;  %v4440_v20 = vld [vmem:[%s10545_s1 + $0x258] sm:$0xff]  ;;  %v4439_v32 = vld [vmem:[%s10545_s1 + $0x250] sm:$0xff]  ;;  %v4806_v26 = vld [vmem:[%s10545_s1 + $0x3c8] sm:$0xff] }
 0x543   :  { %6312 = vmatprep.subr.mxu0 %v10745_v57 }
 0x544   :  { %6214 = vmatmul.mubr.f32.vlgmr.msra.gmra.mxu1 %v4200_v38  ;;  %6313 = vmatpush3.msra.mxu0 %v4423_v56  ;;  %v4438_v38 = vld [vmem:[%s10545_s1 + $0x248] sm:$0xff]  ;;  %v4803_v56 = vld [vmem:[%s10545_s1 + $0x3b0] sm:$0xff] }
 0x545   :  { %6217 = vmatpush3.msra.mxu1 %v9943_v37  ;;  %v4321_v37 = vld [vmem:[%s10545_s1 + $0x108] sm:$0xff]  ;;  %6314 = vmatprep.subr.mxu0 %v10745_v57 }
 0x546   :  { %6218 = vmatprep.subr.mxu1 %v4325_v23  ;;  %6315 = vmatpush3.msra.mxu0 %v4422_v4  ;;  %v4802_v4 = vld [vmem:[%s10545_s1 + $0x3a8] sm:$0xff] }
 0x547   :  { %6219 = vmatpush3.msra.mxu1 %v4325_v23  ;;  %6316 = vmatprep.subr.mxu0 %v10745_v57  ;;  %v4437_v23 = vld [vmem:[%s10545_s1 + $0x240] sm:$0xff] }
 0x548   :  { %6220 = vmatprep.subr.mxu1 %v4324_v61  ;;  %6317 = vmatpush3.msra.mxu0 %v4421_v54  ;;  %v4800_v54 = vld [vmem:[%s10545_s1 + $0x398] sm:$0xff] }
 0x549   :  { %6221 = vmatpush3.msra.mxu1 %v4324_v61  ;;  %6356 = vmatprep.subr.mxu0 %v10745_v57  ;;  %v5331_v61 = vld [vmem:[%s10545_s1 + $0x138] ss:$0 sm:$0xff] }
 0x54a   :  { %6222 = vmatprep.subr.mxu1 %v4323_v36 }
 0x54b   :  { %6223 = vmatpush3.msra.mxu1 %v4323_v36 }
 0x54c   :  { %6224 = vmatprep.subr.mxu1 %v4322_v34 }
 0x54d   :  { %6225 = vmatpush3.msra.mxu1 %v4322_v34 }
 0x54e   :  { %6226 = vmatprep.subr.mxu1 %v4321_v37 }
 0x54f   :  { %6227 = vmatpush3.msra.mxu1 %v4321_v37 }
 0x550   :  { %6228 = vmatprep.subr.mxu1 %v4320_v0 }
 0x551   :  { %6229 = vmatpush3.msra.mxu1 %v4320_v0 }
 0x552   :  { %6230 = vmatprep.subr.mxu1 %v4319_v59 }
 0x553   :  { %6231 = vmatpush3.msra.mxu1 %v4319_v59 }
 0x554   :  { %6232 = vmatprep.subr.mxu1 %v4318_v43 }
 0x555   :  { %6233 = vmatpush3.msra.mxu1 %v4318_v43 }
 0x556   :  { %6234 = vmatprep.subr.mxu1 %v4317_v40 }
 0x557   :  { %6235 = vmatpush3.msra.mxu1 %v4317_v40 }
 0x558   :  { %6236 = vmatprep.subr.mxu1 %v4316_v50 }
 0x559   :  { %6237 = vmatpush3.msra.mxu1 %v4316_v50 }
 0x55a   :  { %6238 = vmatprep.subr.mxu1 %v4315_v60 }
 0x55b   :  { %6239 = vmatpush3.msra.mxu1 %v4315_v60  ;;  %v4637_v60 = vld [vmem:[%s10545_s1 + $0x338] sm:$0xff] }
 0x55c   :  { %6240 = vmatprep.subr.mxu1 %v4314_v6 }
 0x55d   :  { %6241 = vmatpush3.msra.mxu1 %v4314_v6 }
 0x55e   :  { %6242 = vmatprep.subr.mxu1 %v4313_v1 }
 0x55f   :  { %6243 = vmatpush3.msra.mxu1 %v4313_v1  ;;  %v4621_v1 = vld [vmem:[%s10545_s1 + $0x238] sm:$0xff] }
 0x560   :  { %6244 = vmatprep.subr.mxu1 %v4312_v9 }
 0x561   :  { %6245 = vmatpush3.msra.mxu1 %v4312_v9  ;;  %v4620_v9 = vld [vmem:[%s10545_s1 + $0x230] sm:$0xff] }
 0x562   :  { %6246 = vmatprep.subr.mxu1 %v4311_v15 }
 0x563   :  { %6247 = vmatpush3.msra.mxu1 %v4311_v15  ;;  %v4619_v15 = vld [vmem:[%s10545_s1 + $0x228] sm:$0xff] }
 0x564   :  { %6251 = vmatprep.subr.mxu1 %v10745_v57 }
 0x604   :  { %v6215_v44 = vpop.f32.mrf.mxu1 }
 0x605   :  { %v4294_v41 = vadd.f32 %v6215_v44, %v5328_v29  ;;  %v4617_v44 = vld [vmem:[%s10545_s1 + $0x218] sm:$0xff] }
 0x606   :  { %v4288_v39 = vpop.f32.mrf.mxu1 }
 0x607   :  { %v4301_v48 = vmul.f32 1.442695, %v4294_v41  ;;  %v4289_v35 = vadd.f32 %v5328_v29, %v4288_v39  ;;  %vm4298_vm5 = vcmp.gt.f32.partialorder %v4294_v41, 0.0  ;;  %v4632_v29 = vld [vmem:[%s10545_s1 + $0x310] sm:$0xff] }
 0x608   :  { %v4616_v39 = vld [vmem:[%s10545_s1 + $0x210] sm:$0xff] }
 0x609   :  { %6602 = vpow2.f32 %v4301_v48  ;;  %v4299_v55 = vmul.f32 1.442695, %v4289_v35  ;;  %vm4297_vm6 = vcmp.gt.f32.partialorder %v4289_v35, 0.0  ;;  %v4630_v48 = vld [vmem:[%s10545_s1 + $0x300] sm:$0xff] }
 0x60b   :  { %6604 = vpow2.f32 %v4299_v55  ;;  %v4629_v55 = vld [vmem:[%s10545_s1 + $0x2f8] sm:$0xff] }
 0x616   :  { %v6603_v46 = vpop.eup %6602 }
 0x617   :  { %v5330_v16 = vadd.f32 -1.0, %v6603_v46  ;;  %v4614_v46 = vld [vmem:[%s10545_s1 + $0x200] sm:$0xff] }
 0x618   :  { %v6605_v62 = vpop.eup %6604 }
 0x619   :  { %v4306_v63 = vmul.f32 1.6732632, %v5330_v16  ;;  %v5329_v51 = vadd.f32 -1.0, %v6605_v62  ;;  %v4628_v16 = vld [vmem:[%s10545_s1 + $0x2f0] sm:$0xff]  ;;  %v4613_v62 = vld [vmem:[%s10545_s1 + $0x1f8] sm:$0xff] }
 0x61b   :  { %v4305_v25 = vmul.f32 1.6732632, %v5329_v51  ;;  %v4308_v18 = vsel %vm4298_vm5, %v4294_v41, %v4306_v63  ;;  %v4631_v41 = vld [vmem:[%s10545_s1 + $0x308] sm:$0xff]  ;;  %v4612_v51 = vld [vmem:[%s10545_s1 + $0x1f0] sm:$0xff] }
 0x61c   :  { %v4310_v47 = vmul.f32 1.050701, %v4308_v18  ;;  %v4627_v63 = vld [vmem:[%s10545_s1 + $0x2e8] sm:$0xff] }
 0x61d   :  { %v4307_v33 = vsel %vm4297_vm6, %v4289_v35, %v4305_v25  ;;  %v4615_v35 = vld [vmem:[%s10545_s1 + $0x208] sm:$0xff]  ;;  %v4626_v25 = vld [vmem:[%s10545_s1 + $0x2e0] sm:$0xff] }
 0x61e   :  { %v4309_v53 = vmul.f32 1.050701, %v4307_v33  ;;  %v4611_v18 = vld [vmem:[%s10545_s1 + $0x1e8] sm:$0xff]  ;;  %v4625_v33 = vld [vmem:[%s10545_s1 + $0x2d8] sm:$0xff] }
 0x620   :  { %6248 = vmatprep.mubr.f32.mxu1 %v4309_v53  ;;  %v4610_v53 = vld [vmem:[%s10545_s1 + $0x1e0] sm:$0xff] }
 0x621   :  { %6249 = vmatmul.mubr.f32.vlgmr.msra.gmra.mxu1 %v4310_v47  ;;  %v4624_v47 = vld [vmem:[%s10545_s1 + $0x2d0] sm:$0xff] }
 0x622   :  { %6252 = vmatpush3.msra.mxu1 %v4452_v19  ;;  %6283 = vmatprep.mubr.msk.f32.mxu1 %vm6619_vm7, %v10745_v57  ;;  %v4609_v19 = vld [vmem:[%s10545_s1 + $0x1d8] sm:$0xff] }
 0x623   :  { %6253 = vmatprep.subr.mxu1 %v10745_v57 }
 0x624   :  { %6254 = vmatpush3.msra.mxu1 %v4451_v28  ;;  %v4623_v28 = vld [vmem:[%s10545_s1 + $0x2c8] sm:$0xff] }
 0x625   :  { %6255 = vmatprep.subr.mxu1 %v10745_v57 }
 0x626   :  { %6256 = vmatpush3.msra.mxu1 %v4450_v49  ;;  %v4608_v49 = vld [vmem:[%s10545_s1 + $0x1d0] sm:$0xff] }
 0x627   :  { %6257 = vmatprep.subr.mxu1 %v10745_v57 }
 0x628   :  { %6258 = vmatpush3.msra.mxu1 %v4449_v17  ;;  %v4622_v17 = vld [vmem:[%s10545_s1 + $0x2c0] sm:$0xff] }
 0x629   :  { %6259 = vmatprep.subr.mxu1 %v10745_v57 }
 0x62a   :  { %6260 = vmatpush3.msra.mxu1 %v4448_v13  ;;  %v4607_v13 = vld [vmem:[%s10545_s1 + $0x1c8] sm:$0xff] }
 0x62b   :  { %6261 = vmatprep.subr.mxu1 %v10745_v57 }
 0x62c   :  { %6262 = vmatpush3.msra.mxu1 %v4447_v30  ;;  %v4606_v30 = vld [vmem:[%s10545_s1 + $0x1c0] sm:$0xff] }
 0x62d   :  { %6263 = vmatprep.subr.mxu1 %v10745_v57 }
 0x62e   :  { %6264 = vmatpush3.msra.mxu1 %v4446_v11  ;;  %v4805_v11 = vld [vmem:[%s10545_s1 + $0x3c0] sm:$0xff] }
 0x62f   :  { %6265 = vmatprep.subr.mxu1 %v10745_v57 }
 0x630   :  { %6266 = vmatpush3.msra.mxu1 %v4445_v3  ;;  %v4804_v3 = vld [vmem:[%s10545_s1 + $0x3b8] sm:$0xff] }
 0x631   :  { %6267 = vmatprep.subr.mxu1 %v10745_v57 }
 0x632   :  { %6268 = vmatpush3.msra.mxu1 %v4444_v5  ;;  %v4801_v5 = vld [vmem:[%s10545_s1 + $0x3a0] sm:$0xff] }
 0x633   :  { %6269 = vmatprep.subr.mxu1 %v10745_v57 }
 0x634   :  { %6270 = vmatpush3.msra.mxu1 %v4443_v27  ;;  %v4799_v27 = vld [vmem:[%s10545_s1 + $0x390] sm:$0xff] }
 0x635   :  { %6271 = vmatprep.subr.mxu1 %v10745_v57 }
 0x636   :  { %6272 = vmatpush3.msra.mxu1 %v4442_v10  ;;  %v4822_v10 = vld [vmem:[%s10545_s1 + $0x448] sm:$0xff] }
 0x637   :  { %6273 = vmatprep.subr.mxu1 %v10745_v57 }
 0x638   :  { %6274 = vmatpush3.msra.mxu1 %v4441_v42  ;;  %v4821_v42 = vld [vmem:[%s10545_s1 + $0x440] sm:$0xff] }
 0x639   :  { %6275 = vmatprep.subr.mxu1 %v10745_v57 }
 0x63a   :  { %6276 = vmatpush3.msra.mxu1 %v4440_v20  ;;  %v4798_v20 = vld [vmem:[%s10545_s1 + $0x388] sm:$0xff] }
 0x63b   :  { %6277 = vmatprep.subr.mxu1 %v10745_v57 }
 0x63c   :  { %6278 = vmatpush3.msra.mxu1 %v4439_v32  ;;  %v4797_v32 = vld [vmem:[%s10545_s1 + $0x380] sm:$0xff] }
 0x63d   :  { %6279 = vmatprep.subr.mxu1 %v10745_v57 }
 0x63e   :  { %6280 = vmatpush3.msra.mxu1 %v4438_v38  ;;  %v4796_v38 = vld [vmem:[%s10545_s1 + $0x378] sm:$0xff] }
 0x63f   :  { %6281 = vmatprep.subr.mxu1 %v10745_v57 }
 0x640   :  { %6282 = vmatpush3.msra.mxu1 %v4437_v23  ;;  %v4795_v23 = vld [vmem:[%s10545_s1 + $0x370] sm:$0xff] }
 0x641   :  { %6321 = vmatprep.subr.mxu1 %v10745_v57 }
 0x6e1   :  { %v6250_v36 = vpop.f32.mrf.mxu1 }
 0x6e2   :  { %v4404_v34 = vadd.f32 %v6250_v36, %v5331_v61  ;;  %v4793_v36 = vld [vmem:[%s10545_s1 + $0x360] sm:$0xff] }
 0x6e3   :  { %v4398_v37 = vpop.f32.mrf.mxu1 }
 0x6e4   :  { %v4411_v0 = vmul.f32 1.442695, %v4404_v34  ;;  %v4399_v21 = vadd.f32 %v5331_v61, %v4398_v37  ;;  %vm4408_vm8 = vcmp.gt.f32.partialorder %v4404_v34, 0.0  ;;  %v4794_v61 = vld [vmem:[%s10545_s1 + $0x368] sm:$0xff]  ;;  %v4791_v37 = vld [vmem:[%s10545_s1 + $0x350] sm:$0xff] }
 0x6e6   :  { %6606 = vpow2.f32 %v4411_v0  ;;  %v4409_v24 = vmul.f32 1.442695, %v4399_v21  ;;  %vm4407_vm9 = vcmp.gt.f32.partialorder %v4399_v21, 0.0  ;;  %v4820_v0 = vld [vmem:[%s10545_s1 + $0x438] sm:$0xff] }
 0x6e8   :  { %6608 = vpow2.f32 %v4409_v24  ;;  %v4818_v24 = vld [vmem:[%s10545_s1 + $0x428] sm:$0xff] }
 0x6f3   :  { %v6607_v59 = vpop.eup %6606 }
 0x6f4   :  { %v5333_v45 = vadd.f32 -1.0, %v6607_v59  ;;  %v4817_v59 = vld [vmem:[%s10545_s1 + $0x420] sm:$0xff] }
 0x6f5   :  { %v6609_v43 = vpop.eup %6608 }
 0x6f6   :  { %v4416_v52 = vmul.f32 1.6732632, %v5333_v45  ;;  %v5332_v40 = vadd.f32 -1.0, %v6609_v43  ;;  %v4816_v45 = vld [vmem:[%s10545_s1 + $0x418] sm:$0xff]  ;;  %v4815_v43 = vld [vmem:[%s10545_s1 + $0x410] sm:$0xff] }
 0x6f8   :  { %v4418_v7 = vsel %vm4408_vm8, %v4404_v34, %v4416_v52  ;;  %v4415_v50 = vmul.f32 1.6732632, %v5332_v40  ;;  %v4792_v34 = vld [vmem:[%s10545_s1 + $0x358] sm:$0xff]  ;;  %v4814_v52 = vld [vmem:[%s10545_s1 + $0x408] sm:$0xff]  ;;  %v4813_v40 = vld [vmem:[%s10545_s1 + $0x400] sm:$0xff] }
 0x6f9   :  { %v10186_v31 = vmul.f32 1.050701, %v4418_v7  ;;  %v4812_v7 = vld [vmem:[%s10545_s1 + $0x3f8] sm:$0xff] }
 0x6fa   :  { %v4417_v22 = vsel %vm4407_vm9, %v4399_v21, %v4415_v50  ;;  %v4819_v21 = vld [vmem:[%s10545_s1 + $0x430] sm:$0xff] }
 0x6fb   :  { %v10191_v6 = vmul.f32 1.050701, %v4417_v22  ;;  %6284 = vmatmul.mubr.f32.vlgmr.msra.gmra.mxu1 %v10186_v31  ;;  %5068 = vst [vmem:[%s10548_s3 + $0x8] sm:$0xff] %v10186_v31  ;;  %v4811_v50 = vld [vmem:[%s10545_s1 + $0x3f0] sm:$0xff]  ;;  %v4808_v22 = vld [vmem:[%s10545_s1 + $0x3d8] sm:$0xff] }
 0x6fc   :  { %6322 = vmatpush3.msra.mxu1 %v4637_v60  ;;  %6353 = vmatprep.mubr.msk.f32.mxu1 %vm6619_vm7, %v10745_v57  ;;  %v4809_v60 = vld [vmem:[%s10545_s1 + $0x3e0] sm:$0xff] }
 0x6fd   :  { %6323 = vmatprep.subr.mxu1 %v10745_v57  ;;  %6319 = vmatmul.mubr.f32.vlgmr.msra.gmra.mxu0 %v10191_v6  ;;  %5067 = vst [vmem:[%s10548_s3] sm:$0xff] %v10191_v6 }
 0x6fe   :  { %6324 = vmatpush3.msra.mxu1 %v4636_v14  ;;  %6357 = vmatpush3.msra.mxu0 %v4621_v1 }
 0x6ff   :  { %6325 = vmatprep.subr.mxu1 %v10745_v57  ;;  %6358 = vmatprep.subr.mxu0 %v10745_v57 }
 0x700   :  { %6326 = vmatpush3.msra.mxu1 %v4635_v58  ;;  %6359 = vmatpush3.msra.mxu0 %v4620_v9  ;;  %v5334_v9 = vld [vmem:[%s10545_s1 + $0x340] ss:$0 sm:$0xff] }
 0x701   :  { %6327 = vmatprep.subr.mxu1 %v10745_v57  ;;  %6360 = vmatprep.subr.mxu0 %v10745_v57 }
 0x702   :  { %6328 = vmatpush3.msra.mxu1 %v4634_v8  ;;  %6361 = vmatpush3.msra.mxu0 %v4619_v15 }
 0x703   :  { %6329 = vmatprep.subr.mxu1 %v10745_v57  ;;  %6362 = vmatprep.subr.mxu0 %v10745_v57 }
 0x704   :  { %6330 = vmatpush3.msra.mxu1 %v4633_v12  ;;  %6363 = vmatpush3.msra.mxu0 %v4618_v2 }
 0x705   :  { %6331 = vmatprep.subr.mxu1 %v10745_v57  ;;  %6364 = vmatprep.subr.mxu0 %v10745_v57 }
 0x706   :  { %6332 = vmatpush3.msra.mxu1 %v4632_v29  ;;  %6365 = vmatpush3.msra.mxu0 %v4617_v44 }
 0x707   :  { %6333 = vmatprep.subr.mxu1 %v10745_v57  ;;  %6366 = vmatprep.subr.mxu0 %v10745_v57 }
 0x708   :  { %6334 = vmatpush3.msra.mxu1 %v4631_v41  ;;  %6367 = vmatpush3.msra.mxu0 %v4616_v39 }
 0x709   :  { %6335 = vmatprep.subr.mxu1 %v10745_v57  ;;  %6368 = vmatprep.subr.mxu0 %v10745_v57 }
 0x70a   :  { %6336 = vmatpush3.msra.mxu1 %v4630_v48  ;;  %6369 = vmatpush3.msra.mxu0 %v4615_v35 }
 0x70b   :  { %6337 = vmatprep.subr.mxu1 %v10745_v57  ;;  %6370 = vmatprep.subr.mxu0 %v10745_v57 }
 0x70c   :  { %6338 = vmatpush3.msra.mxu1 %v4629_v55  ;;  %6371 = vmatpush3.msra.mxu0 %v4614_v46 }
 0x70d   :  { %6339 = vmatprep.subr.mxu1 %v10745_v57  ;;  %6372 = vmatprep.subr.mxu0 %v10745_v57 }
 0x70e   :  { %6340 = vmatpush3.msra.mxu1 %v4628_v16  ;;  %6373 = vmatpush3.msra.mxu0 %v4613_v62  ;;  %v5336_v16 = vld [vmem:[%s10545_s1 + $0x348] ss:$0 sm:$0xff] }
 0x70f   :  { %6341 = vmatprep.subr.mxu1 %v10745_v57  ;;  %6374 = vmatprep.subr.mxu0 %v10745_v57 }
 0x710   :  { %6342 = vmatpush3.msra.mxu1 %v4627_v63  ;;  %6375 = vmatpush3.msra.mxu0 %v4612_v51 }
 0x711   :  { %6343 = vmatprep.subr.mxu1 %v10745_v57  ;;  %6376 = vmatprep.subr.mxu0 %v10745_v57 }
 0x712   :  { %6344 = vmatpush3.msra.mxu1 %v4626_v25  ;;  %6377 = vmatpush3.msra.mxu0 %v4611_v18 }
 0x713   :  { %6345 = vmatprep.subr.mxu1 %v10745_v57  ;;  %6378 = vmatprep.subr.mxu0 %v10745_v57 }
 0x714   :  { %6346 = vmatpush3.msra.mxu1 %v4625_v33  ;;  %6379 = vmatpush3.msra.mxu0 %v4610_v53 }
 0x715   :  { %6347 = vmatprep.subr.mxu1 %v10745_v57  ;;  %6380 = vmatprep.subr.mxu0 %v10745_v57 }
 0x716   :  { %6348 = vmatpush3.msra.mxu1 %v4624_v47  ;;  %6381 = vmatpush3.msra.mxu0 %v4609_v19 }
 0x717   :  { %6349 = vmatprep.subr.mxu1 %v10745_v57  ;;  %6382 = vmatprep.subr.mxu0 %v10745_v57 }
 0x718   :  { %6350 = vmatpush3.msra.mxu1 %v4623_v28  ;;  %6383 = vmatpush3.msra.mxu0 %v4608_v49  ;;  %v4991_v28 = vld [vmem:[%s10545_s1 + $0x4d0] sm:$0xff]  ;;  %v4990_v49 = vld [vmem:[%s10545_s1 + $0x4c8] sm:$0xff] }
 0x719   :  { %6351 = vmatprep.subr.mxu1 %v10745_v57  ;;  %6384 = vmatprep.subr.mxu0 %v10745_v57 }
 0x71a   :  { %6352 = vmatpush3.msra.mxu1 %v4622_v17  ;;  %6385 = vmatpush3.msra.mxu0 %v4607_v13  ;;  %v4989_v17 = vld [vmem:[%s10545_s1 + $0x4c0] sm:$0xff]  ;;  %v4988_v13 = vld [vmem:[%s10545_s1 + $0x4b8] sm:$0xff] }
 0x71b   :  { %6354 = vmatmul.mubr.f32.vlgmr.msra.gmra.mxu1 %v10186_v31  ;;  %6386 = vmatprep.subr.mxu0 %v10745_v57  ;;  %v4810_v31 = vld [vmem:[%s10545_s1 + $0x3e8] sm:$0xff] }
 0x71c   :  { %6387 = vmatpush3.msra.mxu0 %v4606_v30  ;;  %6388 = vmatprep.mubr.msk.f32.mxu0 %vm6619_vm7, %v10745_v57  ;;  %v4987_v30 = vld [vmem:[%s10545_s1 + $0x4b0] sm:$0xff] }
 0x71d   :  { %6389 = vmatmul.mubr.f32.vlgmr.msra.gmra.mxu0 %v10191_v6  ;;  %6426 = vmatprep.subr.mxu0 %v10745_v57  ;;  %v4807_v6 = vld [vmem:[%s10545_s1 + $0x3d0] sm:$0xff] }
 0x71e   :  { %6427 = vmatpush3.msra.mxu0 %v4806_v26  ;;  %6391 = vmatprep.subr.mxu1 %v10745_v57  ;;  %v4986_v26 = vld [vmem:[%s10545_s1 + $0x4a8] sm:$0xff] }
 0x71f   :  { %6428 = vmatprep.subr.mxu0 %v10745_v57  ;;  %6458 = vmatprep.mubr.msk.f32.mxu0 %vm6619_vm7, %v10745_v57 }
 0x720   :  { %6423 = vmatprep.mubr.msk.f32.mxu1 %vm6619_vm7, %v10745_v57  ;;  %6429 = vmatpush3.msra.mxu0 %v4805_v11  ;;  %v4985_v11 = vld [vmem:[%s10545_s1 + $0x4a0] sm:$0xff] }
 0x721   :  { %6430 = vmatprep.subr.mxu0 %v10745_v57  ;;  %6392 = vmatpush3.msra.mxu1 %v4822_v10  ;;  %v4978_v10 = vld [vmem:[%s10545_s1 + $0x468] sm:$0xff] }
 0x722   :  { %6431 = vmatpush3.msra.mxu0 %v4804_v3  ;;  %6393 = vmatprep.subr.mxu1 %v10745_v57  ;;  %v4984_v3 = vld [vmem:[%s10545_s1 + $0x498] sm:$0xff] }
 0x723   :  { %6432 = vmatprep.subr.mxu0 %v10745_v57  ;;  %6394 = vmatpush3.msra.mxu1 %v4821_v42  ;;  %v4977_v42 = vld [vmem:[%s10545_s1 + $0x460] sm:$0xff] }
 0x724   :  { %6433 = vmatpush3.msra.mxu0 %v4803_v56  ;;  %6395 = vmatprep.subr.mxu1 %v10745_v57  ;;  %v4983_v56 = vld [vmem:[%s10545_s1 + $0x490] sm:$0xff] }
 0x725   :  { %6434 = vmatprep.subr.mxu0 %v10745_v57  ;;  %6396 = vmatpush3.msra.mxu1 %v4820_v0 }
 0x726   :  { %6435 = vmatpush3.msra.mxu0 %v4802_v4  ;;  %6397 = vmatprep.subr.mxu1 %v10745_v57  ;;  %v4982_v4 = vld [vmem:[%s10545_s1 + $0x488] sm:$0xff] }
 0x727   :  { %6436 = vmatprep.subr.mxu0 %v10745_v57  ;;  %6398 = vmatpush3.msra.mxu1 %v4819_v21 }
 0x728   :  { %6437 = vmatpush3.msra.mxu0 %v4801_v5  ;;  %6399 = vmatprep.subr.mxu1 %v10745_v57  ;;  %v4981_v5 = vld [vmem:[%s10545_s1 + $0x480] sm:$0xff] }
 0x729   :  { %6438 = vmatprep.subr.mxu0 %v10745_v57  ;;  %6400 = vmatpush3.msra.mxu1 %v4818_v24 }
 0x72a   :  { %6439 = vmatpush3.msra.mxu0 %v4800_v54  ;;  %6401 = vmatprep.subr.mxu1 %v10745_v57  ;;  %v4980_v54 = vld [vmem:[%s10545_s1 + $0x478] sm:$0xff] }
 0x72b   :  { %6440 = vmatprep.subr.mxu0 %v10745_v57  ;;  %6402 = vmatpush3.msra.mxu1 %v4817_v59 }
 0x72c   :  { %6441 = vmatpush3.msra.mxu0 %v4799_v27  ;;  %6403 = vmatprep.subr.mxu1 %v10745_v57  ;;  %v4979_v27 = vld [vmem:[%s10545_s1 + $0x470] sm:$0xff] }
 0x72d   :  { %6442 = vmatprep.subr.mxu0 %v10745_v57  ;;  %6404 = vmatpush3.msra.mxu1 %v4816_v45 }
 0x72e   :  { %6443 = vmatpush3.msra.mxu0 %v4798_v20  ;;  %6405 = vmatprep.subr.mxu1 %v10745_v57  ;;  %v4976_v20 = vld [vmem:[%s10545_s1 + $0x458] sm:$0xff] }
 0x72f   :  { %6444 = vmatprep.subr.mxu0 %v10745_v57  ;;  %6406 = vmatpush3.msra.mxu1 %v4815_v43 }
 0x730   :  { %6445 = vmatpush3.msra.mxu0 %v4797_v32  ;;  %6407 = vmatprep.subr.mxu1 %v10745_v57 }
 0x731   :  { %6446 = vmatprep.subr.mxu0 %v10745_v57  ;;  %6408 = vmatpush3.msra.mxu1 %v4814_v52 }
 0x732   :  { %6447 = vmatpush3.msra.mxu0 %v4796_v38  ;;  %6409 = vmatprep.subr.mxu1 %v10745_v57 }
 0x733   :  { %6448 = vmatprep.subr.mxu0 %v10745_v57  ;;  %6410 = vmatpush3.msra.mxu1 %v4813_v40 }
 0x734   :  { %6449 = vmatpush3.msra.mxu0 %v4795_v23  ;;  %6411 = vmatprep.subr.mxu1 %v10745_v57 }
 0x735   :  { %6450 = vmatprep.subr.mxu0 %v10745_v57  ;;  %6412 = vmatpush3.msra.mxu1 %v4812_v7 }
 0x736   :  { %6451 = vmatpush3.msra.mxu0 %v4794_v61  ;;  %6413 = vmatprep.subr.mxu1 %v10745_v57  ;;  %v5338_v61 = vld [vmem:[%s10545_s1 + $0x450] ss:$0 sm:$0xff] }
 0x737   :  { %6452 = vmatprep.subr.mxu0 %v10745_v57  ;;  %6414 = vmatpush3.msra.mxu1 %v4811_v50 }
 0x738   :  { %6453 = vmatpush3.msra.mxu0 %v4793_v36  ;;  %6415 = vmatprep.subr.mxu1 %v10745_v57 }
 0x739   :  { %6454 = vmatprep.subr.mxu0 %v10745_v57  ;;  %6416 = vmatpush3.msra.mxu1 %v4810_v31 }
 0x73a   :  { %6455 = vmatpush3.msra.mxu0 %v4792_v34  ;;  %6417 = vmatprep.subr.mxu1 %v10745_v57 }
 0x73b   :  { %6456 = vmatprep.subr.mxu0 %v10745_v57  ;;  %6418 = vmatpush3.msra.mxu1 %v4809_v60 }
 0x73c   :  { %6457 = vmatpush3.msra.mxu0 %v4791_v37  ;;  %6419 = vmatprep.subr.mxu1 %v10745_v57 }
 0x73d   :  { %6420 = vmatpush3.msra.mxu1 %v4808_v22 }
 0x73e   :  { %6421 = vmatprep.subr.mxu1 %v10745_v57 }
 0x73f   :  { %6422 = vmatpush3.msra.mxu1 %v4807_v6 }
 0x740   :  { %6461 = vmatprep.subr.mxu1 %v10745_v57 }
 0x7bb   :  { %v4519_v14 = vpop.f32.mrf.mxu1 }
 0x7bd   :  { %v6285_v1 = vpop.f32.mrf.mxu1  ;;  %v4589_v58 = vpop.f32.mrf.mxu0 }
 0x7be   :  { %v4590_v8 = vadd.f32 %v4589_v58, %v4519_v14 }
 0x7bf   :  { %v6320_v15 = vpop.f32.mrf.mxu0 }
 0x7c0   :  { %v4598_v12 = vadd.f32 %v5334_v9, %v4590_v8 }
 0x7c2   :  { %v4600_v2 = vmul.f32 1.442695, %v4598_v12  ;;  %vm4599_vm10 = vcmp.gt.f32.partialorder %v4598_v12, 0.0 }
 0x7c4   :  { %6610 = vpow2.f32 %v4600_v2 }
 0x7d1   :  { %v6611_v29 = vpop.eup %6610 }
 0x7d2   :  { %v5335_v44 = vadd.f32 -1.0, %v6611_v29 }
 0x7d4   :  { %v4603_v41 = vmul.f32 1.6732632, %v5335_v44 }
 0x7d6   :  { %v4604_v39 = vsel %vm4599_vm10, %v4598_v12, %v4603_v41 }
 0x7d7   :  { %v4605_v48 = vmul.f32 1.050701, %v4604_v39 }
 0x7d9   :  { %6459 = vmatmul.mubr.f32.vlgmr.msra.gmra.mxu0 %v4605_v48 }
 0x7db   :  { %v4704_v35 = vpop.f32.mrf.mxu1 }
 0x7dd   :  { %v6355_v55 = vpop.f32.mrf.mxu1  ;;  %v4774_v46 = vpop.f32.mrf.mxu0 }
 0x7de   :  { %v4775_v62 = vadd.f32 %v4774_v46, %v4704_v35 }
 0x7df   :  { %v6390_v63 = vpop.f32.mrf.mxu0 }
 0x7e0   :  { %v4783_v51 = vadd.f32 %v5336_v16, %v4775_v62 }
 0x7e2   :  { %v4785_v25 = vmul.f32 1.442695, %v4783_v51  ;;  %vm4784_vm11 = vcmp.gt.f32.partialorder %v4783_v51, 0.0 }
 0x7e4   :  { %6612 = vpow2.f32 %v4785_v25 }
 0x7f1   :  { %v6613_v18 = vpop.eup %6612 }
 0x7f2   :  { %v5337_v33 = vadd.f32 -1.0, %v6613_v18 }
 0x7f4   :  { %v4788_v53 = vmul.f32 1.6732632, %v5337_v33 }
 0x7f6   :  { %v4789_v47 = vsel %vm4784_vm11, %v4783_v51, %v4788_v53 }
 0x7f7   :  { %v4790_v19 = vmul.f32 1.050701, %v4789_v47 }
 0x7f9   :  { %6424 = vmatmul.mubr.f32.vlgmr.msra.gmra.mxu1 %v4790_v19 }
 0x7fa   :  { %6493 = vmatprep.mubr.msk.f32.mxu1 %vm6619_vm7, %v10745_v57  ;;  %6462 = vmatpush3.msra.mxu1 %v4991_v28 }
 0x7fb   :  { %6463 = vmatprep.subr.mxu1 %v10745_v57 }
 0x7fc   :  { %6464 = vmatpush3.msra.mxu1 %v4990_v49 }
 0x7fd   :  { %6465 = vmatprep.subr.mxu1 %v10745_v57 }
 0x7fe   :  { %6466 = vmatpush3.msra.mxu1 %v4989_v17 }
 0x7ff   :  { %6467 = vmatprep.subr.mxu1 %v10745_v57 }
 0x800   :  { %6468 = vmatpush3.msra.mxu1 %v4988_v13 }
 0x801   :  { %6469 = vmatprep.subr.mxu1 %v10745_v57 }
 0x802   :  { %6470 = vmatpush3.msra.mxu1 %v4987_v30 }
 0x803   :  { %6471 = vmatprep.subr.mxu1 %v10745_v57 }
 0x804   :  { %6472 = vmatpush3.msra.mxu1 %v4986_v26 }
 0x805   :  { %6473 = vmatprep.subr.mxu1 %v10745_v57 }
 0x806   :  { %6474 = vmatpush3.msra.mxu1 %v4985_v11 }
 0x807   :  { %6475 = vmatprep.subr.mxu1 %v10745_v57 }
 0x808   :  { %6476 = vmatpush3.msra.mxu1 %v4984_v3 }
 0x809   :  { %6477 = vmatprep.subr.mxu1 %v10745_v57 }
 0x80a   :  { %6478 = vmatpush3.msra.mxu1 %v4983_v56 }
 0x80b   :  { %6479 = vmatprep.subr.mxu1 %v10745_v57 }
 0x80c   :  { %6480 = vmatpush3.msra.mxu1 %v4982_v4 }
 0x80d   :  { %6481 = vmatprep.subr.mxu1 %v10745_v57 }
 0x80e   :  { %6482 = vmatpush3.msra.mxu1 %v4981_v5 }
 0x80f   :  { %6483 = vmatprep.subr.mxu1 %v10745_v57 }
 0x810   :  { %6484 = vmatpush3.msra.mxu1 %v4980_v54 }
 0x811   :  { %6485 = vmatprep.subr.mxu1 %v10745_v57 }
 0x812   :  { %6486 = vmatpush3.msra.mxu1 %v4979_v27 }
 0x813   :  { %6487 = vmatprep.subr.mxu1 %v10745_v57 }
 0x814   :  { %6488 = vmatpush3.msra.mxu1 %v4978_v10 }
 0x815   :  { %6489 = vmatprep.subr.mxu1 %v10745_v57 }
 0x816   :  { %6490 = vmatpush3.msra.mxu1 %v4977_v42 }
 0x817   :  { %6491 = vmatprep.subr.mxu1 %v10745_v57  ;;  %v5340_v57 = vld [vmem:[%s10545_s1 + $0x4d8] ss:$0 sm:$0xff] }
 0x818   :  { %6492 = vmatpush3.msra.mxu1 %v4976_v20 }
 0x899   :  { %v4959_v32 = vpop.f32.mrf.mxu0 }
 0x89b   :  { %v6460_v38 = vpop.f32.mrf.mxu0 }
 0x8b9   :  { %v4889_v23 = vpop.f32.mrf.mxu1 }
 0x8ba   :  { %v4960_v36 = vadd.f32 %v4959_v32, %v4889_v23 }
 0x8bb   :  { %v6425_v34 = vpop.f32.mrf.mxu1 }
 0x8bc   :  { %v4968_v37 = vadd.f32 %v5338_v61, %v4960_v36 }
 0x8be   :  { %v4970_v0 = vmul.f32 1.442695, %v4968_v37  ;;  %vm4969_vm12 = vcmp.gt.f32.partialorder %v4968_v37, 0.0 }
 0x8c0   :  { %6614 = vpow2.f32 %v4970_v0 }
 0x8cd   :  { %v6615_v21 = vpop.eup %6614 }
 0x8ce   :  { %v5339_v24 = vadd.f32 -1.0, %v6615_v21 }
 0x8d0   :  { %v4973_v59 = vmul.f32 1.6732632, %v5339_v24 }
 0x8d2   :  { %v4974_v45 = vsel %vm4969_vm12, %v4968_v37, %v4973_v59 }
 0x8d3   :  { %v4975_v43 = vmul.f32 1.050701, %v4974_v45 }
 0x8d5   :  { %6494 = vmatmul.mubr.f32.vlgmr.msra.gmra.mxu1 %v4975_v43 }
 0x995   :  { %v5063_v52 = vpop.f32.mrf.mxu1 }
 0x996   :  { %v5064_v40 = vadd.f32 %v5340_v57, %v5063_v52 }
 0x997   :  { %v6495_v7 = vpop.f32.mrf.mxu1 }
 0x998   :  { %5069 = vst [vmem:[%s10548_s3 + $0x10] sm:$0xff] %v5064_v40 }

</bundles_post_ra>
